<compile_context>
chip_gen: v6e
topology: v6e:2x2x1
jax: 0.10.0
libtpu: 0.0.40
codegen_flags: <defaults>
</compile_context>

<pallas_src>
import functools
import math

import jax
import jax.numpy as jnp
from jax.experimental import pallas as pl
from jax.experimental.pallas import tpu as pltpu

# ---- synthetic ALBERT config (small, consistent with AlbertForSequenceClassification) ----
VOCAB = 100        # vocab size
MAX_POS = 32       # max position embeddings
TYPE_VOCAB = 2     # token type vocab
EMB = 64           # ALBERT factorized embedding size
HID = 128          # hidden size
NH = 4             # attention heads
DH = HID // NH     # head dim
INTER = 256        # FFN intermediate size
NUM_LAYERS = 2     # ALBERT shares one layer's params across all layers
NUM_LABELS = 3
LN_EPS = 1e-12     # ALBERT layer_norm_eps


def _gelu_new(x):
    # HF "gelu_new" (tanh approximation), ALBERT's default hidden_act
    return 0.5 * x * (1.0 + jnp.tanh(0.7978845608028654 * (x + 0.044715 * x * x * x)))


def _ln(x, g, b):
    mu = jnp.mean(x, axis=-1, keepdims=True)
    xc = x - mu
    var = jnp.mean(xc * xc, axis=-1, keepdims=True)
    return xc * jax.lax.rsqrt(var + LN_EPS) * g + b


# ---------------- single fused Pallas kernel ----------------

def _albert_kernel(emb_ref, mask_ref,
                   emb_ln_g_ref, emb_ln_b_ref, map_w_ref, map_b_ref,
                   qkv_w_ref, qkv_b_ref, ao_w_ref, ao_b_ref,
                   attn_ln_g_ref, attn_ln_b_ref,
                   ffn_w_ref, ffn_b_ref, ffn_o_w_ref, ffn_o_b_ref,
                   ffn_ln_g_ref, ffn_ln_b_ref,
                   pool_w_ref, pool_b_ref, cls_w_ref, cls_b_ref,
                   out_ref, h_scr, *, batch, seq):
    layer = pl.program_id(0)
    scale = 1.0 / math.sqrt(DH)

    # ---- layer 0: embedding LayerNorm + factorized EMB->HID projection ----
    @pl.when(layer == 0)
    def _():
        e = _ln(emb_ref[...], emb_ln_g_ref[...], emb_ln_b_ref[...])
        h_scr[...] = (jnp.dot(e, map_w_ref[...], preferred_element_type=jnp.float32)
                      + map_b_ref[...])

    h = h_scr[...]                                        # (B*S, HID), VMEM-resident

    # ---- fused QKV projection ----
    qkv = (jnp.dot(h, qkv_w_ref[...], preferred_element_type=jnp.float32)
           + qkv_b_ref[...])                              # (B*S, 3*HID)

    # ---- attention: all heads in one program; fold output proj per head ----
    proj_rows = []
    for b in range(batch):                                # static unrolled (B small)
        r0 = b * seq
        q_b = qkv[r0:r0 + seq, 0 * HID:1 * HID]           # (S, HID)
        k_b = qkv[r0:r0 + seq, 1 * HID:2 * HID]
        v_b = qkv[r0:r0 + seq, 2 * HID:3 * HID]
        bias_b = mask_ref[b]                              # (1, S) additive mask bias
        acc = None
        for hh in range(NH):                              # static unrolled heads
            c0 = hh * DH
            q_h = q_b[:, c0:c0 + DH]                      # (S, DH)
            k_h = k_b[:, c0:c0 + DH]
            v_h = v_b[:, c0:c0 + DH]
            s = jnp.dot(q_h, k_h.T, preferred_element_type=jnp.float32) * scale + bias_b
            s = s - jnp.max(s, axis=-1, keepdims=True)
            p = jnp.exp(s)
            p = p * pl.reciprocal(jnp.sum(p, axis=-1, keepdims=True), approx=True)
            ctx_h = jnp.dot(p, v_h, preferred_element_type=jnp.float32)      # (S, DH)
            contrib = jnp.dot(ctx_h, ao_w_ref[pl.ds(c0, DH), :],
                              preferred_element_type=jnp.float32)            # (S, HID)
            acc = contrib if acc is None else acc + contrib
        proj_rows.append(acc)
    proj = jnp.concatenate(proj_rows, axis=0) + ao_b_ref[...]                # (B*S, HID)

    # ---- attention output residual + LN, FFN (gelu_new) + residual + LN ----
    attn_out = _ln(proj + h, attn_ln_g_ref[...], attn_ln_b_ref[...])
    f = (jnp.dot(attn_out, ffn_w_ref[...], preferred_element_type=jnp.float32)
         + ffn_b_ref[...])
    f = _gelu_new(f)
    f = (jnp.dot(f, ffn_o_w_ref[...], preferred_element_type=jnp.float32)
         + ffn_o_b_ref[...])
    h_new = _ln(f + attn_out, ffn_ln_g_ref[...], ffn_ln_b_ref[...])
    h_scr[...] = h_new

    # ---- last layer: pooler(tanh on CLS) + classifier + log_softmax ----
    @pl.when(layer == pl.num_programs(0) - 1)
    def _():
        for b in range(batch):
            cls_tok = h_new[b * seq:b * seq + 1, :]                          # (1, HID)
            pooled = jnp.tanh(
                jnp.dot(cls_tok, pool_w_ref[...], preferred_element_type=jnp.float32)
                + pool_b_ref[...])
            logits = (jnp.dot(pooled, cls_w_ref[...], preferred_element_type=jnp.float32)
                      + cls_b_ref[...])                                      # (1, NUM_LABELS)
            m = jnp.max(logits, axis=-1, keepdims=True)
            sh = logits - m
            lse = jnp.log(jnp.sum(jnp.exp(sh), axis=-1, keepdims=True))
            out_ref[pl.ds(b, 1), :] = sh - lse


def _full_spec(x):
    nd = x.ndim
    return pl.BlockSpec(x.shape, lambda l: (0,) * nd)


# ---------------- parameter init (deterministic, synthetic) ----------------

def init_params(key):
    keys = jax.random.split(key, 16)

    def W(k, shape):
        return jax.random.normal(k, shape, jnp.float32) * 0.02

    p = {}
    # embeddings
    p["word_emb"] = W(keys[0], (VOCAB, EMB))
    p["pos_emb"] = W(keys[1], (MAX_POS, EMB))
    p["type_emb"] = W(keys[2], (TYPE_VOCAB, EMB))
    p["emb_ln_g"] = jnp.ones((1, EMB), jnp.float32)
    p["emb_ln_b"] = jnp.zeros((1, EMB), jnp.float32)
    # embedding -> hidden projection
    p["map_w"] = W(keys[3], (EMB, HID)); p["map_b"] = jnp.zeros((1, HID), jnp.float32)
    # shared ALBERT layer (weights stored (in, out) for x @ w); Q/K/V fused on output dim
    p["qkv_w"] = W(keys[4], (HID, 3 * HID)); p["qkv_b"] = jnp.zeros((1, 3 * HID), jnp.float32)
    p["ao_w"] = W(keys[7], (HID, HID)); p["ao_b"] = jnp.zeros((1, HID), jnp.float32)
    p["attn_ln_g"] = jnp.ones((1, HID), jnp.float32)
    p["attn_ln_b"] = jnp.zeros((1, HID), jnp.float32)
    p["ffn_w"] = W(keys[8], (HID, INTER)); p["ffn_b"] = jnp.zeros((1, INTER), jnp.float32)
    p["ffn_o_w"] = W(keys[9], (INTER, HID)); p["ffn_o_b"] = jnp.zeros((1, HID), jnp.float32)
    p["ffn_ln_g"] = jnp.ones((1, HID), jnp.float32)
    p["ffn_ln_b"] = jnp.zeros((1, HID), jnp.float32)
    # pooler + classifier
    p["pool_w"] = W(keys[10], (HID, HID)); p["pool_b"] = jnp.zeros((1, HID), jnp.float32)
    p["cls_w"] = W(keys[11], (HID, NUM_LABELS)); p["cls_b"] = jnp.zeros((1, NUM_LABELS), jnp.float32)
    return p


# ---------------- full forward (ALBERT + log_softmax) ----------------

@jax.jit
def forward(params, input_idxs, token_type_idxs, attention_masks):
    B, S = input_idxs.shape

    # embedding lookups are gathers -> plain JAX glue (no clean Pallas equivalent)
    we = params["word_emb"][input_idxs]                       # (B, S, EMB)
    pe = params["pos_emb"][:S][None, :, :]                    # (1, S, EMB)
    te = params["type_emb"][token_type_idxs]                  # (B, S, EMB)
    emb = (we + pe + te).reshape(B * S, EMB)
    # TODO(synk): dropout layers are identity here (inference / eval mode).

    # HF extended attention mask: additive (1 - mask) * large negative, shape (B, 1, S)
    mask_bias = ((1.0 - attention_masks.astype(jnp.float32)) * -1e9).reshape(B, 1, S)

    inputs = (emb, mask_bias,
              params["emb_ln_g"], params["emb_ln_b"], params["map_w"], params["map_b"],
              params["qkv_w"], params["qkv_b"], params["ao_w"], params["ao_b"],
              params["attn_ln_g"], params["attn_ln_b"],
              params["ffn_w"], params["ffn_b"], params["ffn_o_w"], params["ffn_o_b"],
              params["ffn_ln_g"], params["ffn_ln_b"],
              params["pool_w"], params["pool_b"], params["cls_w"], params["cls_b"])

    return pl.pallas_call(
        functools.partial(_albert_kernel, batch=B, seq=S),
        out_shape=jax.ShapeDtypeStruct((B, NUM_LABELS), jnp.float32),
        grid=(NUM_LAYERS,),
        in_specs=[_full_spec(x) for x in inputs],
        out_specs=pl.BlockSpec((B, NUM_LABELS), lambda l: (0, 0)),
        scratch_shapes=[pltpu.VMEM((B * S, HID), jnp.float32)],
        compiler_params=pltpu.CompilerParams(dimension_semantics=("arbitrary",)),
    )(*inputs)


if __name__ == "__main__":
    key = jax.random.PRNGKey(0)
    pkey, ikey = jax.random.split(key)
    params = init_params(pkey)

    B, S = 2, 8
    input_idxs = jax.random.randint(ikey, (B, S), 0, VOCAB, dtype=jnp.int32)
    token_type_idxs = jnp.zeros((B, S), dtype=jnp.int32)
    attention_masks = jnp.array([[1] * S, [1] * 6 + [0] * 2], dtype=jnp.int32)

    log_p = forward(params, input_idxs, token_type_idxs, attention_masks)
    jax.block_until_ready(log_p)
    assert log_p.shape == (B, NUM_LABELS)
    assert bool(jnp.all(jnp.isfinite(log_p)))
    # log_softmax rows must (approximately) sum to 1 in prob space
    assert bool(jnp.all(jnp.abs(jnp.sum(jnp.exp(log_p), axis=-1) - 1.0) < 1e-3))
    print("KERNEL_OK")
</pallas_src>

<mosaic_0001>
module attributes {stable_mosaic.version = 11 : i64} {
  func.func @_albert_kernel(%arg0: i32, %arg1: memref<16x64xf32, #tpu.memory_space<vmem>>, %arg2: memref<2x1x8xf32, #tpu.memory_space<vmem>>, %arg3: memref<1x64xf32, #tpu.memory_space<vmem>>, %arg4: memref<1x64xf32, #tpu.memory_space<vmem>>, %arg5: memref<64x128xf32, #tpu.memory_space<vmem>>, %arg6: memref<1x128xf32, #tpu.memory_space<vmem>>, %arg7: memref<128x384xf32, #tpu.memory_space<vmem>>, %arg8: memref<1x384xf32, #tpu.memory_space<vmem>>, %arg9: memref<128x128xf32, #tpu.memory_space<vmem>>, %arg10: memref<1x128xf32, #tpu.memory_space<vmem>>, %arg11: memref<1x128xf32, #tpu.memory_space<vmem>>, %arg12: memref<1x128xf32, #tpu.memory_space<vmem>>, %arg13: memref<128x256xf32, #tpu.memory_space<vmem>>, %arg14: memref<1x256xf32, #tpu.memory_space<vmem>>, %arg15: memref<256x128xf32, #tpu.memory_space<vmem>>, %arg16: memref<1x128xf32, #tpu.memory_space<vmem>>, %arg17: memref<1x128xf32, #tpu.memory_space<vmem>>, %arg18: memref<1x128xf32, #tpu.memory_space<vmem>>, %arg19: memref<128x128xf32, #tpu.memory_space<vmem>>, %arg20: memref<1x128xf32, #tpu.memory_space<vmem>>, %arg21: memref<128x3xf32, #tpu.memory_space<vmem>>, %arg22: memref<1x3xf32, #tpu.memory_space<vmem>>, %arg23: memref<2x3xf32, #tpu.memory_space<vmem>>, %arg24: memref<16x128xf32, #tpu.memory_space<vmem>>) attributes {dimension_semantics = [#tpu.dimension_semantics<arbitrary>], iteration_bounds = array<i64: 2>, scalar_prefetch = 0 : i64, scratch_operands = 1 : i64, tpu.core_type = #tpu.core_type<tc>, window_params = [{pipeline_mode = #tpu.pipeline_mode<synchronous>, transform_indices = @transform_0, window_bounds = array<i64: 16, 64>}, {pipeline_mode = #tpu.pipeline_mode<synchronous>, transform_indices = @transform_1, window_bounds = array<i64: 2, 1, 8>}, {pipeline_mode = #tpu.pipeline_mode<synchronous>, transform_indices = @transform_2, window_bounds = array<i64: 1, 64>}, {pipeline_mode = #tpu.pipeline_mode<synchronous>, transform_indices = @transform_3, window_bounds = array<i64: 1, 64>}, {pipeline_mode = #tpu.pipeline_mode<synchronous>, transform_indices = @transform_4, window_bounds = array<i64: 64, 128>}, {pipeline_mode = #tpu.pipeline_mode<synchronous>, transform_indices = @transform_5, window_bounds = array<i64: 1, 128>}, {pipeline_mode = #tpu.pipeline_mode<synchronous>, transform_indices = @transform_6, window_bounds = array<i64: 128, 384>}, {pipeline_mode = #tpu.pipeline_mode<synchronous>, transform_indices = @transform_7, window_bounds = array<i64: 1, 384>}, {pipeline_mode = #tpu.pipeline_mode<synchronous>, transform_indices = @transform_8, window_bounds = array<i64: 128, 128>}, {pipeline_mode = #tpu.pipeline_mode<synchronous>, transform_indices = @transform_9, window_bounds = array<i64: 1, 128>}, {pipeline_mode = #tpu.pipeline_mode<synchronous>, transform_indices = @transform_10, window_bounds = array<i64: 1, 128>}, {pipeline_mode = #tpu.pipeline_mode<synchronous>, transform_indices = @transform_11, window_bounds = array<i64: 1, 128>}, {pipeline_mode = #tpu.pipeline_mode<synchronous>, transform_indices = @transform_12, window_bounds = array<i64: 128, 256>}, {pipeline_mode = #tpu.pipeline_mode<synchronous>, transform_indices = @transform_13, window_bounds = array<i64: 1, 256>}, {pipeline_mode = #tpu.pipeline_mode<synchronous>, transform_indices = @transform_14, window_bounds = array<i64: 256, 128>}, {pipeline_mode = #tpu.pipeline_mode<synchronous>, transform_indices = @transform_15, window_bounds = array<i64: 1, 128>}, {pipeline_mode = #tpu.pipeline_mode<synchronous>, transform_indices = @transform_16, window_bounds = array<i64: 1, 128>}, {pipeline_mode = #tpu.pipeline_mode<synchronous>, transform_indices = @transform_17, window_bounds = array<i64: 1, 128>}, {pipeline_mode = #tpu.pipeline_mode<synchronous>, transform_indices = @transform_18, window_bounds = array<i64: 128, 128>}, {pipeline_mode = #tpu.pipeline_mode<synchronous>, transform_indices = @transform_19, window_bounds = array<i64: 1, 128>}, {pipeline_mode = #tpu.pipeline_mode<synchronous>, transform_indices = @transform_20, window_bounds = array<i64: 128, 3>}, {pipeline_mode = #tpu.pipeline_mode<synchronous>, transform_indices = @transform_21, window_bounds = array<i64: 1, 3>}, {pipeline_mode = #tpu.pipeline_mode<synchronous>, transform_indices = @transform_22, window_bounds = array<i64: 2, 3>}]} {
    %c0_i32 = arith.constant 0 : i32
    %0 = arith.cmpi eq, %arg0, %c0_i32 : i32
    %1 = arith.extui %0 : i1 to i32
    %c0_i32_0 = arith.constant 0 : i32
    %2 = arith.cmpi ne, %1, %c0_i32_0 : i32
    scf.if %2 {
      %c0_109 = arith.constant 0 : index
      %c0_110 = arith.constant 0 : index
      %278 = vector.load %arg1[%c0_109, %c0_110] : memref<16x64xf32, #tpu.memory_space<vmem>>, vector<16x64xf32>
      %c0_111 = arith.constant 0 : index
      %c0_112 = arith.constant 0 : index
      %279 = vector.load %arg3[%c0_111, %c0_112] : memref<1x64xf32, #tpu.memory_space<vmem>>, vector<1x64xf32>
      %c0_113 = arith.constant 0 : index
      %c0_114 = arith.constant 0 : index
      %280 = vector.load %arg4[%c0_113, %c0_114] : memref<1x64xf32, #tpu.memory_space<vmem>>, vector<1x64xf32>
      %cst_115 = arith.constant dense<0.000000e+00> : vector<16xf32>
      %281 = vector.multi_reduction <add>, %278, %cst_115 [1] : vector<16x64xf32> to vector<16xf32>
      %282 = vector.shape_cast %281 : vector<16xf32> to vector<16x1xf32>
      %cst_116 = arith.constant 6.400000e+01 : f32
      %283 = vector.broadcast %cst_116 : f32 to vector<16x1xf32>
      %284 = arith.divf %282, %283 : vector<16x1xf32>
      %285 = vector.broadcast %284 : vector<16x1xf32> to vector<16x64xf32>
      %286 = arith.subf %278, %285 : vector<16x64xf32>
      %287 = arith.mulf %286, %286 : vector<16x64xf32>
      %cst_117 = arith.constant dense<0.000000e+00> : vector<16xf32>
      %288 = vector.multi_reduction <add>, %287, %cst_117 [1] : vector<16x64xf32> to vector<16xf32>
      %289 = vector.shape_cast %288 : vector<16xf32> to vector<16x1xf32>
      %cst_118 = arith.constant 6.400000e+01 : f32
      %290 = vector.broadcast %cst_118 : f32 to vector<16x1xf32>
      %291 = arith.divf %289, %290 : vector<16x1xf32>
      %cst_119 = arith.constant 9.99999996E-13 : f32
      %292 = vector.broadcast %cst_119 : f32 to vector<16x1xf32>
      %293 = arith.addf %291, %292 : vector<16x1xf32>
      %294 = math.rsqrt %293 : vector<16x1xf32>
      %295 = vector.broadcast %294 : vector<16x1xf32> to vector<16x64xf32>
      %296 = arith.mulf %286, %295 : vector<16x64xf32>
      %297 = vector.broadcast %279 : vector<1x64xf32> to vector<16x64xf32>
      %298 = arith.mulf %296, %297 : vector<16x64xf32>
      %299 = vector.broadcast %280 : vector<1x64xf32> to vector<16x64xf32>
      %300 = arith.addf %298, %299 : vector<16x64xf32>
      %c0_120 = arith.constant 0 : index
      %c0_121 = arith.constant 0 : index
      %301 = vector.load %arg5[%c0_120, %c0_121] : memref<64x128xf32, #tpu.memory_space<vmem>>, vector<64x128xf32>
      %cst_122 = arith.constant dense<0.000000e+00> : vector<16x128xf32>
      %302 = tpu.matmul %300, %301, %cst_122 {dimension_numbers = #tpu.dot_dimension_numbers<[1], [0], [0], [1], [0, 0, 1, 1], [], []>} : vector<16x64xf32>, vector<64x128xf32>, vector<16x128xf32> -> vector<16x128xf32>
      %c0_123 = arith.constant 0 : index
      %c0_124 = arith.constant 0 : index
      %303 = vector.load %arg6[%c0_123, %c0_124] : memref<1x128xf32, #tpu.memory_space<vmem>>, vector<1x128xf32>
      %304 = vector.broadcast %303 : vector<1x128xf32> to vector<16x128xf32>
      %305 = arith.addf %302, %304 : vector<16x128xf32>
      %c0_125 = arith.constant 0 : index
      %c0_126 = arith.constant 0 : index
      %306 = vector.load %arg24[%c0_125, %c0_126] : memref<16x128xf32, #tpu.memory_space<vmem>>, vector<16x128xf32>
      tpu.vector_store %arg24[%c0_125, %c0_126], %305 {strides = array<i32>} : memref<16x128xf32, #tpu.memory_space<vmem>>, vector<16x128xf32>,
    } else {
    }
    %c0 = arith.constant 0 : index
    %c0_1 = arith.constant 0 : index
    %3 = vector.load %arg24[%c0, %c0_1] : memref<16x128xf32, #tpu.memory_space<vmem>>, vector<16x128xf32>
    %c0_2 = arith.constant 0 : index
    %c0_3 = arith.constant 0 : index
    %4 = vector.load %arg7[%c0_2, %c0_3] : memref<128x384xf32, #tpu.memory_space<vmem>>, vector<128x384xf32>
    %cst = arith.constant dense<0.000000e+00> : vector<16x384xf32>
    %5 = tpu.matmul %3, %4, %cst {dimension_numbers = #tpu.dot_dimension_numbers<[1], [0], [0], [1], [0, 0, 1, 1], [], []>} : vector<16x128xf32>, vector<128x384xf32>, vector<16x384xf32> -> vector<16x384xf32>
    %c0_4 = arith.constant 0 : index
    %c0_5 = arith.constant 0 : index
    %6 = vector.load %arg8[%c0_4, %c0_5] : memref<1x384xf32, #tpu.memory_space<vmem>>, vector<1x384xf32>
    %7 = vector.broadcast %6 : vector<1x384xf32> to vector<16x384xf32>
    %8 = arith.addf %5, %7 : vector<16x384xf32>
    %9 = vector.extract_strided_slice %8 {offsets = [0, 0], sizes = [8, 128], strides = [1, 1]} : vector<16x384xf32> to vector<8x128xf32>
    %10 = vector.extract_strided_slice %8 {offsets = [0, 128], sizes = [8, 128], strides = [1, 1]} : vector<16x384xf32> to vector<8x128xf32>
    %11 = vector.extract_strided_slice %8 {offsets = [0, 256], sizes = [8, 128], strides = [1, 1]} : vector<16x384xf32> to vector<8x128xf32>
    %c0_6 = arith.constant 0 : index
    %c0_7 = arith.constant 0 : index
    %c0_8 = arith.constant 0 : index
    %12 = vector.load %arg2[%c0_6, %c0_7, %c0_8] : memref<2x1x8xf32, #tpu.memory_space<vmem>>, vector<1x1x8xf32>
    %13 = vector.shape_cast %12 : vector<1x1x8xf32> to vector<1x8xf32>
    %14 = vector.extract_strided_slice %9 {offsets = [0, 0], sizes = [8, 32], strides = [1, 1]} : vector<8x128xf32> to vector<8x32xf32>
    %15 = vector.extract_strided_slice %10 {offsets = [0, 0], sizes = [8, 32], strides = [1, 1]} : vector<8x128xf32> to vector<8x32xf32>
    %16 = vector.extract_strided_slice %11 {offsets = [0, 0], sizes = [8, 32], strides = [1, 1]} : vector<8x128xf32> to vector<8x32xf32>
    %17 = tpu.transpose %15, [1, 0] : vector<8x32xf32> -> vector<32x8xf32>
    %cst_9 = arith.constant dense<0.000000e+00> : vector<8x8xf32>
    %18 = tpu.matmul %14, %17, %cst_9 {dimension_numbers = #tpu.dot_dimension_numbers<[1], [0], [0], [1], [0, 0, 1, 1], [], []>} : vector<8x32xf32>, vector<32x8xf32>, vector<8x8xf32> -> vector<8x8xf32>
    %cst_10 = arith.constant 0.176776692 : f32
    %19 = vector.broadcast %cst_10 : f32 to vector<8x8xf32>
    %20 = arith.mulf %18, %19 : vector<8x8xf32>
    %21 = vector.broadcast %13 : vector<1x8xf32> to vector<8x8xf32>
    %22 = arith.addf %20, %21 : vector<8x8xf32>
    %cst_11 = arith.constant dense<0xFF800000> : vector<8xf32>
    %23 = vector.multi_reduction <maximumf>, %22, %cst_11 [1] : vector<8x8xf32> to vector<8xf32>
    %24 = vector.shape_cast %23 : vector<8xf32> to vector<8x1xf32>
    %25 = vector.broadcast %24 : vector<8x1xf32> to vector<8x8xf32>
    %26 = arith.subf %22, %25 : vector<8x8xf32>
    %27 = math.exp %26 : vector<8x8xf32>
    %cst_12 = arith.constant dense<0.000000e+00> : vector<8xf32>
    %28 = vector.multi_reduction <add>, %27, %cst_12 [1] : vector<8x8xf32> to vector<8xf32>
    %29 = vector.shape_cast %28 : vector<8xf32> to vector<8x1xf32>
    %30 = tpu.reciprocal %29 {approx = true} : vector<8x1xf32> -> vector<8x1xf32>
    %31 = vector.broadcast %30 : vector<8x1xf32> to vector<8x8xf32>
    %32 = arith.mulf %27, %31 : vector<8x8xf32>
    %cst_13 = arith.constant dense<0.000000e+00> : vector<8x32xf32>
    %33 = tpu.matmul %32, %16, %cst_13 {dimension_numbers = #tpu.dot_dimension_numbers<[1], [0], [0], [1], [0, 0, 1, 1], [], []>} : vector<8x8xf32>, vector<8x32xf32>, vector<8x32xf32> -> vector<8x32xf32>
    %c0_14 = arith.constant 0 : index
    %c0_15 = arith.constant 0 : index
    %34 = vector.load %arg9[%c0_14, %c0_15] : memref<128x128xf32, #tpu.memory_space<vmem>>, vector<32x128xf32>
    %cst_16 = arith.constant dense<0.000000e+00> : vector<8x128xf32>
    %35 = tpu.matmul %33, %34, %cst_16 {dimension_numbers = #tpu.dot_dimension_numbers<[1], [0], [0], [1], [0, 0, 1, 1], [], []>} : vector<8x32xf32>, vector<32x128xf32>, vector<8x128xf32> -> vector<8x128xf32>
    %36 = vector.extract_strided_slice %9 {offsets = [0, 32], sizes = [8, 32], strides = [1, 1]} : vector<8x128xf32> to vector<8x32xf32>
    %37 = vector.extract_strided_slice %10 {offsets = [0, 32], sizes = [8, 32], strides = [1, 1]} : vector<8x128xf32> to vector<8x32xf32>
    %38 = vector.extract_strided_slice %11 {offsets = [0, 32], sizes = [8, 32], strides = [1, 1]} : vector<8x128xf32> to vector<8x32xf32>
    %39 = tpu.transpose %37, [1, 0] : vector<8x32xf32> -> vector<32x8xf32>
    %cst_17 = arith.constant dense<0.000000e+00> : vector<8x8xf32>
    %40 = tpu.matmul %36, %39, %cst_17 {dimension_numbers = #tpu.dot_dimension_numbers<[1], [0], [0], [1], [0, 0, 1, 1], [], []>} : vector<8x32xf32>, vector<32x8xf32>, vector<8x8xf32> -> vector<8x8xf32>
    %cst_18 = arith.constant 0.176776692 : f32
    %41 = vector.broadcast %cst_18 : f32 to vector<8x8xf32>
    %42 = arith.mulf %40, %41 : vector<8x8xf32>
    %43 = vector.broadcast %13 : vector<1x8xf32> to vector<8x8xf32>
    %44 = arith.addf %42, %43 : vector<8x8xf32>
    %cst_19 = arith.constant dense<0xFF800000> : vector<8xf32>
    %45 = vector.multi_reduction <maximumf>, %44, %cst_19 [1] : vector<8x8xf32> to vector<8xf32>
    %46 = vector.shape_cast %45 : vector<8xf32> to vector<8x1xf32>
    %47 = vector.broadcast %46 : vector<8x1xf32> to vector<8x8xf32>
    %48 = arith.subf %44, %47 : vector<8x8xf32>
    %49 = math.exp %48 : vector<8x8xf32>
    %cst_20 = arith.constant dense<0.000000e+00> : vector<8xf32>
    %50 = vector.multi_reduction <add>, %49, %cst_20 [1] : vector<8x8xf32> to vector<8xf32>
    %51 = vector.shape_cast %50 : vector<8xf32> to vector<8x1xf32>
    %52 = tpu.reciprocal %51 {approx = true} : vector<8x1xf32> -> vector<8x1xf32>
    %53 = vector.broadcast %52 : vector<8x1xf32> to vector<8x8xf32>
    %54 = arith.mulf %49, %53 : vector<8x8xf32>
    %cst_21 = arith.constant dense<0.000000e+00> : vector<8x32xf32>
    %55 = tpu.matmul %54, %38, %cst_21 {dimension_numbers = #tpu.dot_dimension_numbers<[1], [0], [0], [1], [0, 0, 1, 1], [], []>} : vector<8x8xf32>, vector<8x32xf32>, vector<8x32xf32> -> vector<8x32xf32>
    %c32 = arith.constant 32 : index
    %c0_22 = arith.constant 0 : index
    %56 = vector.load %arg9[%c32, %c0_22] : memref<128x128xf32, #tpu.memory_space<vmem>>, vector<32x128xf32>
    %cst_23 = arith.constant dense<0.000000e+00> : vector<8x128xf32>
    %57 = tpu.matmul %55, %56, %cst_23 {dimension_numbers = #tpu.dot_dimension_numbers<[1], [0], [0], [1], [0, 0, 1, 1], [], []>} : vector<8x32xf32>, vector<32x128xf32>, vector<8x128xf32> -> vector<8x128xf32>
    %58 = arith.addf %35, %57 : vector<8x128xf32>
    %59 = vector.extract_strided_slice %9 {offsets = [0, 64], sizes = [8, 32], strides = [1, 1]} : vector<8x128xf32> to vector<8x32xf32>
    %60 = vector.extract_strided_slice %10 {offsets = [0, 64], sizes = [8, 32], strides = [1, 1]} : vector<8x128xf32> to vector<8x32xf32>
    %61 = vector.extract_strided_slice %11 {offsets = [0, 64], sizes = [8, 32], strides = [1, 1]} : vector<8x128xf32> to vector<8x32xf32>
    %62 = tpu.transpose %60, [1, 0] : vector<8x32xf32> -> vector<32x8xf32>
    %cst_24 = arith.constant dense<0.000000e+00> : vector<8x8xf32>
    %63 = tpu.matmul %59, %62, %cst_24 {dimension_numbers = #tpu.dot_dimension_numbers<[1], [0], [0], [1], [0, 0, 1, 1], [], []>} : vector<8x32xf32>, vector<32x8xf32>, vector<8x8xf32> -> vector<8x8xf32>
    %cst_25 = arith.constant 0.176776692 : f32
    %64 = vector.broadcast %cst_25 : f32 to vector<8x8xf32>
    %65 = arith.mulf %63, %64 : vector<8x8xf32>
    %66 = vector.broadcast %13 : vector<1x8xf32> to vector<8x8xf32>
    %67 = arith.addf %65, %66 : vector<8x8xf32>
    %cst_26 = arith.constant dense<0xFF800000> : vector<8xf32>
    %68 = vector.multi_reduction <maximumf>, %67, %cst_26 [1] : vector<8x8xf32> to vector<8xf32>
    %69 = vector.shape_cast %68 : vector<8xf32> to vector<8x1xf32>
    %70 = vector.broadcast %69 : vector<8x1xf32> to vector<8x8xf32>
    %71 = arith.subf %67, %70 : vector<8x8xf32>
    %72 = math.exp %71 : vector<8x8xf32>
    %cst_27 = arith.constant dense<0.000000e+00> : vector<8xf32>
    %73 = vector.multi_reduction <add>, %72, %cst_27 [1] : vector<8x8xf32> to vector<8xf32>
    %74 = vector.shape_cast %73 : vector<8xf32> to vector<8x1xf32>
    %75 = tpu.reciprocal %74 {approx = true} : vector<8x1xf32> -> vector<8x1xf32>
    %76 = vector.broadcast %75 : vector<8x1xf32> to vector<8x8xf32>
    %77 = arith.mulf %72, %76 : vector<8x8xf32>
    %cst_28 = arith.constant dense<0.000000e+00> : vector<8x32xf32>
    %78 = tpu.matmul %77, %61, %cst_28 {dimension_numbers = #tpu.dot_dimension_numbers<[1], [0], [0], [1], [0, 0, 1, 1], [], []>} : vector<8x8xf32>, vector<8x32xf32>, vector<8x32xf32> -> vector<8x32xf32>
    %c64 = arith.constant 64 : index
    %c0_29 = arith.constant 0 : index
    %79 = vector.load %arg9[%c64, %c0_29] : memref<128x128xf32, #tpu.memory_space<vmem>>, vector<32x128xf32>
    %cst_30 = arith.constant dense<0.000000e+00> : vector<8x128xf32>
    %80 = tpu.matmul %78, %79, %cst_30 {dimension_numbers = #tpu.dot_dimension_numbers<[1], [0], [0], [1], [0, 0, 1, 1], [], []>} : vector<8x32xf32>, vector<32x128xf32>, vector<8x128xf32> -> vector<8x128xf32>
    %81 = arith.addf %58, %80 : vector<8x128xf32>
    %82 = vector.extract_strided_slice %9 {offsets = [0, 96], sizes = [8, 32], strides = [1, 1]} : vector<8x128xf32> to vector<8x32xf32>
    %83 = vector.extract_strided_slice %10 {offsets = [0, 96], sizes = [8, 32], strides = [1, 1]} : vector<8x128xf32> to vector<8x32xf32>
    %84 = vector.extract_strided_slice %11 {offsets = [0, 96], sizes = [8, 32], strides = [1, 1]} : vector<8x128xf32> to vector<8x32xf32>
    %85 = tpu.transpose %83, [1, 0] : vector<8x32xf32> -> vector<32x8xf32>
    %cst_31 = arith.constant dense<0.000000e+00> : vector<8x8xf32>
    %86 = tpu.matmul %82, %85, %cst_31 {dimension_numbers = #tpu.dot_dimension_numbers<[1], [0], [0], [1], [0, 0, 1, 1], [], []>} : vector<8x32xf32>, vector<32x8xf32>, vector<8x8xf32> -> vector<8x8xf32>
    %cst_32 = arith.constant 0.176776692 : f32
    %87 = vector.broadcast %cst_32 : f32 to vector<8x8xf32>
    %88 = arith.mulf %86, %87 : vector<8x8xf32>
    %89 = vector.broadcast %13 : vector<1x8xf32> to vector<8x8xf32>
    %90 = arith.addf %88, %89 : vector<8x8xf32>
    %cst_33 = arith.constant dense<0xFF800000> : vector<8xf32>
    %91 = vector.multi_reduction <maximumf>, %90, %cst_33 [1] : vector<8x8xf32> to vector<8xf32>
    %92 = vector.shape_cast %91 : vector<8xf32> to vector<8x1xf32>
    %93 = vector.broadcast %92 : vector<8x1xf32> to vector<8x8xf32>
    %94 = arith.subf %90, %93 : vector<8x8xf32>
    %95 = math.exp %94 : vector<8x8xf32>
    %cst_34 = arith.constant dense<0.000000e+00> : vector<8xf32>
    %96 = vector.multi_reduction <add>, %95, %cst_34 [1] : vector<8x8xf32> to vector<8xf32>
    %97 = vector.shape_cast %96 : vector<8xf32> to vector<8x1xf32>
    %98 = tpu.reciprocal %97 {approx = true} : vector<8x1xf32> -> vector<8x1xf32>
    %99 = vector.broadcast %98 : vector<8x1xf32> to vector<8x8xf32>
    %100 = arith.mulf %95, %99 : vector<8x8xf32>
    %cst_35 = arith.constant dense<0.000000e+00> : vector<8x32xf32>
    %101 = tpu.matmul %100, %84, %cst_35 {dimension_numbers = #tpu.dot_dimension_numbers<[1], [0], [0], [1], [0, 0, 1, 1], [], []>} : vector<8x8xf32>, vector<8x32xf32>, vector<8x32xf32> -> vector<8x32xf32>
    %c96 = arith.constant 96 : index
    %c0_36 = arith.constant 0 : index
    %102 = vector.load %arg9[%c96, %c0_36] : memref<128x128xf32, #tpu.memory_space<vmem>>, vector<32x128xf32>
    %cst_37 = arith.constant dense<0.000000e+00> : vector<8x128xf32>
    %103 = tpu.matmul %101, %102, %cst_37 {dimension_numbers = #tpu.dot_dimension_numbers<[1], [0], [0], [1], [0, 0, 1, 1], [], []>} : vector<8x32xf32>, vector<32x128xf32>, vector<8x128xf32> -> vector<8x128xf32>
    %104 = arith.addf %81, %103 : vector<8x128xf32>
    %105 = vector.extract_strided_slice %8 {offsets = [8, 0], sizes = [8, 128], strides = [1, 1]} : vector<16x384xf32> to vector<8x128xf32>
    %106 = vector.extract_strided_slice %8 {offsets = [8, 128], sizes = [8, 128], strides = [1, 1]} : vector<16x384xf32> to vector<8x128xf32>
    %107 = vector.extract_strided_slice %8 {offsets = [8, 256], sizes = [8, 128], strides = [1, 1]} : vector<16x384xf32> to vector<8x128xf32>
    %c1 = arith.constant 1 : index
    %c0_38 = arith.constant 0 : index
    %c0_39 = arith.constant 0 : index
    %108 = vector.load %arg2[%c1, %c0_38, %c0_39] : memref<2x1x8xf32, #tpu.memory_space<vmem>>, vector<1x1x8xf32>
    %109 = vector.shape_cast %108 : vector<1x1x8xf32> to vector<1x8xf32>
    %110 = vector.extract_strided_slice %105 {offsets = [0, 0], sizes = [8, 32], strides = [1, 1]} : vector<8x128xf32> to vector<8x32xf32>
    %111 = vector.extract_strided_slice %106 {offsets = [0, 0], sizes = [8, 32], strides = [1, 1]} : vector<8x128xf32> to vector<8x32xf32>
    %112 = vector.extract_strided_slice %107 {offsets = [0, 0], sizes = [8, 32], strides = [1, 1]} : vector<8x128xf32> to vector<8x32xf32>
    %113 = tpu.transpose %111, [1, 0] : vector<8x32xf32> -> vector<32x8xf32>
    %cst_40 = arith.constant dense<0.000000e+00> : vector<8x8xf32>
    %114 = tpu.matmul %110, %113, %cst_40 {dimension_numbers = #tpu.dot_dimension_numbers<[1], [0], [0], [1], [0, 0, 1, 1], [], []>} : vector<8x32xf32>, vector<32x8xf32>, vector<8x8xf32> -> vector<8x8xf32>
    %cst_41 = arith.constant 0.176776692 : f32
    %115 = vector.broadcast %cst_41 : f32 to vector<8x8xf32>
    %116 = arith.mulf %114, %115 : vector<8x8xf32>
    %117 = vector.broadcast %109 : vector<1x8xf32> to vector<8x8xf32>
    %118 = arith.addf %116, %117 : vector<8x8xf32>
    %cst_42 = arith.constant dense<0xFF800000> : vector<8xf32>
    %119 = vector.multi_reduction <maximumf>, %118, %cst_42 [1] : vector<8x8xf32> to vector<8xf32>
    %120 = vector.shape_cast %119 : vector<8xf32> to vector<8x1xf32>
    %121 = vector.broadcast %120 : vector<8x1xf32> to vector<8x8xf32>
    %122 = arith.subf %118, %121 : vector<8x8xf32>
    %123 = math.exp %122 : vector<8x8xf32>
    %cst_43 = arith.constant dense<0.000000e+00> : vector<8xf32>
    %124 = vector.multi_reduction <add>, %123, %cst_43 [1] : vector<8x8xf32> to vector<8xf32>
    %125 = vector.shape_cast %124 : vector<8xf32> to vector<8x1xf32>
    %126 = tpu.reciprocal %125 {approx = true} : vector<8x1xf32> -> vector<8x1xf32>
    %127 = vector.broadcast %126 : vector<8x1xf32> to vector<8x8xf32>
    %128 = arith.mulf %123, %127 : vector<8x8xf32>
    %cst_44 = arith.constant dense<0.000000e+00> : vector<8x32xf32>
    %129 = tpu.matmul %128, %112, %cst_44 {dimension_numbers = #tpu.dot_dimension_numbers<[1], [0], [0], [1], [0, 0, 1, 1], [], []>} : vector<8x8xf32>, vector<8x32xf32>, vector<8x32xf32> -> vector<8x32xf32>
    %c0_45 = arith.constant 0 : index
    %c0_46 = arith.constant 0 : index
    %130 = vector.load %arg9[%c0_45, %c0_46] : memref<128x128xf32, #tpu.memory_space<vmem>>, vector<32x128xf32>
    %cst_47 = arith.constant dense<0.000000e+00> : vector<8x128xf32>
    %131 = tpu.matmul %129, %130, %cst_47 {dimension_numbers = #tpu.dot_dimension_numbers<[1], [0], [0], [1], [0, 0, 1, 1], [], []>} : vector<8x32xf32>, vector<32x128xf32>, vector<8x128xf32> -> vector<8x128xf32>
    %132 = vector.extract_strided_slice %105 {offsets = [0, 32], sizes = [8, 32], strides = [1, 1]} : vector<8x128xf32> to vector<8x32xf32>
    %133 = vector.extract_strided_slice %106 {offsets = [0, 32], sizes = [8, 32], strides = [1, 1]} : vector<8x128xf32> to vector<8x32xf32>
    %134 = vector.extract_strided_slice %107 {offsets = [0, 32], sizes = [8, 32], strides = [1, 1]} : vector<8x128xf32> to vector<8x32xf32>
    %135 = tpu.transpose %133, [1, 0] : vector<8x32xf32> -> vector<32x8xf32>
    %cst_48 = arith.constant dense<0.000000e+00> : vector<8x8xf32>
    %136 = tpu.matmul %132, %135, %cst_48 {dimension_numbers = #tpu.dot_dimension_numbers<[1], [0], [0], [1], [0, 0, 1, 1], [], []>} : vector<8x32xf32>, vector<32x8xf32>, vector<8x8xf32> -> vector<8x8xf32>
    %cst_49 = arith.constant 0.176776692 : f32
    %137 = vector.broadcast %cst_49 : f32 to vector<8x8xf32>
    %138 = arith.mulf %136, %137 : vector<8x8xf32>
    %139 = vector.broadcast %109 : vector<1x8xf32> to vector<8x8xf32>
    %140 = arith.addf %138, %139 : vector<8x8xf32>
    %cst_50 = arith.constant dense<0xFF800000> : vector<8xf32>
    %141 = vector.multi_reduction <maximumf>, %140, %cst_50 [1] : vector<8x8xf32> to vector<8xf32>
    %142 = vector.shape_cast %141 : vector<8xf32> to vector<8x1xf32>
    %143 = vector.broadcast %142 : vector<8x1xf32> to vector<8x8xf32>
    %144 = arith.subf %140, %143 : vector<8x8xf32>
    %145 = math.exp %144 : vector<8x8xf32>
    %cst_51 = arith.constant dense<0.000000e+00> : vector<8xf32>
    %146 = vector.multi_reduction <add>, %145, %cst_51 [1] : vector<8x8xf32> to vector<8xf32>
    %147 = vector.shape_cast %146 : vector<8xf32> to vector<8x1xf32>
    %148 = tpu.reciprocal %147 {approx = true} : vector<8x1xf32> -> vector<8x1xf32>
    %149 = vector.broadcast %148 : vector<8x1xf32> to vector<8x8xf32>
    %150 = arith.mulf %145, %149 : vector<8x8xf32>
    %cst_52 = arith.constant dense<0.000000e+00> : vector<8x32xf32>
    %151 = tpu.matmul %150, %134, %cst_52 {dimension_numbers = #tpu.dot_dimension_numbers<[1], [0], [0], [1], [0, 0, 1, 1], [], []>} : vector<8x8xf32>, vector<8x32xf32>, vector<8x32xf32> -> vector<8x32xf32>
    %c32_53 = arith.constant 32 : index
    %c0_54 = arith.constant 0 : index
    %152 = vector.load %arg9[%c32_53, %c0_54] : memref<128x128xf32, #tpu.memory_space<vmem>>, vector<32x128xf32>
    %cst_55 = arith.constant dense<0.000000e+00> : vector<8x128xf32>
    %153 = tpu.matmul %151, %152, %cst_55 {dimension_numbers = #tpu.dot_dimension_numbers<[1], [0], [0], [1], [0, 0, 1, 1], [], []>} : vector<8x32xf32>, vector<32x128xf32>, vector<8x128xf32> -> vector<8x128xf32>
    %154 = arith.addf %131, %153 : vector<8x128xf32>
    %155 = vector.extract_strided_slice %105 {offsets = [0, 64], sizes = [8, 32], strides = [1, 1]} : vector<8x128xf32> to vector<8x32xf32>
    %156 = vector.extract_strided_slice %106 {offsets = [0, 64], sizes = [8, 32], strides = [1, 1]} : vector<8x128xf32> to vector<8x32xf32>
    %157 = vector.extract_strided_slice %107 {offsets = [0, 64], sizes = [8, 32], strides = [1, 1]} : vector<8x128xf32> to vector<8x32xf32>
    %158 = tpu.transpose %156, [1, 0] : vector<8x32xf32> -> vector<32x8xf32>
    %cst_56 = arith.constant dense<0.000000e+00> : vector<8x8xf32>
    %159 = tpu.matmul %155, %158, %cst_56 {dimension_numbers = #tpu.dot_dimension_numbers<[1], [0], [0], [1], [0, 0, 1, 1], [], []>} : vector<8x32xf32>, vector<32x8xf32>, vector<8x8xf32> -> vector<8x8xf32>
    %cst_57 = arith.constant 0.176776692 : f32
    %160 = vector.broadcast %cst_57 : f32 to vector<8x8xf32>
    %161 = arith.mulf %159, %160 : vector<8x8xf32>
    %162 = vector.broadcast %109 : vector<1x8xf32> to vector<8x8xf32>
    %163 = arith.addf %161, %162 : vector<8x8xf32>
    %cst_58 = arith.constant dense<0xFF800000> : vector<8xf32>
    %164 = vector.multi_reduction <maximumf>, %163, %cst_58 [1] : vector<8x8xf32> to vector<8xf32>
    %165 = vector.shape_cast %164 : vector<8xf32> to vector<8x1xf32>
    %166 = vector.broadcast %165 : vector<8x1xf32> to vector<8x8xf32>
    %167 = arith.subf %163, %166 : vector<8x8xf32>
    %168 = math.exp %167 : vector<8x8xf32>
    %cst_59 = arith.constant dense<0.000000e+00> : vector<8xf32>
    %169 = vector.multi_reduction <add>, %168, %cst_59 [1] : vector<8x8xf32> to vector<8xf32>
    %170 = vector.shape_cast %169 : vector<8xf32> to vector<8x1xf32>
    %171 = tpu.reciprocal %170 {approx = true} : vector<8x1xf32> -> vector<8x1xf32>
    %172 = vector.broadcast %171 : vector<8x1xf32> to vector<8x8xf32>
    %173 = arith.mulf %168, %172 : vector<8x8xf32>
    %cst_60 = arith.constant dense<0.000000e+00> : vector<8x32xf32>
    %174 = tpu.matmul %173, %157, %cst_60 {dimension_numbers = #tpu.dot_dimension_numbers<[1], [0], [0], [1], [0, 0, 1, 1], [], []>} : vector<8x8xf32>, vector<8x32xf32>, vector<8x32xf32> -> vector<8x32xf32>
    %c64_61 = arith.constant 64 : index
    %c0_62 = arith.constant 0 : index
    %175 = vector.load %arg9[%c64_61, %c0_62] : memref<128x128xf32, #tpu.memory_space<vmem>>, vector<32x128xf32>
    %cst_63 = arith.constant dense<0.000000e+00> : vector<8x128xf32>
    %176 = tpu.matmul %174, %175, %cst_63 {dimension_numbers = #tpu.dot_dimension_numbers<[1], [0], [0], [1], [0, 0, 1, 1], [], []>} : vector<8x32xf32>, vector<32x128xf32>, vector<8x128xf32> -> vector<8x128xf32>
    %177 = arith.addf %154, %176 : vector<8x128xf32>
    %178 = vector.extract_strided_slice %105 {offsets = [0, 96], sizes = [8, 32], strides = [1, 1]} : vector<8x128xf32> to vector<8x32xf32>
    %179 = vector.extract_strided_slice %106 {offsets = [0, 96], sizes = [8, 32], strides = [1, 1]} : vector<8x128xf32> to vector<8x32xf32>
    %180 = vector.extract_strided_slice %107 {offsets = [0, 96], sizes = [8, 32], strides = [1, 1]} : vector<8x128xf32> to vector<8x32xf32>
    %181 = tpu.transpose %179, [1, 0] : vector<8x32xf32> -> vector<32x8xf32>
    %cst_64 = arith.constant dense<0.000000e+00> : vector<8x8xf32>
    %182 = tpu.matmul %178, %181, %cst_64 {dimension_numbers = #tpu.dot_dimension_numbers<[1], [0], [0], [1], [0, 0, 1, 1], [], []>} : vector<8x32xf32>, vector<32x8xf32>, vector<8x8xf32> -> vector<8x8xf32>
    %cst_65 = arith.constant 0.176776692 : f32
    %183 = vector.broadcast %cst_65 : f32 to vector<8x8xf32>
    %184 = arith.mulf %182, %183 : vector<8x8xf32>
    %185 = vector.broadcast %109 : vector<1x8xf32> to vector<8x8xf32>
    %186 = arith.addf %184, %185 : vector<8x8xf32>
    %cst_66 = arith.constant dense<0xFF800000> : vector<8xf32>
    %187 = vector.multi_reduction <maximumf>, %186, %cst_66 [1] : vector<8x8xf32> to vector<8xf32>
    %188 = vector.shape_cast %187 : vector<8xf32> to vector<8x1xf32>
    %189 = vector.broadcast %188 : vector<8x1xf32> to vector<8x8xf32>
    %190 = arith.subf %186, %189 : vector<8x8xf32>
    %191 = math.exp %190 : vector<8x8xf32>
    %cst_67 = arith.constant dense<0.000000e+00> : vector<8xf32>
    %192 = vector.multi_reduction <add>, %191, %cst_67 [1] : vector<8x8xf32> to vector<8xf32>
    %193 = vector.shape_cast %192 : vector<8xf32> to vector<8x1xf32>
    %194 = tpu.reciprocal %193 {approx = true} : vector<8x1xf32> -> vector<8x1xf32>
    %195 = vector.broadcast %194 : vector<8x1xf32> to vector<8x8xf32>
    %196 = arith.mulf %191, %195 : vector<8x8xf32>
    %cst_68 = arith.constant dense<0.000000e+00> : vector<8x32xf32>
    %197 = tpu.matmul %196, %180, %cst_68 {dimension_numbers = #tpu.dot_dimension_numbers<[1], [0], [0], [1], [0, 0, 1, 1], [], []>} : vector<8x8xf32>, vector<8x32xf32>, vector<8x32xf32> -> vector<8x32xf32>
    %c96_69 = arith.constant 96 : index
    %c0_70 = arith.constant 0 : index
    %198 = vector.load %arg9[%c96_69, %c0_70] : memref<128x128xf32, #tpu.memory_space<vmem>>, vector<32x128xf32>
    %cst_71 = arith.constant dense<0.000000e+00> : vector<8x128xf32>
    %199 = tpu.matmul %197, %198, %cst_71 {dimension_numbers = #tpu.dot_dimension_numbers<[1], [0], [0], [1], [0, 0, 1, 1], [], []>} : vector<8x32xf32>, vector<32x128xf32>, vector<8x128xf32> -> vector<8x128xf32>
    %200 = arith.addf %177, %199 : vector<8x128xf32>
    %201 = tpu.concatenate %104, %200 in 0 : vector<8x128xf32>, vector<8x128xf32> -> vector<16x128xf32>
    %c0_72 = arith.constant 0 : index
    %c0_73 = arith.constant 0 : index
    %202 = vector.load %arg10[%c0_72, %c0_73] : memref<1x128xf32, #tpu.memory_space<vmem>>, vector<1x128xf32>
    %203 = vector.broadcast %202 : vector<1x128xf32> to vector<16x128xf32>
    %204 = arith.addf %201, %203 : vector<16x128xf32>
    %205 = arith.addf %204, %3 : vector<16x128xf32>
    %c0_74 = arith.constant 0 : index
    %c0_75 = arith.constant 0 : index
    %206 = vector.load %arg11[%c0_74, %c0_75] : memref<1x128xf32, #tpu.memory_space<vmem>>, vector<1x128xf32>
    %c0_76 = arith.constant 0 : index
    %c0_77 = arith.constant 0 : index
    %207 = vector.load %arg12[%c0_76, %c0_77] : memref<1x128xf32, #tpu.memory_space<vmem>>, vector<1x128xf32>
    %cst_78 = arith.constant dense<0.000000e+00> : vector<16xf32>
    %208 = vector.multi_reduction <add>, %205, %cst_78 [1] : vector<16x128xf32> to vector<16xf32>
    %209 = vector.shape_cast %208 : vector<16xf32> to vector<16x1xf32>
    %cst_79 = arith.constant 1.280000e+02 : f32
    %210 = vector.broadcast %cst_79 : f32 to vector<16x1xf32>
    %211 = arith.divf %209, %210 : vector<16x1xf32>
    %212 = vector.broadcast %211 : vector<16x1xf32> to vector<16x128xf32>
    %213 = arith.subf %205, %212 : vector<16x128xf32>
    %214 = arith.mulf %213, %213 : vector<16x128xf32>
    %cst_80 = arith.constant dense<0.000000e+00> : vector<16xf32>
    %215 = vector.multi_reduction <add>, %214, %cst_80 [1] : vector<16x128xf32> to vector<16xf32>
    %216 = vector.shape_cast %215 : vector<16xf32> to vector<16x1xf32>
    %cst_81 = arith.constant 1.280000e+02 : f32
    %217 = vector.broadcast %cst_81 : f32 to vector<16x1xf32>
    %218 = arith.divf %216, %217 : vector<16x1xf32>
    %cst_82 = arith.constant 9.99999996E-13 : f32
    %219 = vector.broadcast %cst_82 : f32 to vector<16x1xf32>
    %220 = arith.addf %218, %219 : vector<16x1xf32>
    %221 = math.rsqrt %220 : vector<16x1xf32>
    %222 = vector.broadcast %221 : vector<16x1xf32> to vector<16x128xf32>
    %223 = arith.mulf %213, %222 : vector<16x128xf32>
    %224 = vector.broadcast %206 : vector<1x128xf32> to vector<16x128xf32>
    %225 = arith.mulf %223, %224 : vector<16x128xf32>
    %226 = vector.broadcast %207 : vector<1x128xf32> to vector<16x128xf32>
    %227 = arith.addf %225, %226 : vector<16x128xf32>
    %c0_83 = arith.constant 0 : index
    %c0_84 = arith.constant 0 : index
    %228 = vector.load %arg13[%c0_83, %c0_84] : memref<128x256xf32, #tpu.memory_space<vmem>>, vector<128x256xf32>
    %cst_85 = arith.constant dense<0.000000e+00> : vector<16x256xf32>
    %229 = tpu.matmul %227, %228, %cst_85 {dimension_numbers = #tpu.dot_dimension_numbers<[1], [0], [0], [1], [0, 0, 1, 1], [], []>} : vector<16x128xf32>, vector<128x256xf32>, vector<16x256xf32> -> vector<16x256xf32>
    %c0_86 = arith.constant 0 : index
    %c0_87 = arith.constant 0 : index
    %230 = vector.load %arg14[%c0_86, %c0_87] : memref<1x256xf32, #tpu.memory_space<vmem>>, vector<1x256xf32>
    %231 = vector.broadcast %230 : vector<1x256xf32> to vector<16x256xf32>
    %232 = arith.addf %229, %231 : vector<16x256xf32>
    %cst_88 = arith.constant 5.000000e-01 : f32
    %233 = vector.broadcast %cst_88 : f32 to vector<16x256xf32>
    %234 = arith.mulf %233, %232 : vector<16x256xf32>
    %cst_89 = arith.constant 4.471500e-02 : f32
    %235 = vector.broadcast %cst_89 : f32 to vector<16x256xf32>
    %236 = arith.mulf %235, %232 : vector<16x256xf32>
    %237 = arith.mulf %236, %232 : vector<16x256xf32>
    %238 = arith.mulf %237, %232 : vector<16x256xf32>
    %239 = arith.addf %232, %238 : vector<16x256xf32>
    %cst_90 = arith.constant 0.797884583 : f32
    %240 = vector.broadcast %cst_90 : f32 to vector<16x256xf32>
    %241 = arith.mulf %240, %239 : vector<16x256xf32>
    %242 = math.tanh %241 : vector<16x256xf32>
    %cst_91 = arith.constant 1.000000e+00 : f32
    %243 = vector.broadcast %cst_91 : f32 to vector<16x256xf32>
    %244 = arith.addf %243, %242 : vector<16x256xf32>
    %245 = arith.mulf %234, %244 : vector<16x256xf32>
    %c0_92 = arith.constant 0 : index
    %c0_93 = arith.constant 0 : index
    %246 = vector.load %arg15[%c0_92, %c0_93] : memref<256x128xf32, #tpu.memory_space<vmem>>, vector<256x128xf32>
    %cst_94 = arith.constant dense<0.000000e+00> : vector<16x128xf32>
    %247 = tpu.matmul %245, %246, %cst_94 {dimension_numbers = #tpu.dot_dimension_numbers<[1], [0], [0], [1], [0, 0, 1, 1], [], []>} : vector<16x256xf32>, vector<256x128xf32>, vector<16x128xf32> -> vector<16x128xf32>
    %c0_95 = arith.constant 0 : index
    %c0_96 = arith.constant 0 : index
    %248 = vector.load %arg16[%c0_95, %c0_96] : memref<1x128xf32, #tpu.memory_space<vmem>>, vector<1x128xf32>
    %249 = vector.broadcast %248 : vector<1x128xf32> to vector<16x128xf32>
    %250 = arith.addf %247, %249 : vector<16x128xf32>
    %251 = arith.addf %250, %227 : vector<16x128xf32>
    %c0_97 = arith.constant 0 : index
    %c0_98 = arith.constant 0 : index
    %252 = vector.load %arg17[%c0_97, %c0_98] : memref<1x128xf32, #tpu.memory_space<vmem>>, vector<1x128xf32>
    %c0_99 = arith.constant 0 : index
    %c0_100 = arith.constant 0 : index
    %253 = vector.load %arg18[%c0_99, %c0_100] : memref<1x128xf32, #tpu.memory_space<vmem>>, vector<1x128xf32>
    %cst_101 = arith.constant dense<0.000000e+00> : vector<16xf32>
    %254 = vector.multi_reduction <add>, %251, %cst_101 [1] : vector<16x128xf32> to vector<16xf32>
    %255 = vector.shape_cast %254 : vector<16xf32> to vector<16x1xf32>
    %cst_102 = arith.constant 1.280000e+02 : f32
    %256 = vector.broadcast %cst_102 : f32 to vector<16x1xf32>
    %257 = arith.divf %255, %256 : vector<16x1xf32>
    %258 = vector.broadcast %257 : vector<16x1xf32> to vector<16x128xf32>
    %259 = arith.subf %251, %258 : vector<16x128xf32>
    %260 = arith.mulf %259, %259 : vector<16x128xf32>
    %cst_103 = arith.constant dense<0.000000e+00> : vector<16xf32>
    %261 = vector.multi_reduction <add>, %260, %cst_103 [1] : vector<16x128xf32> to vector<16xf32>
    %262 = vector.shape_cast %261 : vector<16xf32> to vector<16x1xf32>
    %cst_104 = arith.constant 1.280000e+02 : f32
    %263 = vector.broadcast %cst_104 : f32 to vector<16x1xf32>
    %264 = arith.divf %262, %263 : vector<16x1xf32>
    %cst_105 = arith.constant 9.99999996E-13 : f32
    %265 = vector.broadcast %cst_105 : f32 to vector<16x1xf32>
    %266 = arith.addf %264, %265 : vector<16x1xf32>
    %267 = math.rsqrt %266 : vector<16x1xf32>
    %268 = vector.broadcast %267 : vector<16x1xf32> to vector<16x128xf32>
    %269 = arith.mulf %259, %268 : vector<16x128xf32>
    %270 = vector.broadcast %252 : vector<1x128xf32> to vector<16x128xf32>
    %271 = arith.mulf %269, %270 : vector<16x128xf32>
    %272 = vector.broadcast %253 : vector<1x128xf32> to vector<16x128xf32>
    %273 = arith.addf %271, %272 : vector<16x128xf32>
    %c0_106 = arith.constant 0 : index
    %c0_107 = arith.constant 0 : index
    %274 = vector.load %arg24[%c0_106, %c0_107] : memref<16x128xf32, #tpu.memory_space<vmem>>, vector<16x128xf32>
    tpu.vector_store %arg24[%c0_106, %c0_107], %273 {strides = array<i32>} : memref<16x128xf32, #tpu.memory_space<vmem>>, vector<16x128xf32>,
    %c1_i32 = arith.constant 1 : i32
    %275 = arith.cmpi eq, %arg0, %c1_i32 : i32
    %276 = arith.extui %275 : i1 to i32
    %c0_i32_108 = arith.constant 0 : i32
    %277 = arith.cmpi ne, %276, %c0_i32_108 : i32
    scf.if %277 {
      %278 = vector.extract_strided_slice %273 {offsets = [0, 0], sizes = [1, 128], strides = [1, 1]} : vector<16x128xf32> to vector<1x128xf32>
      %c0_109 = arith.constant 0 : index
      %c0_110 = arith.constant 0 : index
      %279 = vector.load %arg19[%c0_109, %c0_110] : memref<128x128xf32, #tpu.memory_space<vmem>>, vector<128x128xf32>
      %cst_111 = arith.constant dense<0.000000e+00> : vector<1x128xf32>
      %280 = tpu.matmul %278, %279, %cst_111 {dimension_numbers = #tpu.dot_dimension_numbers<[1], [0], [0], [1], [0, 0, 1, 1], [], []>} : vector<1x128xf32>, vector<128x128xf32>, vector<1x128xf32> -> vector<1x128xf32>
      %c0_112 = arith.constant 0 : index
      %c0_113 = arith.constant 0 : index
      %281 = vector.load %arg20[%c0_112, %c0_113] : memref<1x128xf32, #tpu.memory_space<vmem>>, vector<1x128xf32>
      %282 = arith.addf %280, %281 : vector<1x128xf32>
      %283 = math.tanh %282 : vector<1x128xf32>
      %c0_114 = arith.constant 0 : index
      %c0_115 = arith.constant 0 : index
      %284 = vector.load %arg21[%c0_114, %c0_115] : memref<128x3xf32, #tpu.memory_space<vmem>>, vector<128x3xf32>
      %cst_116 = arith.constant dense<0.000000e+00> : vector<1x3xf32>
      %285 = tpu.matmul %283, %284, %cst_116 {dimension_numbers = #tpu.dot_dimension_numbers<[1], [0], [0], [1], [0, 0, 1, 1], [], []>} : vector<1x128xf32>, vector<128x3xf32>, vector<1x3xf32> -> vector<1x3xf32>
      %c0_117 = arith.constant 0 : index
      %c0_118 = arith.constant 0 : index
      %286 = vector.load %arg22[%c0_117, %c0_118] : memref<1x3xf32, #tpu.memory_space<vmem>>, vector<1x3xf32>
      %287 = arith.addf %285, %286 : vector<1x3xf32>
      %cst_119 = arith.constant dense<0xFF800000> : vector<1xf32>
      %288 = vector.multi_reduction <maximumf>, %287, %cst_119 [1] : vector<1x3xf32> to vector<1xf32>
      %289 = vector.shape_cast %288 : vector<1xf32> to vector<1x1xf32>
      %290 = vector.broadcast %289 : vector<1x1xf32> to vector<1x3xf32>
      %291 = arith.subf %287, %290 : vector<1x3xf32>
      %292 = math.exp %291 : vector<1x3xf32>
      %cst_120 = arith.constant dense<0.000000e+00> : vector<1xf32>
      %293 = vector.multi_reduction <add>, %292, %cst_120 [1] : vector<1x3xf32> to vector<1xf32>
      %294 = vector.shape_cast %293 : vector<1xf32> to vector<1x1xf32>
      %295 = math.log %294 : vector<1x1xf32>
      %296 = vector.broadcast %295 : vector<1x1xf32> to vector<1x3xf32>
      %297 = arith.subf %291, %296 : vector<1x3xf32>
      %c0_121 = arith.constant 0 : index
      %c0_122 = arith.constant 0 : index
      %298 = vector.load %arg23[%c0_121, %c0_122] : memref<2x3xf32, #tpu.memory_space<vmem>>, vector<1x3xf32>
      tpu.vector_store %arg23[%c0_121, %c0_122], %297 {strides = array<i32>} : memref<2x3xf32, #tpu.memory_space<vmem>>, vector<1x3xf32>,
      %299 = vector.extract_strided_slice %273 {offsets = [8, 0], sizes = [1, 128], strides = [1, 1]} : vector<16x128xf32> to vector<1x128xf32>
      %c0_123 = arith.constant 0 : index
      %c0_124 = arith.constant 0 : index
      %300 = vector.load %arg19[%c0_123, %c0_124] : memref<128x128xf32, #tpu.memory_space<vmem>>, vector<128x128xf32>
      %cst_125 = arith.constant dense<0.000000e+00> : vector<1x128xf32>
      %301 = tpu.matmul %299, %300, %cst_125 {dimension_numbers = #tpu.dot_dimension_numbers<[1], [0], [0], [1], [0, 0, 1, 1], [], []>} : vector<1x128xf32>, vector<128x128xf32>, vector<1x128xf32> -> vector<1x128xf32>
      %c0_126 = arith.constant 0 : index
      %c0_127 = arith.constant 0 : index
      %302 = vector.load %arg20[%c0_126, %c0_127] : memref<1x128xf32, #tpu.memory_space<vmem>>, vector<1x128xf32>
      %303 = arith.addf %301, %302 : vector<1x128xf32>
      %304 = math.tanh %303 : vector<1x128xf32>
      %c0_128 = arith.constant 0 : index
      %c0_129 = arith.constant 0 : index
      %305 = vector.load %arg21[%c0_128, %c0_129] : memref<128x3xf32, #tpu.memory_space<vmem>>, vector<128x3xf32>
      %cst_130 = arith.constant dense<0.000000e+00> : vector<1x3xf32>
      %306 = tpu.matmul %304, %305, %cst_130 {dimension_numbers = #tpu.dot_dimension_numbers<[1], [0], [0], [1], [0, 0, 1, 1], [], []>} : vector<1x128xf32>, vector<128x3xf32>, vector<1x3xf32> -> vector<1x3xf32>
      %c0_131 = arith.constant 0 : index
      %c0_132 = arith.constant 0 : index
      %307 = vector.load %arg22[%c0_131, %c0_132] : memref<1x3xf32, #tpu.memory_space<vmem>>, vector<1x3xf32>
      %308 = arith.addf %306, %307 : vector<1x3xf32>
      %cst_133 = arith.constant dense<0xFF800000> : vector<1xf32>
      %309 = vector.multi_reduction <maximumf>, %308, %cst_133 [1] : vector<1x3xf32> to vector<1xf32>
      %310 = vector.shape_cast %309 : vector<1xf32> to vector<1x1xf32>
      %311 = vector.broadcast %310 : vector<1x1xf32> to vector<1x3xf32>
      %312 = arith.subf %308, %311 : vector<1x3xf32>
      %313 = math.exp %312 : vector<1x3xf32>
      %cst_134 = arith.constant dense<0.000000e+00> : vector<1xf32>
      %314 = vector.multi_reduction <add>, %313, %cst_134 [1] : vector<1x3xf32> to vector<1xf32>
      %315 = vector.shape_cast %314 : vector<1xf32> to vector<1x1xf32>
      %316 = math.log %315 : vector<1x1xf32>
      %317 = vector.broadcast %316 : vector<1x1xf32> to vector<1x3xf32>
      %318 = arith.subf %312, %317 : vector<1x3xf32>
      %c1_135 = arith.constant 1 : index
      %c0_136 = arith.constant 0 : index
      %319 = vector.load %arg23[%c1_135, %c0_136] : memref<2x3xf32, #tpu.memory_space<vmem>>, vector<1x3xf32>
      tpu.vector_store %arg23[%c1_135, %c0_136], %318 {strides = array<i32>} : memref<2x3xf32, #tpu.memory_space<vmem>>, vector<1x3xf32>,
    } else {
    }
    return
  }
  func.func @transform_0(%arg0: i32) -> (i32, i32) {
    %c0_i32 = arith.constant 0 : i32
    %c0_i32_0 = arith.constant 0 : i32
    %c0_i32_1 = arith.constant 0 : i32
    return %c0_i32, %c0_i32_0 : i32, i32
  }
  func.func @transform_1(%arg0: i32) -> (i32, i32, i32) {
    %c0_i32 = arith.constant 0 : i32
    %c0_i32_0 = arith.constant 0 : i32
    %c0_i32_1 = arith.constant 0 : i32
    %c0_i32_2 = arith.constant 0 : i32
    return %c0_i32, %c0_i32_0, %c0_i32_1 : i32, i32, i32
  }
  func.func @transform_2(%arg0: i32) -> (i32, i32) {
    %c0_i32 = arith.constant 0 : i32
    %c0_i32_0 = arith.constant 0 : i32
    %c0_i32_1 = arith.constant 0 : i32
    return %c0_i32, %c0_i32_0 : i32, i32
  }
  func.func @transform_3(%arg0: i32) -> (i32, i32) {
    %c0_i32 = arith.constant 0 : i32
    %c0_i32_0 = arith.constant 0 : i32
    %c0_i32_1 = arith.constant 0 : i32
    return %c0_i32, %c0_i32_0 : i32, i32
  }
  func.func @transform_4(%arg0: i32) -> (i32, i32) {
    %c0_i32 = arith.constant 0 : i32
    %c0_i32_0 = arith.constant 0 : i32
    %c0_i32_1 = arith.constant 0 : i32
    return %c0_i32, %c0_i32_0 : i32, i32
  }
  func.func @transform_5(%arg0: i32) -> (i32, i32) {
    %c0_i32 = arith.constant 0 : i32
    %c0_i32_0 = arith.constant 0 : i32
    %c0_i32_1 = arith.constant 0 : i32
    return %c0_i32, %c0_i32_0 : i32, i32
  }
  func.func @transform_6(%arg0: i32) -> (i32, i32) {
    %c0_i32 = arith.constant 0 : i32
    %c0_i32_0 = arith.constant 0 : i32
    %c0_i32_1 = arith.constant 0 : i32
    return %c0_i32, %c0_i32_0 : i32, i32
  }
  func.func @transform_7(%arg0: i32) -> (i32, i32) {
    %c0_i32 = arith.constant 0 : i32
    %c0_i32_0 = arith.constant 0 : i32
    %c0_i32_1 = arith.constant 0 : i32
    return %c0_i32, %c0_i32_0 : i32, i32
  }
  func.func @transform_8(%arg0: i32) -> (i32, i32) {
    %c0_i32 = arith.constant 0 : i32
    %c0_i32_0 = arith.constant 0 : i32
    %c0_i32_1 = arith.constant 0 : i32
    return %c0_i32, %c0_i32_0 : i32, i32
  }
  func.func @transform_9(%arg0: i32) -> (i32, i32) {
    %c0_i32 = arith.constant 0 : i32
    %c0_i32_0 = arith.constant 0 : i32
    %c0_i32_1 = arith.constant 0 : i32
    return %c0_i32, %c0_i32_0 : i32, i32
  }
  func.func @transform_10(%arg0: i32) -> (i32, i32) {
    %c0_i32 = arith.constant 0 : i32
    %c0_i32_0 = arith.constant 0 : i32
    %c0_i32_1 = arith.constant 0 : i32
    return %c0_i32, %c0_i32_0 : i32, i32
  }
  func.func @transform_11(%arg0: i32) -> (i32, i32) {
    %c0_i32 = arith.constant 0 : i32
    %c0_i32_0 = arith.constant 0 : i32
    %c0_i32_1 = arith.constant 0 : i32
    return %c0_i32, %c0_i32_0 : i32, i32
  }
  func.func @transform_12(%arg0: i32) -> (i32, i32) {
    %c0_i32 = arith.constant 0 : i32
    %c0_i32_0 = arith.constant 0 : i32
    %c0_i32_1 = arith.constant 0 : i32
    return %c0_i32, %c0_i32_0 : i32, i32
  }
  func.func @transform_13(%arg0: i32) -> (i32, i32) {
    %c0_i32 = arith.constant 0 : i32
    %c0_i32_0 = arith.constant 0 : i32
    %c0_i32_1 = arith.constant 0 : i32
    return %c0_i32, %c0_i32_0 : i32, i32
  }
  func.func @transform_14(%arg0: i32) -> (i32, i32) {
    %c0_i32 = arith.constant 0 : i32
    %c0_i32_0 = arith.constant 0 : i32
    %c0_i32_1 = arith.constant 0 : i32
    return %c0_i32, %c0_i32_0 : i32, i32
  }
  func.func @transform_15(%arg0: i32) -> (i32, i32) {
    %c0_i32 = arith.constant 0 : i32
    %c0_i32_0 = arith.constant 0 : i32
    %c0_i32_1 = arith.constant 0 : i32
    return %c0_i32, %c0_i32_0 : i32, i32
  }
  func.func @transform_16(%arg0: i32) -> (i32, i32) {
    %c0_i32 = arith.constant 0 : i32
    %c0_i32_0 = arith.constant 0 : i32
    %c0_i32_1 = arith.constant 0 : i32
    return %c0_i32, %c0_i32_0 : i32, i32
  }
  func.func @transform_17(%arg0: i32) -> (i32, i32) {
    %c0_i32 = arith.constant 0 : i32
    %c0_i32_0 = arith.constant 0 : i32
    %c0_i32_1 = arith.constant 0 : i32
    return %c0_i32, %c0_i32_0 : i32, i32
  }
  func.func @transform_18(%arg0: i32) -> (i32, i32) {
    %c0_i32 = arith.constant 0 : i32
    %c0_i32_0 = arith.constant 0 : i32
    %c0_i32_1 = arith.constant 0 : i32
    return %c0_i32, %c0_i32_0 : i32, i32
  }
  func.func @transform_19(%arg0: i32) -> (i32, i32) {
    %c0_i32 = arith.constant 0 : i32
    %c0_i32_0 = arith.constant 0 : i32
    %c0_i32_1 = arith.constant 0 : i32
    return %c0_i32, %c0_i32_0 : i32, i32
  }
  func.func @transform_20(%arg0: i32) -> (i32, i32) {
    %c0_i32 = arith.constant 0 : i32
    %c0_i32_0 = arith.constant 0 : i32
    %c0_i32_1 = arith.constant 0 : i32
    return %c0_i32, %c0_i32_0 : i32, i32
  }
  func.func @transform_21(%arg0: i32) -> (i32, i32) {
    %c0_i32 = arith.constant 0 : i32
    %c0_i32_0 = arith.constant 0 : i32
    %c0_i32_1 = arith.constant 0 : i32
    return %c0_i32, %c0_i32_0 : i32, i32
  }
  func.func @transform_22(%arg0: i32) -> (i32, i32) {
    %c0_i32 = arith.constant 0 : i32
    %c0_i32_0 = arith.constant 0 : i32
    %c0_i32_1 = arith.constant 0 : i32
    return %c0_i32, %c0_i32_0 : i32, i32
  }
}

</mosaic_0001>

<bundles_post_ra>
// kernel: forward.1
= control target key start
LH: loop header
LB: loop body
LE: loop exit
PB: predicated region body
PF: predicated region fallthrough
CT: control target
= control target key end

     0   :  { %s6471_s0 = inlined_call_operand.vmem [shape: f32[16,64], index: 0, kind: input, shape index: {}]   ;;  %s6472_s1 = inlined_call_operand.vmem [shape: f32[2,1,8], index: 1, kind: input, shape index: {}]   ;;  %s6473_s2 = inlined_call_operand.vmem [shape: f32[1,64], index: 2, kind: input, shape index: {}]   ;;  %s6474_s3 = inlined_call_operand.hbm [shape: f32[1,64], index: 3, kind: input, shape index: {}]   ;;  %s6475_s4 = inlined_call_operand.vmem [shape: f32[64,128], index: 4, kind: input, shape index: {}]   ;;  %s6476_s5 = inlined_call_operand.hbm [shape: f32[1,128], index: 5, kind: input, shape index: {}]   ;;  %s6477_s6 = inlined_call_operand.vmem [shape: f32[128,384], index: 6, kind: input, shape index: {}]   ;;  %s6478_s7 = inlined_call_operand.hbm [shape: f32[1,384], index: 7, kind: input, shape index: {}]   ;;  %s6479_s8 = inlined_call_operand.hbm [shape: f32[128,128], index: 8, kind: input, shape index: {}]   ;;  %s6480_s9 = inlined_call_operand.vmem [shape: f32[1,128], index: 9, kind: input, shape index: {}]   ;;  %s6481_s10 = inlined_call_operand.hbm [shape: f32[1,128], index: 10, kind: input, shape index: {}]   ;;  %s6482_s11 = inlined_call_operand.vmem [shape: f32[1,128], index: 11, kind: input, shape index: {}]   ;;  %s6483_s12 = inlined_call_operand.vmem [shape: f32[128,256], index: 12, kind: input, shape index: {}]   ;;  %s6484_s13 = inlined_call_operand.hbm [shape: f32[1,256], index: 13, kind: input, shape index: {}]   ;;  %s6485_s14 = inlined_call_operand.hbm [shape: f32[256,128], index: 14, kind: input, shape index: {}]   ;;  %s6486_s15 = inlined_call_operand.hbm [shape: f32[1,128], index: 15, kind: input, shape index: {}]   ;;  %s6487_s16 = inlined_call_operand.hbm [shape: f32[1,128], index: 16, kind: input, shape index: {}]   ;;  %s6488_s17 = inlined_call_operand.hbm [shape: f32[1,128], index: 17, kind: input, shape index: {}]   ;;  %s6489_s18 = inlined_call_operand.hbm [shape: f32[128,128], index: 18, kind: input, shape index: {}]   ;;  %s6490_s19 = inlined_call_operand.hbm [shape: f32[1,128], index: 19, kind: input, shape index: {}]   ;;  %s6491_s20 = inlined_call_operand.vmem [shape: f32[128,3], index: 20, kind: input, shape index: {}]   ;;  %s6492_s21 = inlined_call_operand.hbm [shape: f32[1,3], index: 21, kind: input, shape index: {}]   ;;  %s6493_s22 = inlined_call_operand.hbm [shape: f32[2,3], index: 22, kind: output, shape index: {}]  }
   0x1   :  { %6504 = sst [smem:[#allocation33_spill]] %s6471_s0 }
   0x2   :  { %6505 = sst [smem:[#allocation34_spill]] %s6472_s1 }
   0x3   :  { %6506 = sst [smem:[#allocation35_spill]] %s6473_s2 }
   0x4   :  { %6507 = sst [smem:[#allocation36_spill]] %s6474_s3 }
   0x5   :  { %6508 = sst [smem:[#allocation37_spill]] %s6475_s4 }
   0x6   :  { %6509 = sst [smem:[#allocation38_spill]] %s6476_s5 }
   0x7   :  { %6510 = sst [smem:[#allocation39_spill]] %s6477_s6 }
   0x8   :  { %6511 = sst [smem:[#allocation40_spill]] %s6478_s7 }
   0x9   :  { %27 = vsyncpa [#allocation4], 0 }
   0xa   :  { %28 = vsyncpa [#allocation7], 0 }
   0xb   :  { %29 = vsyncpa [#allocation10], 0 }
   0xc   :  { %30 = vsyncpa [#allocation13], 0 }
   0xd   :  { %31 = vsyncpa [#allocation16], 0 }
   0xe   :  { %32 = vsyncpa [#allocation19], 0 }
   0xf   :  { %33 = vsyncpa [#allocation22], 0 }
  0x10   :  { %34 = vsyncpa [#allocation5], 0  ;;  %s5454_s3 = smov 0  }
  0x11 LB: > { %s5316_s28 = smov [#allocation6]   ;;  %s5460_s30 = sadd.s32 4294967295, %s5314_s3   ;;  %s5314_s3 = sphi %s5454_s3, %s40_s3  }
  0x12   : > { %s564_s29 = sshll.u32 %s5316_s28, 4  ;;  %p4046_p0 = scmp.ge.s32.totalorder %s5314_s3, 1  ;;  %s565_s29 = int_to_ptr.vmem [resolvable:$true] %s564_s29 }
  0x13   : > { %p528_p1 = scmp.lt.s32.totalorder %s5314_s3, 3  ;;  %p6502_p3 = scmp.eq.s32.totalorder %s5460_s30, 0 }
  0x14   : > { %s5317_s0 = smov [#allocation9]   ;;  %s5318_s5 = smov [#allocation12]  }
  0x15   : > { %p5466_p4 = pnand %p4046_p0, %p528_p1  ;;  %s588_s23 = sshll.u32 %s5317_s0, 4  ;;  %s5472_s23 = int_to_ptr.vmem [resolvable:$true] %s588_s23 }
  0x16   : > { %s622_s24 = sshll.u32 %s5318_s5, 4  ;;  %s5319_s6 = smov [#allocation15]   ;;  %s5480_s24 = int_to_ptr.vmem [resolvable:$true] %s622_s24 }
  0x17   : > { %s6512_s4 = scalar_select %p5466_p4, 1, 0 }
  0x18   : > { %p4750_p5 = pneg %p5466_p4  ;;  %s5482_s25 = sshll.u32 %s5319_s6, 4  ;;  %s647_s25 = int_to_ptr.vmem [resolvable:$true] %s5482_s25 }
  0x19   : > { %s4925_s2 = scalar_lea.vmem %s565_s29, 16  ;;  %s4932_s27 = scalar_lea.vmem %s565_s29, 32 }
  0x1a   : > { %p5476_p6 = pnand %p6502_p3, %p4750_p5  ;;  %p4926_p8 = scmp.ne.s32.totalorder %s565_s29, %s4925_s2 }
  0x1b   : > { %p4933_p11 = scmp.lt.s32.totalorder %s565_s29, %s565_s29  ;;  %p4934_p12 = scmp.lt.s32.totalorder %s4932_s27, %s4925_s2 }
  0x1c   : > { %p5486_p7 = pneg %p5476_p6 }
  0x1d   : > { %p4935_p13 = por %p4934_p12, %p4933_p11 }
  0x1e   : > { %p4928_p9 = pnand %p4926_p8, %p5486_p7 }
  0x20   : > { %p4929_p10 = pneg %p4928_p9 }
  0x22   : > { %p4936_p0 = pnand %p4935_p13, %p4929_p10 }
  0x24   : > { %4939 = shalt.err (!%p4936_p0)
}
  0x25   : > { %s6515_s5 = sld [smem:[#allocation38_spill]]  ;;  %s4951_s6 = scalar_lea.vmem %s5472_s23, 2048 }
  0x26   : > { %p4952_p1 = scmp.ne.s32.totalorder %s5472_s23, %s4951_s6  ;;  %p4959_p9 = scmp.lt.s32.totalorder %s5472_s23, %s5472_s23 }
  0x27   : > { %p4960_p11 = scmp.lt.s32.totalorder %s4951_s6, %s4951_s6 }
  0x28   : > { %p4954_p5 = pnand %p4952_p1, %p5486_p7 }
  0x29   : > { %p4961_p10 = por %p4960_p11, %p4959_p9 }
  0x2a   : > { %p4955_p8 = pneg %p4954_p5 }
  0x2b   : > { %4756 = dma.hbm_to_vmem [thread:$0]  (!%p5476_p6), %s6515_s5, 16, %s565_s29, [#allocation7]  }
  0x2c   : > { %p4962_p12 = pnand %p4961_p10, %p4955_p8 }
  0x2e   : > { %4965 = shalt.err (!%p4962_p12)
}
  0x2f   : > { %s6498_s2 = smov 128   ;;  %s6500_s27 = smov 8  }
  0x30   : > { %4762 = dma.hbm_to_vmem [thread:$0]  (!%p5476_p6), %s6479_s8, 2048, %s5472_s23, [#allocation10], %s6498_s2, %s6498_s2, %s6500_s27  }
  0x31   : > { %s4977_s0 = scalar_lea.vmem %s5480_s24, 32  ;;  %p4985_p5 = scmp.lt.s32.totalorder %s5480_s24, %s5480_s24 }
  0x32   : > { %p4978_p13 = scmp.ne.s32.totalorder %s5480_s24, %s4977_s0  ;;  %p4986_p8 = scmp.lt.s32.totalorder %s4977_s0, %s4977_s0 }
  0x34   : > { %p4980_p0 = pnand %p4978_p13, %p5486_p7  ;;  %p4987_p9 = por %p4986_p8, %p4985_p5 }
  0x36   : > { %p4981_p1 = pneg %p4980_p0 }
  0x38   : > { %p4988_p11 = pnand %p4987_p9, %p4981_p1 }
  0x3a   : > { %4991 = shalt.err (!%p4988_p11)
}
  0x3b   : > { %4768 = dma.hbm_to_vmem [thread:$0]  (!%p5476_p6), %s6484_s13, 32, %s5480_s24, [#allocation13]  }
  0x3c   : > { %s5003_s23 = scalar_lea.vmem %s647_s25, 16  ;;  %s5010_s29 = scalar_lea.vmem %s647_s25, 32 }
  0x3d   : > { %p5004_p10 = scmp.ne.s32.totalorder %s647_s25, %s5003_s23  ;;  %p5011_p0 = scmp.lt.s32.totalorder %s647_s25, %s647_s25 }
  0x3e   : > { %p5012_p5 = scmp.lt.s32.totalorder %s5010_s29, %s5003_s23 }
  0x3f   : > { %p5006_p12 = pnand %p5004_p10, %p5486_p7 }
  0x40   : > { %p5013_p1 = por %p5012_p5, %p5011_p0 }
  0x41   : > { %p5007_p13 = pneg %p5006_p12 }
  0x43   : > { %p5014_p8 = pnand %p5013_p1, %p5007_p13 }
  0x45   : > { %5017 = shalt.err (!%p5014_p8)
}
  0x46   : > { %4774 = dma.hbm_to_vmem [thread:$0]  (!%p5476_p6), %s6486_s15, 16, %s647_s25, [#allocation16]  }
  0x47   : > { %s5322_s24 = smov [#allocation18]   ;;  %s5323_s6 = smov [#allocation21]  }
  0x48   : > { %s668_s5 = sshll.u32 %s5322_s24, 4  ;;  %s692_s2 = sshll.u32 %s5323_s6, 4  ;;  %s669_s5 = int_to_ptr.vmem [resolvable:$true] %s668_s5  ;;  %s693_s2 = int_to_ptr.vmem [resolvable:$true] %s692_s2 }
  0x49   : > { %s5029_s27 = scalar_lea.vmem %s669_s5, 16  ;;  %s5036_s23 = scalar_lea.vmem %s669_s5, 32 }
  0x4a   : > { %p5030_p9 = scmp.ne.s32.totalorder %s669_s5, %s5029_s27  ;;  %p5037_p12 = scmp.lt.s32.totalorder %s669_s5, %s669_s5 }
  0x4b   : > { %p5038_p13 = scmp.lt.s32.totalorder %s5036_s23, %s5029_s27 }
  0x4c   : > { %p5032_p11 = pnand %p5030_p9, %p5486_p7 }
  0x4d   : > { %p5039_p0 = por %p5038_p13, %p5037_p12 }
  0x4e   : > { %p5033_p10 = pneg %p5032_p11 }
  0x50   : > { %p5040_p5 = pnand %p5039_p0, %p5033_p10 }
  0x52   : > { %5043 = shalt.err (!%p5040_p5)
}
  0x53   : > { %4780 = dma.hbm_to_vmem [thread:$0]  (!%p5476_p6), %s6488_s17, 16, %s669_s5, [#allocation19]  }
  0x54   : > { %s5055_s28 = scalar_lea.vmem %s693_s2, 16  ;;  %s5062_s0 = scalar_lea.vmem %s693_s2, 32 }
  0x55   : > { %p5056_p1 = scmp.ne.s32.totalorder %s693_s2, %s5055_s28  ;;  %p5063_p11 = scmp.lt.s32.totalorder %s693_s2, %s693_s2 }
  0x56   : > { %p5064_p2 = scmp.lt.s32.totalorder %s5062_s0, %s5055_s28 }
  0x57   : > { %p5058_p8 = pnand %p5056_p1, %p5486_p7 }
  0x58   : > { %p5065_p3 = por %p5064_p2, %p5063_p11 }
  0x59   : > { %p5059_p9 = pneg %p5058_p8 }
  0x5b   : > { %p5066_p12 = pnand %p5065_p3, %p5059_p9 }
  0x5d   : > { %5069 = shalt.err (!%p5066_p12)
}
  0x5e   : > { %4786 = dma.hbm_to_vmem [thread:$0]  (!%p5476_p6), %s6490_s19, 16, %s693_s2, [#allocation22]  }
  0x5f   : > { %s5324_s5 = smov [#allocation3]   ;;  %s5325_s23 = smov [#allocation8]  }
  0x60   : > { %s550_s6 = sshll.u32 %s5324_s5, 4  ;;  %s578_s29 = sshll.u32 %s5325_s23, 4  ;;  %s551_s6 = int_to_ptr.vmem [resolvable:$true] %s550_s6  ;;  %s579_s29 = int_to_ptr.vmem [resolvable:$true] %s578_s29 }
  0x61   : > { %s5081_s25 = scalar_lea.vmem %s551_s6, 16  ;;  %s5088_s28 = scalar_lea.vmem %s551_s6, 32 }
  0x62   : > { %p5082_p10 = scmp.ne.s32.totalorder %s551_s6, %s5081_s25  ;;  %p5089_p2 = scmp.lt.s32.totalorder %s551_s6, %s551_s6 }
  0x63   : > { %p5090_p3 = scmp.lt.s32.totalorder %s5088_s28, %s5081_s25 }
  0x64   : > { %p5084_p13 = pnand %p5082_p10, %p5486_p7 }
  0x65   : > { %p5091_p5 = por %p5090_p3, %p5089_p2 }
  0x66   : > { %p5085_p0 = pneg %p5084_p13 }
  0x68   : > { %p5092_p1 = pnand %p5091_p5, %p5085_p0 }
  0x6a   : > { %5095 = shalt.err (!%p5092_p1)
}
  0x6b   : > { %s6516_s27 = sld [smem:[#allocation36_spill]]  ;;  %s5107_s24 = scalar_lea.vmem %s579_s29, 48 }
  0x6c   : > { %p5108_p8 = scmp.ne.s32.totalorder %s579_s29, %s5107_s24  ;;  %s5114_s5 = scalar_lea.vmem %s579_s29, 64 }
  0x6d   : > { %p5115_p12 = scmp.lt.s32.totalorder %s579_s29, %s579_s29  ;;  %p5116_p10 = scmp.lt.s32.totalorder %s5114_s5, %s5107_s24 }
  0x6e   : > { %p5110_p9 = pnand %p5108_p8, %p5486_p7 }
  0x6f   : > { %p5117_p13 = por %p5116_p10, %p5115_p12 }
  0x70   : > { %p5111_p11 = pneg %p5110_p9 }
  0x71   : > { %4753 = dma.hbm_to_vmem [thread:$0]  (!%p5476_p6), %s6516_s27, 16, %s551_s6, [#allocation4]  }
  0x72   : > { %p5118_p2 = pnand %p5117_p13, %p5111_p11 }
  0x74   : > { %5121 = shalt.err (!%p5118_p2)
}
  0x75   : > { %s6517_s7 = sld [smem:[#allocation40_spill]]  ;;  %s5326_s6 = smov [#allocation11]  }
  0x76   : > { %s605_s28 = sshll.u32 %s5326_s6, 4  ;;  %s5327_s0 = smov [#allocation14]   ;;  %s606_s28 = int_to_ptr.vmem [resolvable:$true] %s605_s28 }
  0x77   : > { %s632_s2 = sshll.u32 %s5327_s0, 4  ;;  %s5133_s27 = scalar_lea.vmem %s606_s28, 16  ;;  %s633_s2 = int_to_ptr.vmem [resolvable:$true] %s632_s2 }
  0x78   : > { %p5134_p0 = scmp.ne.s32.totalorder %s606_s28, %s5133_s27  ;;  %s5140_s24 = scalar_lea.vmem %s606_s28, 32 }
  0x79   : > { %p5141_p1 = scmp.lt.s32.totalorder %s606_s28, %s606_s28  ;;  %p5142_p8 = scmp.lt.s32.totalorder %s5140_s24, %s5133_s27 }
  0x7a   : > { %p5136_p3 = pnand %p5134_p0, %p5486_p7 }
  0x7b   : > { %4759 = dma.hbm_to_vmem [thread:$0]  (!%p5476_p6), %s6517_s7, 48, %s579_s29, [#allocation7]  }
  0x7c   : > { %p5137_p5 = pneg %p5136_p3  ;;  %p5143_p9 = por %p5142_p8, %p5141_p1 }
  0x7e   : > { %p5144_p11 = pnand %p5143_p9, %p5137_p5 }
  0x80   : > { %5147 = shalt.err (!%p5144_p11)
}
  0x81   : > { %4765 = dma.hbm_to_vmem [thread:$0]  (!%p5476_p6), %s6481_s10, 16, %s606_s28, [#allocation10]  }
  0x82   : > { %s5159_s23 = scalar_lea.vmem %s633_s2, 4096  ;;  %p5167_p2 = scmp.lt.s32.totalorder %s633_s2, %s633_s2 }
  0x83   : > { %p5160_p12 = scmp.ne.s32.totalorder %s633_s2, %s5159_s23  ;;  %p5168_p0 = scmp.lt.s32.totalorder %s5159_s23, %s5159_s23 }
  0x85   : > { %p5162_p10 = pnand %p5160_p12, %p5486_p7  ;;  %p5169_p3 = por %p5168_p0, %p5167_p2 }
  0x87   : > { %p5163_p13 = pneg %p5162_p10 }
  0x89   : > { %p5170_p4 = pnand %p5169_p3, %p5163_p13 }
  0x8b   : > { %5173 = shalt.err (!%p5170_p4)
}
  0x8c   : > { %s6518_s25 = smov 8   ;;  %s6519_s6 = smov 128  }
  0x8d   : > { %4771 = dma.hbm_to_vmem [thread:$0]  (!%p5476_p6), %s6485_s14, 4096, %s633_s2, [#allocation13], %s6519_s6, %s6519_s6, %s6518_s25  }
  0x8e   : > { %s5328_s28 = smov [#allocation17]   ;;  %s5329_s5 = smov [#allocation20]  }
  0x8f   : > { %s657_s24 = sshll.u32 %s5328_s28, 4  ;;  %s678_s29 = sshll.u32 %s5329_s5, 4  ;;  %s658_s24 = int_to_ptr.vmem [resolvable:$true] %s657_s24  ;;  %s679_s29 = int_to_ptr.vmem [resolvable:$true] %s678_s29 }
  0x90   : > { %s5185_s7 = scalar_lea.vmem %s658_s24, 16  ;;  %s5192_s23 = scalar_lea.vmem %s658_s24, 32 }
  0x91   : > { %p5186_p5 = scmp.ne.s32.totalorder %s658_s24, %s5185_s7  ;;  %p5193_p8 = scmp.lt.s32.totalorder %s658_s24, %s658_s24 }
  0x92   : > { %p5194_p9 = scmp.lt.s32.totalorder %s5192_s23, %s5185_s7 }
  0x93   : > { %p5188_p1 = pnand %p5186_p5, %p5486_p7 }
  0x94   : > { %p5195_p11 = por %p5194_p9, %p5193_p8 }
  0x95   : > { %p5189_p4 = pneg %p5188_p1 }
  0x97   : > { %p5196_p12 = pnand %p5195_p11, %p5189_p4 }
  0x99   : > { %5199 = shalt.err (!%p5196_p12)
}
  0x9a   : > { %4777 = dma.hbm_to_vmem [thread:$0]  (!%p5476_p6), %s6487_s16, 16, %s658_s24, [#allocation16]  }
  0x9b   : > { %s5211_s27 = scalar_lea.vmem %s679_s29, 2048  ;;  %p5219_p0 = scmp.lt.s32.totalorder %s679_s29, %s679_s29 }
  0x9c   : > { %p5212_p10 = scmp.ne.s32.totalorder %s679_s29, %s5211_s27  ;;  %p5220_p3 = scmp.lt.s32.totalorder %s5211_s27, %s5211_s27 }
  0x9e   : > { %p5214_p13 = pnand %p5212_p10, %p5486_p7  ;;  %p5221_p5 = por %p5220_p3, %p5219_p0 }
  0xa0   : > { %p5215_p2 = pneg %p5214_p13 }
  0xa2   : > { %p5222_p1 = pnand %p5221_p5, %p5215_p2 }
  0xa4   : > { %5225 = shalt.err (!%p5222_p1)
}
  0xa5   : > { %4783 = dma.hbm_to_vmem [thread:$0]  (!%p5476_p6), %s6489_s18, 2048, %s679_s29, [#allocation19], %s6519_s6, %s6519_s6, %s6518_s25  }
  0xa6   : > { %s5330_s24 = smov [#allocation23]  }
  0xa7   : > { %s706_s5 = sshll.u32 %s5330_s24, 4  ;;  %s707_s5 = int_to_ptr.vmem [resolvable:$true] %s706_s5 }
  0xa8   : > { %s5237_s23 = scalar_lea.vmem %s707_s5, 16  ;;  %s5244_s0 = scalar_lea.vmem %s707_s5, 32 }
  0xa9   : > { %p5238_p4 = scmp.ne.s32.totalorder %s707_s5, %s5237_s23  ;;  %p5245_p11 = scmp.lt.s32.totalorder %s707_s5, %s707_s5 }
  0xaa   : > { %p5246_p12 = scmp.lt.s32.totalorder %s5244_s0, %s5237_s23 }
  0xab   : > { %p5240_p8 = pnand %p5238_p4, %p5486_p7 }
  0xac   : > { %p5247_p10 = por %p5246_p12, %p5245_p11 }
  0xad   : > { %p5241_p9 = pneg %p5240_p8 }
  0xaf   : > { %p5248_p13 = pnand %p5247_p10, %p5241_p9 }
  0xb1   : > { %5251 = shalt.err (!%p5248_p13)
}
  0xb2   : > { %4789 = dma.hbm_to_vmem [thread:$0]  (!%p5476_p6), %s6492_s21, 16, %s707_s5, [#allocation22]  }
  0xb3   : > { %p6520_p2 = scmp.ne.s32.totalorder %s6512_s4, 0 }
  0xb4   : > { %p6521_p0 = scmp.eq.s32.totalorder (!%p6520_p2), %s5460_s30, 0 }
  0xb5   : > { %719 = sbr.rel (%p6520_p2) target bundleno = 6962 (0x1b32), region = 108 }
  0xba   : > { %5281 = dma.done.wait (%p6521_p0), [#allocation4], 16   ;;  %p6522_p7 = pmov %p6521_p0 }
  0xbb   : > { %p6523_p3 = pmov %p6521_p0 }
  0xbc   : > { %5283 = vsyncadd (%p6522_p7), [#allocation4], 4294967280 }
  0xbd   : > { %5285 = dma.done.wait (%p6523_p3), [#allocation7], 64   ;;  %p6524_p5 = pmov %p6521_p0 }
  0xbe   : > { %p6525_p1 = pmov %p6521_p0 }
  0xbf   : > { %5287 = vsyncadd (%p6524_p5), [#allocation7], 4294967232 }
  0xc0   : > { %5289 = dma.done.wait (%p6525_p1), [#allocation10], 2064   ;;  %p6526_p6 = pmov %p6521_p0 }
  0xc1   : > { %p6527_p4 = pmov %p6521_p0 }
  0xc2   : > { %5291 = vsyncadd (%p6526_p6), [#allocation10], 4294965232 }
  0xc3   : > { %5293 = dma.done.wait (%p6527_p4), [#allocation13], 4128   ;;  %p6528_p8 = pmov %p6521_p0 }
  0xc4   : > { %p6529_p9 = pmov %p6521_p0 }
  0xc5   : > { %5295 = vsyncadd (%p6528_p8), [#allocation13], 4294963168 }
  0xc6   : > { %5297 = dma.done.wait (%p6529_p9), [#allocation16], 32   ;;  %p6530_p11 = pmov %p6521_p0 }
  0xc7   : > { %p6531_p12 = pmov %p6521_p0 }
  0xc8   : > { %5299 = vsyncadd (%p6530_p11), [#allocation16], 4294967264 }
  0xc9   : > { %5301 = dma.done.wait (%p6531_p12), [#allocation19], 2064   ;;  %p6532_p10 = pmov %p6521_p0 }
  0xca   : > { %p6533_p13 = pmov %p6521_p0 }
  0xcb   : > { %5303 = vsyncadd (%p6532_p10), [#allocation19], 4294965232 }
  0xcc   : > { %5305 = dma.done.wait (%p6533_p13), [#allocation22], 32   ;;  %p6534_p2 = pmov %p6521_p0 }
  0xcd   : > { %p6535_p0 = scmp.ne.s32.totalorder %s5460_s30, 0 }
  0xce   : > { %5307 = vsyncadd (%p6534_p2), [#allocation22], 4294967264  ;;  %s6536_s26 = sld [smem:[#allocation33_spill]] (!%p6535_p0) }
  0xcf   : > { %822 = sbr.rel (%p6535_p0) target bundleno = 723 (0x2d3), region = 164  ;;  %s6537_s28 = sld [smem:[#allocation37_spill]] (!%p6535_p0) }
  0xd0   : > { %s6538_s2 = sld [smem:[#allocation35_spill]] (!%p6535_p0) }
  0xd4   : > { %v823_v0 = vld [vmem:[%s6536_s26] sm:$0xff]  ;;  %vm827_vm0 = vcmask 523264   ;;  %v824_v1 = vld [vmem:[%s6536_s26 + $0x8] sm:$0xff]  ;;  %v4076_v31 = vld [vmem:[#allocation3] ss:$0 sm:$0xff] }
  0xd5   : > { %v828_v2 = vsel %vm827_vm0, %v823_v0, 0.0  ;;  %v831_v3 = vsel %vm827_vm0, %v824_v1, 0.0  ;;  %v878_v14 = vld [vmem:[%s6537_s28 + $0x38] sm:$0xff]  ;;  %v877_v15 = vld [vmem:[%s6537_s28 + $0x30] sm:$0xff]  ;;  %v876_v16 = vld [vmem:[%s6537_s28 + $0x28] sm:$0xff] }
  0xd6   : > { %829 = vadd.xlane.f32.xlu0 %v828_v2  ;;  %4332 = vmatprep.subr.mxu0 %v878_v14  ;;  %v875_v17 = vld [vmem:[%s6537_s28 + $0x20] sm:$0xff]  ;;  %v874_v18 = vld [vmem:[%s6537_s28 + $0x18] sm:$0xff]  ;;  %v873_v19 = vld [vmem:[%s6537_s28 + $0x10] sm:$0xff] }
  0xd7   : > { %4333 = vmatpush3.msra.mxu0 %v878_v14  ;;  %v872_v20 = vld [vmem:[%s6537_s28 + $0x8] sm:$0xff]  ;;  %v871_v21 = vld [vmem:[%s6537_s28] sm:$0xff]  ;;  %v4077_v38 = vld [vmem:[#allocation6] ss:$0 sm:$0xff] }
  0xd8   : > { %4334 = vmatprep.subr.mxu0 %v877_v15  ;;  %v4075_v29 = vld [vmem:[%s6538_s2] ss:$0 sm:$0xff] }
  0xd9   : > { %4335 = vmatpush3.msra.mxu0 %v877_v15 }
  0xda   : > { %832 = vadd.xlane.f32.xlu0 %v831_v3  ;;  %4336 = vmatprep.subr.mxu0 %v876_v16 }
  0xdb   : > { %4337 = vmatpush3.msra.mxu0 %v876_v16 }
  0xdc   : > { %4338 = vmatprep.subr.mxu0 %v875_v17 }
  0xdd   : > { %4339 = vmatpush3.msra.mxu0 %v875_v17 }
  0xde   : > { %4340 = vmatprep.subr.mxu0 %v874_v18 }
  0xdf   : > { %4341 = vmatpush3.msra.mxu0 %v874_v18 }
  0xe0   : > { %4342 = vmatprep.subr.mxu0 %v873_v19 }
  0xe1   : > { %4343 = vmatpush3.msra.mxu0 %v873_v19 }
  0xe2   : > { %4344 = vmatprep.subr.mxu0 %v872_v20 }
  0xe3   : > { %4345 = vmatpush3.msra.mxu0 %v872_v20 }
  0xe4   : > { %4346 = vmatprep.subr.mxu0 %v871_v21 }
  0xe5   : > { %4347 = vmatpush3.msra.mxu0 %v871_v21 }
 0x15f   : > { %v830_v4 = vpop.xlane.xlu0 %829 }
 0x160   : > { %v835_v5 = vmul.f32 0.015625, %v830_v4 }
 0x162   : > { %v837_v6 = vsub.f32 %v823_v0, %v835_v5 }
 0x163   : > { %v833_v7 = vpop.xlane.xlu0 %832 }
 0x164   : > { %v836_v8 = vmul.f32 0.015625, %v833_v7  ;;  %v839_v9 = vmul.f32 %v837_v6, %v837_v6 }
 0x166   : > { %v838_v10 = vsub.f32 %v824_v1, %v836_v8  ;;  %v841_v11 = vsel %vm827_vm0, %v839_v9, 0.0 }
 0x167   : > { %842 = vadd.xlane.f32.xlu1 %v841_v11 }
 0x168   : > { %v840_v12 = vmul.f32 %v838_v10, %v838_v10 }
 0x16a   : > { %v844_v13 = vsel %vm827_vm0, %v840_v12, 0.0 }
 0x16b   : > { %845 = vadd.xlane.f32.xlu1 %v844_v13 }
 0x1f0   : > { %v843_v22 = vpop.xlane.xlu1 %842 }
 0x1f1   : > { %v847_v23 = vmul.f32 0.015625, %v843_v22 }
 0x1f3   : > { %v849_v24 = vadd.f32 1e-12, %v847_v23 }
 0x1f4   : > { %v846_v25 = vpop.xlane.xlu1 %845 }
 0x1f5   : > { %4849 = vrsqrt.f32 %v849_v24  ;;  %v848_v26 = vmul.f32 0.015625, %v846_v25 }
 0x1f7   : > { %v850_v27 = vadd.f32 1e-12, %v848_v26 }
 0x1f9   : > { %4851 = vrsqrt.f32 %v850_v27 }
 0x202   : > { %v4850_v28 = vpop.eup %4849 }
 0x203   : > { %v853_v30 = vmul.f32 %v4850_v28, %v837_v6 }
 0x205   : > { %v861_v32 = vmul.f32 %v4075_v29, %v853_v30 }
 0x206   : > { %v4852_v33 = vpop.eup %4851 }
 0x207   : > { %v854_v34 = vmul.f32 %v4852_v33, %v838_v10  ;;  %v869_v35 = vadd.f32 %v4076_v31, %v861_v32 }
 0x209   : > { %v862_v36 = vmul.f32 %v4075_v29, %v854_v34  ;;  %4348 = vmatprep.mubr.msk.f32.mxu0 %vm827_vm0, %v869_v35 }
 0x20b   : > { %v870_v37 = vadd.f32 %v4076_v31, %v862_v36 }
 0x20d   : > { %4349 = vmatmul.mubr.msk.f32.vlgmr.msra.gmra.mxu0 %vm827_vm0, %v870_v37 }
 0x2cd   : > { %v4350_v39 = vpop.f32.mrf.mxu0 }
 0x2ce   : > { %v964_v40 = vadd.f32 %v4350_v39, %v4077_v38 }
 0x2cf   : > { %v958_v41 = vpop.f32.mrf.mxu0 }
 0x2d0   : > { %968 = vst [vmem:[#allocation2 + $0x8] sm:$0xff] %v964_v40  ;;  %v959_v42 = vadd.f32 %v4077_v38, %v958_v41 }
 0x2d2   : > { %967 = vst [vmem:[#allocation2] sm:$0xff] %v959_v42 }
 0x2d3 PF: > { %s6539_s1 = sld [smem:[#allocation39_spill]]  ;;  %v5331_v47 = vmov 0.0   ;;  %vm5332_vm1 = vmmov 0   ;;  %v1021_v30 = vlaneseq  ;;  %v1019_v33 = vld [vmem:[#allocation8] sm:$0x7]  ;;  %vm1189_vm2 = vcmask 261120  }
 0x2d4   : > { %1100 = vmatprep.mubr.f32.mxu0 %v5331_v47  ;;  %s5333_s23 = smov 96   ;;  %s6540_s27 = sld [smem:[#allocation34_spill]]  ;;  %vm1274_vm3 = vcmask 64512  }
 0x2d5   : > { %v5828_v31 = vshrl.u32 %v1021_v30, 7  ;;  %s5334_s4 = smov 64   ;;  %s5335_s25 = smov 32  }
 0x2d6   : > { %p4121_p7 = scmp.ne.s32.totalorder %s5460_s30, 1 }
 0x2d7   : > { %v970_v29 = vld [vmem:[#allocation2 + $0x8] sm:$0xff]  ;;  %v1027_v32 = vsub.s32 1, %v5828_v31  ;;  %v1023_v34 = vsub.s32 0, %v5828_v31  ;;  %v1031_v41 = vsub.s32 2, %v5828_v31 }
 0x2d9   : > { %v1017_v43 = vld [vmem:[%s6539_s1 + $0x170] sm:$0xff]  ;;  %v1016_v44 = vld [vmem:[%s6539_s1 + $0x168] sm:$0xff]  ;;  %v1014_v45 = vld [vmem:[%s6539_s1 + $0x158] sm:$0xff]  ;;  %v5834_v35 = vrot.slane %v1019_v33, %v1027_v32  ;;  %v5838_v37 = vrot.slane %v1019_v33, %v1023_v34  ;;  %v1032_v42 = vrot.slane %v1019_v33, %v1031_v41 }
 0x2da   : > { %1036 = vmatprep.subr.mxu0 %v1017_v43  ;;  %v1013_v46 = vld [vmem:[%s6539_s1 + $0x150] sm:$0xff]  ;;  %v1011_v48 = vld [vmem:[%s6539_s1 + $0x140] sm:$0xff]  ;;  %v1010_v49 = vld [vmem:[%s6539_s1 + $0x138] sm:$0xff] }
 0x2db   : > { %1037 = vmatpush1.msra.mxu0 %v1016_v44  ;;  %v1008_v50 = vld [vmem:[%s6539_s1 + $0x128] sm:$0xff]  ;;  %v1007_v51 = vld [vmem:[%s6539_s1 + $0x120] sm:$0xff]  ;;  %v1005_v52 = vld [vmem:[%s6539_s1 + $0x110] sm:$0xff] }
 0x2dc   : > { %1038 = vmatprep.subr.mxu0 %v1014_v45  ;;  %v1004_v53 = vld [vmem:[%s6539_s1 + $0x108] sm:$0xff]  ;;  %v1002_v54 = vld [vmem:[%s6539_s1 + $0xf8] sm:$0xff]  ;;  %v1001_v55 = vld [vmem:[%s6539_s1 + $0xf0] sm:$0xff] }
 0x2dd   : > { %1039 = vmatpush1.msra.mxu0 %v1013_v46  ;;  %v999_v56 = vld [vmem:[%s6539_s1 + $0xe0] sm:$0xff]  ;;  %v998_v58 = vld [vmem:[%s6539_s1 + $0xd8] sm:$0xff]  ;;  %v996_v61 = vld [vmem:[%s6539_s1 + $0xc8] sm:$0xff] }
 0x2de   : > { %1040 = vmatprep.subr.mxu0 %v1011_v48  ;;  %v5712_v57 = vld [vmem:[#allocation2] sm:$0xff]  ;;  %v1018_v59 = vld [vmem:[%s6539_s1 + $0x178] sm:$0xff]  ;;  %v1012_v63 = vld [vmem:[%s6539_s1 + $0x148] sm:$0xff] }
 0x2df   : > { %1041 = vmatpush1.msra.mxu0 %v1010_v49  ;;  %v1015_v60 = vld [vmem:[%s6539_s1 + $0x160] sm:$0xff]  ;;  %4383 = vmatprep.mubr.f32.mxu1 %v5712_v57  ;;  %v993_v0 = vld [vmem:[%s6539_s1 + $0xb0] sm:$0xff]  ;;  %v992_v1 = vld [vmem:[%s6539_s1 + $0xa8] sm:$0xff] }
 0x2e0   : > { %1042 = vmatprep.subr.mxu0 %v1008_v50  ;;  %4351 = vmatprep.subr.mxu1 %v1018_v59  ;;  %v995_v62 = vld [vmem:[%s6539_s1 + $0xc0] sm:$0xff]  ;;  %v1009_v2 = vld [vmem:[%s6539_s1 + $0x130] sm:$0xff]  ;;  %v990_v3 = vld [vmem:[%s6539_s1 + $0x98] sm:$0xff] }
 0x2e1   : > { %1043 = vmatpush1.msra.mxu0 %v1007_v51  ;;  %4352 = vmatpush3.msra.mxu1 %v1018_v59  ;;  %v989_v4 = vld [vmem:[%s6539_s1 + $0x90] sm:$0xff]  ;;  %v1006_v5 = vld [vmem:[%s6539_s1 + $0x118] sm:$0xff]  ;;  %v987_v6 = vld [vmem:[%s6539_s1 + $0x80] sm:$0xff] }
 0x2e2   : > { %1044 = vmatprep.subr.mxu0 %v1005_v52  ;;  %4353 = vmatprep.subr.mxu1 %v1015_v60  ;;  %v986_v7 = vld [vmem:[%s6539_s1 + $0x78] sm:$0xff]  ;;  %v1003_v8 = vld [vmem:[%s6539_s1 + $0x100] sm:$0xff]  ;;  %v984_v9 = vld [vmem:[%s6539_s1 + $0x68] sm:$0xff] }
 0x2e3   : > { %1045 = vmatpush1.msra.mxu0 %v1004_v53  ;;  %4354 = vmatpush3.msra.mxu1 %v1015_v60  ;;  %v983_v10 = vld [vmem:[%s6539_s1 + $0x60] sm:$0xff]  ;;  %v1000_v11 = vld [vmem:[%s6539_s1 + $0xe8] sm:$0xff]  ;;  %v981_v12 = vld [vmem:[%s6539_s1 + $0x50] sm:$0xff] }
 0x2e4   : > { %1046 = vmatprep.subr.mxu0 %v1002_v54  ;;  %4355 = vmatprep.subr.mxu1 %v1012_v63  ;;  %v980_v13 = vld [vmem:[%s6539_s1 + $0x48] sm:$0xff]  ;;  %v997_v14 = vld [vmem:[%s6539_s1 + $0xd0] sm:$0xff]  ;;  %v978_v15 = vld [vmem:[%s6539_s1 + $0x38] sm:$0xff] }
 0x2e5   : > { %1047 = vmatpush1.msra.mxu0 %v1001_v55  ;;  %4356 = vmatpush3.msra.mxu1 %v1012_v63  ;;  %v977_v16 = vld [vmem:[%s6539_s1 + $0x30] sm:$0xff]  ;;  %v994_v17 = vld [vmem:[%s6539_s1 + $0xb8] sm:$0xff]  ;;  %v975_v18 = vld [vmem:[%s6539_s1 + $0x20] sm:$0xff] }
 0x2e6   : > { %1048 = vmatprep.subr.mxu0 %v999_v56  ;;  %4357 = vmatprep.subr.mxu1 %v1009_v2  ;;  %v974_v19 = vld [vmem:[%s6539_s1 + $0x18] sm:$0xff]  ;;  %v991_v20 = vld [vmem:[%s6539_s1 + $0xa0] sm:$0xff]  ;;  %v972_v21 = vld [vmem:[%s6539_s1 + $0x8] sm:$0xff] }
 0x2e7   : > { %1049 = vmatpush1.msra.mxu0 %v998_v58  ;;  %4358 = vmatpush3.msra.mxu1 %v1009_v2  ;;  %v971_v22 = vld [vmem:[%s6539_s1] sm:$0xff]  ;;  %v988_v23 = vld [vmem:[%s6539_s1 + $0x88] sm:$0xff]  ;;  %v985_v24 = vld [vmem:[%s6539_s1 + $0x70] sm:$0xff] }
 0x2e8   : > { %1050 = vmatprep.subr.mxu0 %v996_v61  ;;  %4359 = vmatprep.subr.mxu1 %v1006_v5  ;;  %v982_v25 = vld [vmem:[%s6539_s1 + $0x58] sm:$0xff]  ;;  %v979_v26 = vld [vmem:[%s6539_s1 + $0x40] sm:$0xff]  ;;  %v976_v27 = vld [vmem:[%s6539_s1 + $0x28] sm:$0xff] }
 0x2e9   : > { %1051 = vmatpush1.msra.mxu0 %v995_v62  ;;  %4360 = vmatpush3.msra.mxu1 %v1006_v5  ;;  %v973_v28 = vld [vmem:[%s6539_s1 + $0x10] sm:$0xff]  ;;  %v5872_v51 = vld [vmem:[%s6540_s27] ss:$0 sm:$0xff] }
 0x2ea   : > { %1052 = vmatprep.subr.mxu0 %v993_v0  ;;  %4361 = vmatprep.subr.mxu1 %v1003_v8 }
 0x2eb   : > { %1053 = vmatpush1.msra.mxu0 %v992_v1  ;;  %4362 = vmatpush3.msra.mxu1 %v1003_v8 }
 0x2ec   : > { %1054 = vmatprep.subr.mxu0 %v990_v3  ;;  %4363 = vmatprep.subr.mxu1 %v1000_v11 }
 0x2ed   : > { %1055 = vmatpush1.msra.mxu0 %v989_v4  ;;  %4364 = vmatpush3.msra.mxu1 %v1000_v11  ;;  %v5891_v11 = vld [vmem:[#allocation9 + $0x38] sm:$0xff] }
 0x2ee   : > { %1056 = vmatprep.subr.mxu0 %v987_v6  ;;  %4365 = vmatprep.subr.mxu1 %v997_v14 }
 0x2ef   : > { %1057 = vmatpush1.msra.mxu0 %v986_v7  ;;  %4366 = vmatpush3.msra.mxu1 %v997_v14  ;;  %v5901_v14 = vld [vmem:[#allocation9 + $0x20] sm:$0xff] }
 0x2f0   : > { %1058 = vmatprep.subr.mxu0 %v984_v9  ;;  %4367 = vmatprep.subr.mxu1 %v994_v17 }
 0x2f1   : > { %1059 = vmatpush1.msra.mxu0 %v983_v10  ;;  %4368 = vmatpush3.msra.mxu1 %v994_v17 }
 0x2f2   : > { %1060 = vmatprep.subr.mxu0 %v981_v12  ;;  %4369 = vmatprep.subr.mxu1 %v991_v20  ;;  %v5893_v12 = vld [vmem:[#allocation9 + $0x30] sm:$0xff] }
 0x2f3   : > { %1061 = vmatpush1.msra.mxu0 %v980_v13  ;;  %4370 = vmatpush3.msra.mxu1 %v991_v20  ;;  %v5897_v13 = vld [vmem:[#allocation9 + $0x28] sm:$0xff]  ;;  %v5911_v20 = vld [vmem:[#allocation9 + $0x10] sm:$0xff] }
 0x2f4   : > { %1062 = vmatprep.subr.mxu0 %v978_v15  ;;  %4371 = vmatprep.subr.mxu1 %v988_v23 }
 0x2f5   : > { %1063 = vmatpush1.msra.mxu0 %v977_v16  ;;  %4372 = vmatpush3.msra.mxu1 %v988_v23 }
 0x2f6   : > { %1064 = vmatprep.subr.mxu0 %v975_v18  ;;  %4373 = vmatprep.subr.mxu1 %v985_v24 }
 0x2f7   : > { %1065 = vmatpush1.msra.mxu0 %v974_v19  ;;  %4374 = vmatpush3.msra.mxu1 %v985_v24  ;;  %v5908_v19 = vld [vmem:[#allocation9 + $0x18] sm:$0xff] }
 0x2f8   : > { %1066 = vmatprep.subr.mxu0 %v972_v21  ;;  %4375 = vmatprep.subr.mxu1 %v982_v25  ;;  %v5917_v21 = vld [vmem:[#allocation9 + $0x8] sm:$0xff] }
 0x2f9   : > { %1067 = vmatpush1.msra.mxu0 %v971_v22  ;;  %4376 = vmatpush3.msra.mxu1 %v982_v25  ;;  %v5921_v22 = vld [vmem:[#allocation9] sm:$0xff] }
 0x2fa   : > { %1101 = vmatmul.mubr.f32.vlgmr.msra.gmra.mxu0 %v5712_v57  ;;  %4391 = vmatprep.subr.mxu0 %v5331_v47 }
 0x2fb   : > { %1106 = vmatprep.mubr.f32.mxu0 %v5331_v47  ;;  %4377 = vmatprep.subr.mxu1 %v979_v26 }
 0x2fc   : > { %4378 = vmatpush3.msra.mxu1 %v979_v26 }
 0x2fd   : > { %4379 = vmatprep.subr.mxu1 %v976_v27 }
 0x2fe   : > { %4380 = vmatpush3.msra.mxu1 %v976_v27  ;;  %1107 = vmatmul.mubr.f32.gmra.mxu0 %v970_v29 }
 0x2ff   : > { %4381 = vmatprep.subr.mxu1 %v973_v28  ;;  %4393 = vmatprep.mubr.msk.f32.mxu0 %vm5332_vm1, %v5331_v47 }
 0x300   : > { %4382 = vmatpush3.msra.mxu1 %v973_v28 }
 0x301   : > { %4384 = vmatmul.mubr.f32.vlgmr.msra.gmra.mxu1 %v970_v29  ;;  %4386 = vmatprep.subr.mxu1 %v5331_v47 }
 0x302   : > { %4388 = vmatprep.mubr.msk.f32.mxu1 %vm5332_vm1, %v5331_v47 }
 0x3ba   : > { %v1102_v36 = vpop.f32.mrf.mxu0 }
 0x3bb   : > { %v5848_v40 = vadd.f32 %v1102_v36, %v5838_v37 }
 0x3bc   : > { %v1104_v38 = vpop.f32.mrf.mxu0 }
 0x3bd   : > { %v5841_v39 = vadd.f32 %v1104_v38, %v5834_v35 }
 0x3be   : > { %v5927_v23 = vpop.f32.mrf.mxu0 }
 0x3bf   : > { %1365 = vrot.lane.b32.xlu0 %v5841_v39, %s5333_s23  ;;  %4387 = vmatpush3.xpose.msk.msra.mxu1 %vm1189_vm2, %v5841_v39 }
 0x3c0   : > { %4396 = vmatprep.subr.mxu1 %v5331_v47  ;;  %v5929_v24 = vpop.f32.mrf.mxu0 }
 0x3c1   : > { %v4385_v43 = vpop.f32.mrf.mxu1 }
 0x3c2   : > { %4389 = vmatmul.mubr.msk.f32.vlgmr.msra.gmra.mxu1 %vm1189_vm2, %v5848_v40  ;;  %v5858_v44 = vadd.f32 %v4385_v43, %v1032_v42 }
 0x3c3   : > { %1363 = vrot.lane.b32.xlu0 %v5848_v40, %s5333_s23  ;;  %4398 = vmatprep.mubr.msk.f32.mxu1 %vm5332_vm1, %v5331_v47  ;;  %v1179_v45 = vpop.f32.mrf.mxu1 }
 0x3c4   : > { %v5860_v46 = vadd.f32 %v1179_v45, %v1032_v42 }
 0x3c6   : > { %4392 = vmatpush3.msra.mxu0 %v5860_v46 }
 0x3c7   : > { %4401 = vmatprep.subr.mxu0 %v5331_v47 }
 0x431   : > { %v1366_v48 = vpop.permute.xlu0 %1365 }
 0x432   : > { %4397 = vmatpush3.xpose.msk.msra.mxu1 %vm1189_vm2, %v1366_v48 }
 0x433   : > { %4406 = vmatprep.subr.mxu1 %v5331_v47 }
 0x435   : > { %v1364_v49 = vpop.permute.xlu0 %1363 }
 0x436   : > { %4399 = vmatmul.mubr.msk.f32.vlgmr.msra.gmra.mxu1 %vm1189_vm2, %v1364_v49 }
 0x437   : > { %4414 = vmatprep.mubr.msk.f32.mxu1 %vm5332_vm1, %v5331_v47  ;;  %4407 = vmatpush3.msra.mxu1 %v5891_v11 }
 0x438   : > { %4408 = vmatprep.subr.mxu1 %v5331_v47 }
 0x439   : > { %4409 = vmatpush3.msra.mxu1 %v5893_v12 }
 0x43a   : > { %4410 = vmatprep.subr.mxu1 %v5331_v47 }
 0x43b   : > { %4411 = vmatpush3.msra.mxu1 %v5897_v13 }
 0x43c   : > { %4412 = vmatprep.subr.mxu1 %v5331_v47 }
 0x43d   : > { %4413 = vmatpush3.msra.mxu1 %v5901_v14 }
 0x43e   : > { %4428 = vmatprep.subr.mxu1 %v5331_v47 }
 0x482   : > { %v1262_v50 = vpop.f32.mrf.mxu1 }
 0x483   : > { %v1266_v52 = vmul.f32 0.17677669, %v1262_v50 }
 0x484   : > { %v4390_v53 = vpop.f32.mrf.mxu1 }
 0x485   : > { %v1273_v54 = vadd.f32 %v5872_v51, %v1266_v52 }
 0x487   : > { %v1275_v55 = vsel %vm1274_vm3, %v1273_v54, -inf }
 0x488   : > { %1276 = vmax.xlane.f32.xlu1 %v1275_v55 }
 0x4f6   : > { %v1437_v56 = vpop.f32.mrf.mxu1 }
 0x4f7   : > { %v1441_v58 = vmul.f32 0.17677669, %v1437_v56 }
 0x4f8   : > { %v4400_v59 = vpop.f32.mrf.mxu1 }
 0x4f9   : > { %v1442_v60 = vadd.f32 %v5872_v51, %v1441_v58  ;;  %v5954_v58 = vld [vmem:[#allocation9 + $0x58] sm:$0xff]  ;;  %v5956_v59 = vld [vmem:[#allocation9 + $0x50] sm:$0xff] }
 0x4fb   : > { %v1443_v61 = vsel %vm1274_vm3, %v1442_v60, -inf }
 0x4fc   : > { %1444 = vmax.xlane.f32.xlu1 %v1443_v61 }
 0x511   : > { %v1277_v62 = vpop.xlane.xlu1 %1276 }
 0x512   : > { %v1278_v63 = vsub.f32 %v1273_v54, %v1277_v62 }
 0x514   : > { %v1279_v0 = vmul.f32 1.442695, %v1278_v63 }
 0x516   : > { %4853 = vpow2.f32 %v1279_v0  ;;  %v5974_v0 = vld [vmem:[#allocation9 + $0x40] sm:$0xff] }
 0x523   : > { %v4854_v1 = vpop.eup %4853 }
 0x524   : > { %v1281_v2 = vsel %vm1274_vm3, %v4854_v1, 0.0 }
 0x525   : > { %1282 = vadd.xlane.f32.xlu0 %v1281_v2 }
 0x53b   : > { %1772 = vrot.lane.b32.xlu0 %v5860_v46, %s5334_s4 }
 0x585   : > { %v1445_v3 = vpop.xlane.xlu1 %1444 }
 0x586   : > { %v1446_v4 = vsub.f32 %v1442_v60, %v1445_v3  ;;  %v5960_v60 = vld [vmem:[#allocation9 + $0x48] sm:$0xff] }
 0x588   : > { %v1447_v5 = vmul.f32 1.442695, %v1446_v4 }
 0x58a   : > { %4855 = vpow2.f32 %v1447_v5 }
 0x597   : > { %v4856_v6 = vpop.eup %4855 }
 0x598   : > { %v1449_v7 = vsel %vm1274_vm3, %v4856_v6, 0.0 }
 0x599   : > { %1450 = vadd.xlane.f32.xlu1 %v1449_v7 }
 0x5aa   : > { %1455 = vrot.lane.b32.xlu1 %v5860_v46, %s5333_s23 }
 0x5ae   : > { %v1283_v8 = vpop.xlane.xlu0 %1282  ;;  %1683 = vrot.lane.b32.xlu1 %v5841_v39, %s5334_s4 }
 0x5af   : > { %4857 = vrcp.f32 %v1283_v8 }
 0x5b2   : > { %1681 = vrot.lane.b32.xlu1 %v5848_v40, %s5334_s4  ;;  %v1773_v26 = vpop.permute.xlu0 %1772 }
 0x5bc   : > { %v4858_v9 = vpop.eup %4857 }
 0x5bd   : > { %v1285_v10 = vmul.f32 %v4858_v9, %v4854_v1 }
 0x5bf   : > { %4394 = vmatmul.mubr.msk.f32.vlgmr.msra.gmra.mxu0 %vm1274_vm3, %v1285_v10 }
 0x5c0   : > { %4403 = vmatprep.mubr.msk.f32.mxu0 %vm5332_vm1, %v5331_v47 }
 0x622   : > { %v1451_v15 = vpop.xlane.xlu1 %1450 }
 0x623   : > { %4859 = vrcp.f32 %v1451_v15 }
 0x626   : > { %v1456_v16 = vpop.permute.xlu1 %1455 }
 0x627   : > { %4402 = vmatpush3.msra.mxu0 %v1456_v16 }
 0x628   : > { %4417 = vmatprep.subr.mxu0 %v5331_v47 }
 0x62a   : > { %v1684_v28 = vpop.permute.xlu1 %1683 }
 0x62e   : > { %v1682_v33 = vpop.permute.xlu1 %1681 }
 0x630   : > { %v4860_v17 = vpop.eup %4859 }
 0x631   : > { %v1453_v18 = vmul.f32 %v4860_v17, %v4856_v6  ;;  %v5988_v17 = vadd.f32 %v5929_v24, %v5834_v35  ;;  %v6002_v35 = vld [vmem:[#allocation9 + $0x70] sm:$0xff]  ;;  %v6006_v24 = vld [vmem:[#allocation9 + $0x68] sm:$0xff] }
 0x633   : > { %4404 = vmatmul.mubr.msk.f32.vlgmr.msra.gmra.mxu0 %vm1274_vm3, %v1453_v18 }
 0x634   : > { %4418 = vmatpush3.msra.mxu0 %v5908_v19  ;;  %4425 = vmatprep.mubr.msk.f32.mxu0 %vm5332_vm1, %v5331_v47 }
 0x635   : > { %4419 = vmatprep.subr.mxu0 %v5331_v47 }
 0x636   : > { %4420 = vmatpush3.msra.mxu0 %v5911_v20 }
 0x637   : > { %4421 = vmatprep.subr.mxu0 %v5331_v47 }
 0x638   : > { %4422 = vmatpush3.msra.mxu0 %v5917_v21 }
 0x639   : > { %4423 = vmatprep.subr.mxu0 %v5331_v47 }
 0x63a   : > { %4424 = vmatpush3.msra.mxu0 %v5921_v22 }
 0x63b   : > { %4433 = vmatprep.subr.mxu0 %v5331_v47 }
 0x67f   : > { %v1355_v25 = vpop.f32.mrf.mxu0 }
 0x680   : > { %4426 = vmatmul.mubr.msk.f32.vlgmr.msra.gmra.mxu0 %vm1189_vm2, %v1355_v25 }
 0x681   : > { %4434 = vmatpush3.msra.mxu0 %v1773_v26  ;;  %v4395_v27 = vpop.f32.mrf.mxu0  ;;  %4435 = vmatprep.mubr.msk.f32.mxu0 %vm5332_vm1, %v5331_v47 }
 0x682   : > { %4449 = vmatprep.subr.mxu0 %v5331_v47  ;;  %v6000_v27 = vld [vmem:[#allocation9 + $0x78] sm:$0xff] }
 0x6f3   : > { %v1527_v29 = vpop.f32.mrf.mxu0 }
 0x6f4   : > { %4415 = vmatmul.mubr.msk.f32.vlgmr.msra.gmra.mxu1 %vm1189_vm2, %v1527_v29 }
 0x6f5   : > { %4429 = vmatpush3.xpose.msk.msra.mxu1 %vm1189_vm2, %v1684_v28  ;;  %v4405_v30 = vpop.f32.mrf.mxu0  ;;  %4430 = vmatprep.mubr.msk.f32.mxu1 %vm5332_vm1, %v5331_v47 }
 0x6f6   : > { %4438 = vmatprep.subr.mxu1 %v5331_v47 }
 0x6f8   : > { %4431 = vmatmul.mubr.msk.f32.vlgmr.msra.gmra.mxu1 %vm1189_vm2, %v1682_v33 }
 0x6f9   : > { %4446 = vmatprep.mubr.msk.f32.mxu1 %vm5332_vm1, %v5331_v47  ;;  %4439 = vmatpush3.msra.mxu1 %v5954_v58 }
 0x6fa   : > { %4440 = vmatprep.subr.mxu1 %v5331_v47 }
 0x6fb   : > { %4441 = vmatpush3.msra.mxu1 %v5956_v59 }
 0x6fc   : > { %4442 = vmatprep.subr.mxu1 %v5331_v47 }
 0x6fd   : > { %4443 = vmatpush3.msra.mxu1 %v5960_v60 }
 0x6fe   : > { %4444 = vmatprep.subr.mxu1 %v5331_v47 }
 0x6ff   : > { %4445 = vmatpush3.msra.mxu1 %v5974_v0 }
 0x700   : > { %4459 = vmatprep.subr.mxu1 %v5331_v47 }
 0x740   : > { %v5943_v36 = vpop.f32.mrf.mxu0 }
 0x742   : > { %v4427_v38 = vpop.f32.mrf.mxu0 }
 0x7b4   : > { %v5945_v41 = vpop.f32.mrf.mxu1 }
 0x7b5   : > { %v1678_v18 = vadd.f32 %v5943_v36, %v5945_v41 }
 0x7b6   : > { %v4416_v42 = vpop.f32.mrf.mxu1 }
 0x7b8   : > { %v1755_v43 = vpop.f32.mrf.mxu1 }
 0x7b9   : > { %v1759_v45 = vmul.f32 0.17677669, %v1755_v43  ;;  %v6037_v43 = vld [vmem:[%s6540_s27 + $0x1] ss:$0 sm:$0xff] }
 0x7ba   : > { %v4432_v48 = vpop.f32.mrf.mxu1 }
 0x7bb   : > { %v1760_v49 = vadd.f32 %v5872_v51, %v1759_v45 }
 0x7bd   : > { %v1761_v50 = vsel %vm1274_vm3, %v1760_v49, -inf }
 0x7be   : > { %1762 = vmax.xlane.f32.xlu1 %v1761_v50 }
 0x847   : > { %v1763_v52 = vpop.xlane.xlu1 %1762 }
 0x848   : > { %v1764_v53 = vsub.f32 %v1760_v49, %v1763_v52 }
 0x84a   : > { %v1765_v54 = vmul.f32 1.442695, %v1764_v53 }
 0x84c   : > { %4861 = vpow2.f32 %v1765_v54 }
 0x859   : > { %v4862_v55 = vpop.eup %4861 }
 0x85a   : > { %v1767_v56 = vsel %vm1274_vm3, %v4862_v55, 0.0 }
 0x85b   : > { %1768 = vadd.xlane.f32.xlu0 %v1767_v56 }
 0x871   : > { %1928 = vrot.lane.b32.xlu0 %v5841_v39, %s5335_s25 }
 0x875   : > { %1926 = vrot.lane.b32.xlu0 %v5848_v40, %s5335_s25 }
 0x8e4   : > { %v1769_v39 = vpop.xlane.xlu0 %1768 }
 0x8e5   : > { %4863 = vrcp.f32 %v1769_v39 }
 0x8e8   : > { %v1929_v61 = vpop.permute.xlu0 %1928 }
 0x8ec   : > { %v1927_v63 = vpop.permute.xlu0 %1926 }
 0x8f2   : > { %v4864_v40 = vpop.eup %4863 }
 0x8f3   : > { %v1771_v62 = vmul.f32 %v4864_v40, %v4862_v55 }
 0x8f5   : > { %4436 = vmatmul.mubr.msk.f32.vlgmr.msra.gmra.mxu0 %vm1274_vm3, %v1771_v62 }
 0x8f6   : > { %4450 = vmatpush3.xpose.msk.msra.mxu0 %vm1189_vm2, %v1929_v61  ;;  %4451 = vmatprep.mubr.msk.f32.mxu0 %vm5332_vm1, %v5331_v47 }
 0x8f7   : > { %4454 = vmatprep.subr.mxu0 %v5331_v47 }
 0x8f9   : > { %4452 = vmatmul.mubr.msk.f32.vlgmr.msra.gmra.mxu0 %vm1189_vm2, %v1927_v63 }
 0x8fa   : > { %4456 = vmatprep.mubr.msk.f32.mxu0 %vm5332_vm1, %v5331_v47 }
 0x9b5   : > { %v1844_v1 = vpop.f32.mrf.mxu0 }
 0x9b6   : > { %4447 = vmatmul.mubr.msk.f32.vlgmr.msra.gmra.mxu1 %vm1189_vm2, %v1844_v1 }
 0x9b7   : > { %v4437_v2 = vpop.f32.mrf.mxu0  ;;  %4467 = vmatprep.mubr.msk.f32.mxu1 %vm5332_vm1, %v5331_v47  ;;  %4460 = vmatpush3.msra.mxu1 %v6000_v27 }
 0x9b8   : > { %4461 = vmatprep.subr.mxu1 %v5331_v47 }
 0x9b9   : > { %v2000_v3 = vpop.f32.mrf.mxu0  ;;  %4462 = vmatpush3.msra.mxu1 %v6002_v35 }
 0x9ba   : > { %v2004_v4 = vmul.f32 0.17677669, %v2000_v3  ;;  %4463 = vmatprep.subr.mxu1 %v5331_v47 }
 0x9bb   : > { %v4453_v5 = vpop.f32.mrf.mxu0  ;;  %4464 = vmatpush3.msra.mxu1 %v6006_v24 }
 0x9bc   : > { %v2005_v6 = vadd.f32 %v5872_v51, %v2004_v4  ;;  %v5994_v51 = vadd.f32 %v5927_v23, %v5838_v37  ;;  %v6010_v37 = vld [vmem:[#allocation9 + $0x60] sm:$0xff]  ;;  %4465 = vmatprep.subr.mxu1 %v5331_v47 }
 0x9bd   : > { %4466 = vmatpush3.msra.mxu1 %v6010_v37 }
 0x9be   : > { %v2006_v7 = vsel %vm1274_vm3, %v2005_v6, -inf  ;;  %4480 = vmatprep.subr.mxu1 %v5331_v47 }
 0x9bf   : > { %2007 = vmax.xlane.f32.xlu0 %v2006_v7 }
 0xa48   : > { %v2008_v8 = vpop.xlane.xlu0 %2007 }
 0xa49   : > { %v2009_v9 = vsub.f32 %v2005_v6, %v2008_v8 }
 0xa4b   : > { %v2010_v10 = vmul.f32 1.442695, %v2009_v9 }
 0xa4d   : > { %4865 = vpow2.f32 %v2010_v10 }
 0xa5a   : > { %v4866_v15 = vpop.eup %4865 }
 0xa5b   : > { %v2012_v16 = vsel %vm1274_vm3, %v4866_v15, 0.0 }
 0xa5c   : > { %2013 = vadd.xlane.f32.xlu1 %v2012_v16 }
 0xa6d   : > { %2017 = vrot.lane.b32.xlu1 %v5860_v46, %s5335_s25 }
 0xa71   : > { %2343 = vrot.lane.b32.xlu1 %v5988_v17, %s5333_s23 }
 0xa75   : > { %2341 = vrot.lane.b32.xlu1 %v5994_v51, %s5333_s23 }
 0xa76   : > { %v1921_v25 = vpop.f32.mrf.mxu1 }
 0xa77   : > { %v1925_v26 = vadd.f32 %v1921_v25, %v1678_v18 }
 0xa78   : > { %v4448_v46 = vpop.f32.mrf.mxu1 }
 0xae5   : > { %v2014_v23 = vpop.xlane.xlu1 %2013 }
 0xae6   : > { %4867 = vrcp.f32 %v2014_v23 }
 0xae9   : > { %v2018_v28 = vpop.permute.xlu1 %2017 }
 0xaea   : > { %4455 = vmatpush3.msra.mxu0 %v2018_v28 }
 0xaeb   : > { %4470 = vmatprep.subr.mxu0 %v5331_v47 }
 0xaed   : > { %v2344_v33 = vpop.permute.xlu1 %2343 }
 0xaf1   : > { %v2342_v41 = vpop.permute.xlu1 %2341 }
 0xaf3   : > { %v4868_v29 = vpop.eup %4867 }
 0xaf4   : > { %v2016_v30 = vmul.f32 %v4868_v29, %v4866_v15 }
 0xaf6   : > { %4457 = vmatmul.mubr.msk.f32.vlgmr.msra.gmra.mxu0 %vm1274_vm3, %v2016_v30 }
 0xaf7   : > { %4471 = vmatpush3.xpose.msk.msra.mxu0 %vm1189_vm2, %v5988_v17  ;;  %4472 = vmatprep.mubr.msk.f32.mxu0 %vm5332_vm1, %v5331_v47 }
 0xaf8   : > { %4475 = vmatprep.subr.mxu0 %v5331_v47 }
 0xafa   : > { %4473 = vmatmul.mubr.msk.f32.vlgmr.msra.gmra.mxu0 %vm1189_vm2, %v5994_v51 }
 0xafb   : > { %4476 = vmatpush3.msra.mxu0 %v5858_v44  ;;  %4477 = vmatprep.mubr.msk.f32.mxu0 %vm5332_vm1, %v5331_v47 }
 0xafc   : > { %4485 = vmatprep.subr.mxu0 %v5331_v47 }
 0xbb6   : > { %v2089_v36 = vpop.f32.mrf.mxu0 }
 0xbb7   : > { %4468 = vmatmul.mubr.msk.f32.vlgmr.msra.gmra.mxu1 %vm1189_vm2, %v2089_v36 }
 0xbb8   : > { %4481 = vmatpush3.xpose.msk.msra.mxu1 %vm1189_vm2, %v2344_v33  ;;  %v4458_v38 = vpop.f32.mrf.mxu0  ;;  %4482 = vmatprep.mubr.msk.f32.mxu1 %vm5332_vm1, %v5331_v47 }
 0xbb9   : > { %4490 = vmatprep.subr.mxu1 %v5331_v47 }
 0xbba   : > { %v2245_v42 = vpop.f32.mrf.mxu0 }
 0xbbb   : > { %v2249_v45 = vmul.f32 0.17677669, %v2245_v42  ;;  %4483 = vmatmul.mubr.msk.f32.vlgmr.msra.gmra.mxu1 %vm1189_vm2, %v2342_v41 }
 0xbbc   : > { %v4474_v48 = vpop.f32.mrf.mxu0  ;;  %4491 = vmatpush3.msra.mxu1 %v5891_v11  ;;  %4498 = vmatprep.mubr.msk.f32.mxu1 %vm5332_vm1, %v5331_v47 }
 0xbbd   : > { %v2256_v49 = vadd.f32 %v6037_v43, %v2249_v45  ;;  %4492 = vmatprep.subr.mxu1 %v5331_v47 }
 0xbbe   : > { %4493 = vmatpush3.msra.mxu1 %v5893_v12 }
 0xbbf   : > { %v2257_v50 = vsel %vm1274_vm3, %v2256_v49, -inf  ;;  %4494 = vmatprep.subr.mxu1 %v5331_v47 }
 0xbc0   : > { %2258 = vmax.xlane.f32.xlu1 %v2257_v50  ;;  %4495 = vmatpush3.msra.mxu1 %v5897_v13 }
 0xbc1   : > { %4496 = vmatprep.subr.mxu1 %v5331_v47 }
 0xbc2   : > { %4497 = vmatpush3.msra.mxu1 %v5901_v14 }
 0xbc3   : > { %4512 = vmatprep.subr.mxu1 %v5331_v47 }
 0xbd1   : > { %2655 = vrot.lane.b32.xlu1 %v5994_v51, %s5334_s4 }
 0xc49   : > { %v2259_v11 = vpop.xlane.xlu1 %2258 }
 0xc4a   : > { %v2260_v52 = vsub.f32 %v2256_v49, %v2259_v11 }
 0xc4c   : > { %v2261_v53 = vmul.f32 1.442695, %v2260_v52 }
 0xc4e   : > { %4869 = vpow2.f32 %v2261_v53 }
 0xc5b   : > { %v4870_v61 = vpop.eup %4869 }
 0xc5c   : > { %v2263_v62 = vsel %vm1274_vm3, %v4870_v61, 0.0 }
 0xc77   : > { %v2166_v12 = vpop.f32.mrf.mxu1 }
 0xc78   : > { %v6054_v54 = vadd.f32 %v2166_v12, %v1925_v26 }
 0xc79   : > { %v4469_v55 = vpop.f32.mrf.mxu1 }
 0xc7b   : > { %v2415_v56 = vpop.f32.mrf.mxu1 }
 0xc7c   : > { %v2419_v39 = vmul.f32 0.17677669, %v2415_v56 }
 0xc7d   : > { %v4484_v13 = vpop.f32.mrf.mxu1 }
 0xc7e   : > { %v2420_v40 = vadd.f32 %v6037_v43, %v2419_v39 }
 0xc80   : > { %v2421_v14 = vsel %vm1274_vm3, %v2420_v40, -inf }
 0xc81   : > { %2422 = vmax.xlane.f32.xlu0 %v2421_v14 }
 0xc85   : > { %2264 = vadd.xlane.f32.xlu0 %v2263_v62 }
 0xd0a   : > { %v2423_v63 = vpop.xlane.xlu0 %2422 }
 0xd0b   : > { %v2424_v1 = vsub.f32 %v2420_v40, %v2423_v63 }
 0xd0d   : > { %v2425_v2 = vmul.f32 1.442695, %v2424_v1 }
 0xd0e   : > { %v2265_v3 = vpop.xlane.xlu0 %2264 }
 0xd0f   : > { %4871 = vpow2.f32 %v2425_v2 }
 0xd10   : > { %4873 = vrcp.f32 %v2265_v3 }
 0xd1c   : > { %v4872_v4 = vpop.eup %4871 }
 0xd1d   : > { %v4874_v5 = vpop.eup %4873  ;;  %v2427_v6 = vsel %vm1274_vm3, %v4872_v4, 0.0 }
 0xd1e   : > { %2428 = vadd.xlane.f32.xlu0 %v2427_v6  ;;  %v2267_v7 = vmul.f32 %v4874_v5, %v4870_v61  ;;  %v3220_v61 = vld [vmem:[%s6483_s12 + $0xf8] sm:$0xff]  ;;  %v3219_v6 = vld [vmem:[%s6483_s12 + $0xf0] sm:$0xff] }
 0xd20   : > { %4478 = vmatmul.mubr.msk.f32.vlgmr.msra.gmra.mxu0 %vm1274_vm3, %v2267_v7  ;;  %v3218_v7 = vld [vmem:[%s6483_s12 + $0xe8] sm:$0xff] }
 0xd21   : > { %4487 = vmatprep.mubr.msk.f32.mxu0 %vm5332_vm1, %v5331_v47 }
 0xd34   : > { %2433 = vrot.lane.b32.xlu0 %v5858_v44, %s5333_s23 }
 0xd38   : > { %2657 = vrot.lane.b32.xlu0 %v5988_v17, %s5334_s4 }
 0xda7   : > { %v2429_v8 = vpop.xlane.xlu0 %2428 }
 0xda8   : > { %4875 = vrcp.f32 %v2429_v8  ;;  %v3217_v8 = vld [vmem:[%s6483_s12 + $0xe0] sm:$0xff] }
 0xdab   : > { %v2434_v9 = vpop.permute.xlu0 %2433 }
 0xdac   : > { %4486 = vmatpush3.msra.mxu0 %v2434_v9  ;;  %v3216_v9 = vld [vmem:[%s6483_s12 + $0xd8] sm:$0xff] }
 0xdad   : > { %4501 = vmatprep.subr.mxu0 %v5331_v47 }
 0xdaf   : > { %v2658_v25 = vpop.permute.xlu0 %2657 }
 0xdb5   : > { %v4876_v10 = vpop.eup %4875 }
 0xdb6   : > { %v2431_v15 = vmul.f32 %v4876_v10, %v4872_v4  ;;  %v3215_v10 = vld [vmem:[%s6483_s12 + $0xd0] sm:$0xff] }
 0xdb8   : > { %4488 = vmatmul.mubr.msk.f32.vlgmr.msra.gmra.mxu0 %vm1274_vm3, %v2431_v15  ;;  %v3214_v15 = vld [vmem:[%s6483_s12 + $0xc8] sm:$0xff] }
 0xdb9   : > { %4502 = vmatpush3.msra.mxu0 %v5908_v19  ;;  %4509 = vmatprep.mubr.msk.f32.mxu0 %vm5332_vm1, %v5331_v47 }
 0xdba   : > { %4503 = vmatprep.subr.mxu0 %v5331_v47 }
 0xdbb   : > { %4504 = vmatpush3.msra.mxu0 %v5911_v20 }
 0xdbc   : > { %4505 = vmatprep.subr.mxu0 %v5331_v47 }
 0xdbd   : > { %4506 = vmatpush3.msra.mxu0 %v5917_v21  ;;  %v2656_v21 = vpop.permute.xlu1 %2655 }
 0xdbe   : > { %4507 = vmatprep.subr.mxu0 %v5331_v47 }
 0xdbf   : > { %4508 = vmatpush3.msra.mxu0 %v5921_v22 }
 0xdc0   : > { %4517 = vmatprep.subr.mxu0 %v5331_v47 }
 0xde0   : > { %v2337_v16 = vpop.f32.mrf.mxu0 }
 0xde1   : > { %4510 = vmatmul.mubr.msk.f32.vlgmr.msra.gmra.mxu0 %vm1189_vm2, %v2337_v16  ;;  %v3213_v16 = vld [vmem:[%s6483_s12 + $0xc0] sm:$0xff] }
 0xde2   : > { %v4479_v19 = vpop.f32.mrf.mxu0  ;;  %4519 = vmatprep.mubr.msk.f32.mxu0 %vm5332_vm1, %v5331_v47 }
 0xde3   : > { %v3212_v19 = vld [vmem:[%s6483_s12 + $0xb8] sm:$0xff] }
 0xe78   : > { %v2505_v18 = vpop.f32.mrf.mxu0 }
 0xe79   : > { %4499 = vmatmul.mubr.msk.f32.vlgmr.msra.gmra.mxu1 %vm1189_vm2, %v2505_v18  ;;  %v3211_v18 = vld [vmem:[%s6483_s12 + $0xb0] sm:$0xff] }
 0xe7a   : > { %4513 = vmatpush3.xpose.msk.msra.mxu1 %vm1189_vm2, %v2658_v25  ;;  %v4489_v20 = vpop.f32.mrf.mxu0  ;;  %4514 = vmatprep.mubr.msk.f32.mxu1 %vm5332_vm1, %v5331_v47  ;;  %v3210_v25 = vld [vmem:[%s6483_s12 + $0xa8] sm:$0xff] }
 0xe7b   : > { %4522 = vmatprep.subr.mxu1 %v5331_v47  ;;  %v3209_v20 = vld [vmem:[%s6483_s12 + $0xa0] sm:$0xff] }
 0xe7d   : > { %4515 = vmatmul.mubr.msk.f32.vlgmr.msra.gmra.mxu1 %vm1189_vm2, %v2656_v21  ;;  %v3208_v21 = vld [vmem:[%s6483_s12 + $0x98] sm:$0xff] }
 0xe7e   : > { %4523 = vmatpush3.msra.mxu1 %v5954_v58  ;;  %4530 = vmatprep.mubr.msk.f32.mxu1 %vm5332_vm1, %v5331_v47 }
 0xe7f   : > { %4524 = vmatprep.subr.mxu1 %v5331_v47 }
 0xe80   : > { %4525 = vmatpush3.msra.mxu1 %v5956_v59 }
 0xe81   : > { %4526 = vmatprep.subr.mxu1 %v5331_v47 }
 0xe82   : > { %4527 = vmatpush3.msra.mxu1 %v5960_v60 }
 0xe83   : > { %4528 = vmatprep.subr.mxu1 %v5331_v47 }
 0xe84   : > { %4529 = vmatpush3.msra.mxu1 %v5974_v0 }
 0xe85   : > { %4543 = vmatprep.subr.mxu1 %v5331_v47 }
 0xea1   : > { %v6098_v22 = vpop.f32.mrf.mxu0 }
 0xea3   : > { %v4511_v58 = vpop.f32.mrf.mxu0 }
 0xea4   : > { %v3206_v58 = vld [vmem:[%s6483_s12 + $0x88] sm:$0xff] }
 0xf39   : > { %v6100_v26 = vpop.f32.mrf.mxu1 }
 0xf3a   : > { %v2652_v40 = vadd.f32 %v6098_v22, %v6100_v26  ;;  %v3207_v22 = vld [vmem:[%s6483_s12 + $0x90] sm:$0xff]  ;;  %v3205_v26 = vld [vmem:[%s6483_s12 + $0x80] sm:$0xff] }
 0xf3b   : > { %v4500_v46 = vpop.f32.mrf.mxu1 }
 0xf3c   : > { %v3204_v46 = vld [vmem:[%s6483_s12 + $0x78] sm:$0xff] }
 0xf3d   : > { %v2729_v23 = vpop.f32.mrf.mxu1 }
 0xf3e   : > { %v2733_v28 = vmul.f32 0.17677669, %v2729_v23  ;;  %v3203_v23 = vld [vmem:[%s6483_s12 + $0x70] sm:$0xff] }
 0xf3f   : > { %v4516_v29 = vpop.f32.mrf.mxu1 }
 0xf40   : > { %v2734_v59 = vadd.f32 %v6037_v43, %v2733_v28  ;;  %v3202_v28 = vld [vmem:[%s6483_s12 + $0x68] sm:$0xff]  ;;  %v3201_v29 = vld [vmem:[%s6483_s12 + $0x60] sm:$0xff] }
 0xf42   : > { %v2735_v30 = vsel %vm1274_vm3, %v2734_v59, -inf }
 0xf43   : > { %2736 = vmax.xlane.f32.xlu0 %v2735_v30  ;;  %v3199_v30 = vld [vmem:[%s6483_s12 + $0x50] sm:$0xff] }
 0xf59   : > { %2746 = vrot.lane.b32.xlu0 %v5858_v44, %s5334_s4 }
 0xf5d   : > { %2896 = vrot.lane.b32.xlu0 %v5994_v51, %s5335_s25 }
 0xfcc   : > { %v2737_v60 = vpop.xlane.xlu0 %2736 }
 0xfcd   : > { %v2738_v0 = vsub.f32 %v2734_v59, %v2737_v60  ;;  %v3200_v59 = vld [vmem:[%s6483_s12 + $0x58] sm:$0xff]  ;;  %v3198_v60 = vld [vmem:[%s6483_s12 + $0x48] sm:$0xff] }
 0xfcf   : > { %v2739_v33 = vmul.f32 1.442695, %v2738_v0  ;;  %v3197_v0 = vld [vmem:[%s6483_s12 + $0x40] sm:$0xff] }
 0xfd0   : > { %v2747_v36 = vpop.permute.xlu0 %2746 }
 0xfd1   : > { %4877 = vpow2.f32 %v2739_v33  ;;  %4518 = vmatpush3.msra.mxu0 %v2747_v36  ;;  %v3196_v33 = vld [vmem:[%s6483_s12 + $0x38] sm:$0xff]  ;;  %v3195_v36 = vld [vmem:[%s6483_s12 + $0x30] sm:$0xff] }
 0xfd2   : > { %4533 = vmatprep.subr.mxu0 %v5331_v47 }
 0xfd4   : > { %v2897_v49 = vpop.permute.xlu0 %2896 }
 0xfde   : > { %v4878_v38 = vpop.eup %4877 }
 0xfdf   : > { %v2741_v41 = vsel %vm1274_vm3, %v4878_v38, 0.0 }
 0xfe0   : > { %2742 = vadd.xlane.f32.xlu1 %v2741_v41  ;;  %v3193_v41 = vld [vmem:[%s6483_s12 + $0x20] sm:$0xff] }
 0xff1   : > { %2898 = vrot.lane.b32.xlu1 %v5988_v17, %s5335_s25 }
0x1069   : > { %v2743_v42 = vpop.xlane.xlu1 %2742 }
0x106a   : > { %4879 = vrcp.f32 %v2743_v42  ;;  %v3192_v42 = vld [vmem:[%s6483_s12 + $0x18] sm:$0xff] }
0x106d   : > { %v2899_v51 = vpop.permute.xlu1 %2898 }
0x1077   : > { %v4880_v45 = vpop.eup %4879 }
0x1078   : > { %v2745_v48 = vmul.f32 %v4880_v45, %v4878_v38  ;;  %v3194_v38 = vld [vmem:[%s6483_s12 + $0x28] sm:$0xff]  ;;  %v3191_v45 = vld [vmem:[%s6483_s12 + $0x10] sm:$0xff] }
0x107a   : > { %4520 = vmatmul.mubr.msk.f32.vlgmr.msra.gmra.mxu0 %vm1274_vm3, %v2745_v48  ;;  %v3190_v48 = vld [vmem:[%s6483_s12 + $0x8] sm:$0xff] }
0x107b   : > { %4534 = vmatpush3.xpose.msk.msra.mxu0 %vm1189_vm2, %v2899_v51  ;;  %4535 = vmatprep.mubr.msk.f32.mxu0 %vm5332_vm1, %v5331_v47  ;;  %v3189_v51 = vld [vmem:[%s6483_s12] sm:$0xff] }
0x107c   : > { %4538 = vmatprep.subr.mxu0 %v5331_v47 }
0x107e   : > { %4536 = vmatmul.mubr.msk.f32.vlgmr.msra.gmra.mxu0 %vm1189_vm2, %v2897_v49 }
0x107f   : > { %4540 = vmatprep.mubr.msk.f32.mxu0 %vm5332_vm1, %v5331_v47 }
0x113a   : > { %v2818_v17 = vpop.f32.mrf.mxu0 }
0x113b   : > { %4531 = vmatmul.mubr.msk.f32.vlgmr.msra.gmra.mxu1 %vm1189_vm2, %v2818_v17 }
0x113c   : > { %v4521_v50 = vpop.f32.mrf.mxu0  ;;  %4544 = vmatpush3.msra.mxu1 %v6000_v27  ;;  %4551 = vmatprep.mubr.msk.f32.mxu1 %vm5332_vm1, %v5331_v47 }
0x113d   : > { %4545 = vmatprep.subr.mxu1 %v5331_v47 }
0x113e   : > { %v2970_v11 = vpop.f32.mrf.mxu0  ;;  %4546 = vmatpush3.msra.mxu1 %v6002_v35 }
0x113f   : > { %v2974_v52 = vmul.f32 0.17677669, %v2970_v11  ;;  %4547 = vmatprep.subr.mxu1 %v5331_v47 }
0x1140   : > { %v4537_v53 = vpop.f32.mrf.mxu0  ;;  %4548 = vmatpush3.msra.mxu1 %v6006_v24  ;;  %v6137_v24 = vld [vmem:[%s6480_s9] ss:$0 sm:$0xff] }
0x1141   : > { %v2975_v12 = vadd.f32 %v6037_v43, %v2974_v52  ;;  %4549 = vmatprep.subr.mxu1 %v5331_v47  ;;  %v6249_v52 = vld [vmem:[#allocation11] ss:$0 sm:$0xff] }
0x1142   : > { %4550 = vmatpush3.msra.mxu1 %v6010_v37  ;;  %v3144_v37 = vadd.f32 %v6137_v24, %v6054_v54 }
0x1143   : > { %v2976_v27 = vsel %vm1274_vm3, %v2975_v12, -inf }
0x1144   : > { %2977 = vmax.xlane.f32.xlu0 %v2976_v27 }
0x115a   : > { %2987 = vrot.lane.b32.xlu0 %v5858_v44, %s5335_s25  ;;  %v3146_v44 = vadd.f32 %v3144_v37, %v5712_v57  ;;  %v3376_v37 = vld [vmem:[#allocation14 + $0xf0] sm:$0xff] }
0x11cd   : > { %v2978_v55 = vpop.xlane.xlu0 %2977 }
0x11ce   : > { %v2979_v35 = vsub.f32 %v2975_v12, %v2978_v55  ;;  %v6255_v12 = vld [vmem:[%s6482_s11] ss:$0 sm:$0xff] }
0x11d0   : > { %v2980_v56 = vmul.f32 1.442695, %v2979_v35 }
0x11d1   : > { %v2988_v39 = vpop.permute.xlu0 %2987 }
0x11d2   : > { %4881 = vpow2.f32 %v2980_v56  ;;  %4539 = vmatpush3.msra.mxu0 %v2988_v39  ;;  %v3377_v39 = vld [vmem:[#allocation14 + $0xf8] sm:$0xff] }
0x11d3   : > { %3233 = vmatprep.subr.mxu0 %v3220_v61  ;;  %4226 = vmatprep.subr.mxu1 %v3377_v39  ;;  %v3358_v61 = vld [vmem:[#allocation14 + $0x60] sm:$0xff] }
0x11df   : > { %v4882_v43 = vpop.eup %4881 }
0x11e0   : > { %v2982_v13 = vsel %vm1274_vm3, %v4882_v43, 0.0 }
0x11e1   : > { %2983 = vadd.xlane.f32.xlu1 %v2982_v13  ;;  %v3360_v13 = vld [vmem:[#allocation14 + $0x70] sm:$0xff] }
0x11e5   : > { %3150 = vadd.xlane.f32.xlu1 %v3146_v44 }
0x11fb   : > { %v2891_v14 = vpop.f32.mrf.mxu1 }
0x11fc   : > { %v6148_v62 = vadd.f32 %v2891_v14, %v2652_v40  ;;  %v3359_v40 = vld [vmem:[#allocation14 + $0x68] sm:$0xff]  ;;  %v3374_v14 = vld [vmem:[#allocation14 + $0xe0] sm:$0xff] }
0x11fd   : > { %v4532_v63 = vpop.f32.mrf.mxu1 }
0x11fe   : > { %v3357_v63 = vld [vmem:[#allocation14 + $0x58] sm:$0xff] }
0x126a   : > { %v2984_v1 = vpop.xlane.xlu1 %2983 }
0x126b   : > { %4883 = vrcp.f32 %v2984_v1  ;;  %v3372_v1 = vld [vmem:[#allocation14 + $0xd0] sm:$0xff] }
0x126e   : > { %v3151_v54 = vpop.xlane.xlu1 %3150 }
0x126f   : > { %v3155_v2 = vmul.f32 0.0078125, %v3151_v54  ;;  %v3356_v54 = vld [vmem:[#allocation14 + $0x50] sm:$0xff] }
0x1271   : > { %v6150_v3 = vsub.f32 %v3146_v44, %v3155_v2  ;;  %v3375_v44 = vld [vmem:[#allocation14 + $0xe8] sm:$0xff] }
0x1272   : > { %v3371_v2 = vld [vmem:[#allocation14 + $0xc8] sm:$0xff] }
0x1273   : > { %v3159_v57 = vmul.f32 %v6150_v3, %v6150_v3 }
0x1275   : > { %3161 = vadd.xlane.f32.xlu0 %v3159_v57  ;;  %v3370_v57 = vld [vmem:[#allocation14 + $0xc0] sm:$0xff] }
0x1278   : > { %v4884_v4 = vpop.eup %4883 }
0x1279   : > { %v2986_v5 = vmul.f32 %v4884_v4, %v4882_v43  ;;  %v3361_v43 = vld [vmem:[#allocation14 + $0x78] sm:$0xff]  ;;  %v3354_v4 = vld [vmem:[#allocation14 + $0x40] sm:$0xff] }
0x127b   : > { %4541 = vmatmul.mubr.msk.f32.vlgmr.msra.gmra.mxu0 %vm1274_vm3, %v2986_v5  ;;  %v3369_v5 = vld [vmem:[#allocation14 + $0xb8] sm:$0xff] }
0x127c   : > { %3234 = vmatpush1.msra.mxu0 %v3219_v6  ;;  %3297 = vmatprep.mubr.f32.mxu0 %v5331_v47  ;;  %v3353_v6 = vld [vmem:[#allocation14 + $0x38] sm:$0xff] }
0x127d   : > { %3235 = vmatprep.subr.mxu0 %v3218_v7  ;;  %v3368_v7 = vld [vmem:[#allocation14 + $0xb0] sm:$0xff] }
0x127e   : > { %3236 = vmatpush1.msra.mxu0 %v3217_v8  ;;  %v3352_v8 = vld [vmem:[#allocation14 + $0x30] sm:$0xff] }
0x127f   : > { %3237 = vmatprep.subr.mxu0 %v3216_v9  ;;  %v3367_v9 = vld [vmem:[#allocation14 + $0xa8] sm:$0xff] }
0x1280   : > { %3238 = vmatpush1.msra.mxu0 %v3215_v10  ;;  %v3351_v10 = vld [vmem:[#allocation14 + $0x28] sm:$0xff] }
0x1281   : > { %3239 = vmatprep.subr.mxu0 %v3214_v15  ;;  %v3366_v15 = vld [vmem:[#allocation14 + $0xa0] sm:$0xff] }
0x1282   : > { %3240 = vmatpush1.msra.mxu0 %v3213_v16  ;;  %v3350_v16 = vld [vmem:[#allocation14 + $0x20] sm:$0xff] }
0x1283   : > { %3241 = vmatprep.subr.mxu0 %v3212_v19  ;;  %v3365_v19 = vld [vmem:[#allocation14 + $0x98] sm:$0xff] }
0x1284   : > { %3242 = vmatpush1.msra.mxu0 %v3211_v18  ;;  %v3349_v18 = vld [vmem:[#allocation14 + $0x18] sm:$0xff] }
0x1285   : > { %3243 = vmatprep.subr.mxu0 %v3210_v25  ;;  %v3364_v25 = vld [vmem:[#allocation14 + $0x90] sm:$0xff] }
0x1286   : > { %3244 = vmatpush1.msra.mxu0 %v3209_v20  ;;  %v3348_v20 = vld [vmem:[#allocation14 + $0x10] sm:$0xff] }
0x1287   : > { %3245 = vmatprep.subr.mxu0 %v3208_v21  ;;  %v3363_v21 = vld [vmem:[#allocation14 + $0x88] sm:$0xff] }
0x1288   : > { %3246 = vmatpush1.msra.mxu0 %v3207_v22  ;;  %v3347_v22 = vld [vmem:[#allocation14 + $0x8] sm:$0xff] }
0x1289   : > { %3247 = vmatprep.subr.mxu0 %v3206_v58  ;;  %v3362_v58 = vld [vmem:[#allocation14 + $0x80] sm:$0xff] }
0x128a   : > { %3248 = vmatpush1.msra.mxu0 %v3205_v26  ;;  %v3346_v26 = vld [vmem:[#allocation14] sm:$0xff] }
0x128b   : > { %3249 = vmatprep.subr.mxu0 %v3204_v46  ;;  %v3221_v46 = vld [vmem:[#allocation12] sm:$0x3] }
0x128c   : > { %3250 = vmatpush1.msra.mxu0 %v3203_v23  ;;  %v3226_v23 = vrot.slane %v3221_v46, %v1023_v34 }
0x128d   : > { %3251 = vmatprep.subr.mxu0 %v3202_v28  ;;  %v3230_v28 = vrot.slane %v3221_v46, %v1027_v32 }
0x128e   : > { %3252 = vmatpush1.msra.mxu0 %v3201_v29 }
0x128f   : > { %3253 = vmatprep.subr.mxu0 %v3200_v59 }
0x1290   : > { %3254 = vmatpush1.msra.mxu0 %v3199_v30 }
0x1291   : > { %3255 = vmatprep.subr.mxu0 %v3198_v60 }
0x1292   : > { %3256 = vmatpush1.msra.mxu0 %v3197_v0 }
0x1293   : > { %3257 = vmatprep.subr.mxu0 %v3196_v33 }
0x1294   : > { %3258 = vmatpush1.msra.mxu0 %v3195_v36 }
0x1295   : > { %3259 = vmatprep.subr.mxu0 %v3194_v38 }
0x1296   : > { %3260 = vmatpush1.msra.mxu0 %v3193_v41 }
0x1297   : > { %3261 = vmatprep.subr.mxu0 %v3192_v42 }
0x1298   : > { %3262 = vmatpush1.msra.mxu0 %v3191_v45 }
0x1299   : > { %3263 = vmatprep.subr.mxu0 %v3190_v48 }
0x129a   : > { %3264 = vmatpush1.msra.mxu0 %v3189_v51 }
0x12fe   : > { %v3162_v49 = vpop.xlane.xlu0 %3161 }
0x12ff   : > { %v3165_v17 = vmul.f32 0.0078125, %v3162_v49 }
0x1301   : > { %v3167_v50 = vadd.f32 1e-12, %v3165_v17 }
0x1303   : > { %4885 = vrsqrt.f32 %v3167_v50 }
0x1310   : > { %v4886_v11 = vpop.eup %4885 }
0x1311   : > { %v3171_v53 = vmul.f32 %v4886_v11, %v6150_v3  ;;  %v3355_v3 = vld [vmem:[#allocation14 + $0x48] sm:$0xff] }
0x1313   : > { %v3179_v27 = vmul.f32 %v6249_v52, %v3171_v53 }
0x1315   : > { %v6259_v55 = vadd.f32 %v6255_v12, %v3179_v27 }
0x1317   : > { %3298 = vmatmul.mubr.f32.vlgmr.msra.gmra.mxu0 %v6259_v55 }
0x1318   : > { %3303 = vmatprep.mubr.f32.mxu0 %v5331_v47  ;;  %v3373_v47 = vld [vmem:[#allocation14 + $0xd8] sm:$0xff] }
0x133b   : > { %v3059_v35 = vpop.f32.mrf.mxu0 }
0x133c   : > { %4552 = vmatmul.mubr.msk.f32.vlgmr.msra.gmra.mxu1 %vm1189_vm2, %v3059_v35 }
0x133d   : > { %v4542_v56 = vpop.f32.mrf.mxu0  ;;  %4227 = vmatpush3.msra.mxu1 %v3361_v43 }
0x133e   : > { %4228 = vmatprep.subr.mxu1 %v3376_v37  ;;  %v4901_v37 = vld [vmem:[#allocation2 + $0x8] sm:$0xff] }
0x133f   : > { %4229 = vmatpush3.msra.mxu1 %v3360_v13 }
0x1340   : > { %4230 = vmatprep.subr.mxu1 %v3375_v44 }
0x1341   : > { %4231 = vmatpush3.msra.mxu1 %v3359_v40 }
0x1342   : > { %4232 = vmatprep.subr.mxu1 %v3374_v14 }
0x1343   : > { %4233 = vmatpush3.msra.mxu1 %v3358_v61 }
0x1344   : > { %4234 = vmatprep.subr.mxu1 %v3373_v47 }
0x1345   : > { %4235 = vmatpush3.msra.mxu1 %v3357_v63  ;;  %v4118_v63 = vld [vmem:[#allocation15] ss:$0 sm:$0xff] }
0x1346   : > { %4236 = vmatprep.subr.mxu1 %v3372_v1 }
0x1347   : > { %4237 = vmatpush3.msra.mxu1 %v3356_v54 }
0x1348   : > { %4238 = vmatprep.subr.mxu1 %v3371_v2 }
0x1349   : > { %4239 = vmatpush3.msra.mxu1 %v3355_v3 }
0x134a   : > { %4240 = vmatprep.subr.mxu1 %v3370_v57 }
0x134b   : > { %4241 = vmatpush3.msra.mxu1 %v3354_v4 }
0x134c   : > { %4242 = vmatprep.subr.mxu1 %v3369_v5 }
0x134d   : > { %4243 = vmatpush3.msra.mxu1 %v3353_v6 }
0x134e   : > { %4244 = vmatprep.subr.mxu1 %v3368_v7 }
0x134f   : > { %4245 = vmatpush3.msra.mxu1 %v3352_v8 }
0x1350   : > { %4246 = vmatprep.subr.mxu1 %v3367_v9 }
0x1351   : > { %4247 = vmatpush3.msra.mxu1 %v3351_v10 }
0x1352   : > { %4248 = vmatprep.subr.mxu1 %v3366_v15 }
0x1353   : > { %4249 = vmatpush3.msra.mxu1 %v3350_v16 }
0x1354   : > { %4250 = vmatprep.subr.mxu1 %v3365_v19 }
0x1355   : > { %4251 = vmatpush3.msra.mxu1 %v3349_v18 }
0x1356   : > { %4252 = vmatprep.subr.mxu1 %v3364_v25 }
0x1357   : > { %4253 = vmatpush3.msra.mxu1 %v3348_v20 }
0x1358   : > { %4254 = vmatprep.subr.mxu1 %v3363_v21 }
0x1359   : > { %4255 = vmatpush3.msra.mxu1 %v3347_v22 }
0x135a   : > { %4256 = vmatprep.subr.mxu1 %v3362_v58 }
0x135b   : > { %4257 = vmatpush3.msra.mxu1 %v3346_v26 }
0x13d7   : > { %v3299_v29 = vpop.f32.mrf.mxu0 }
0x13d8   : > { %v3300_v59 = vadd.f32 %v3299_v29, %v3226_v23 }
0x13d9   : > { %v3301_v30 = vpop.f32.mrf.mxu0 }
0x13da   : > { %v3314_v60 = vmul.f32 0.044715, %v3300_v59  ;;  %v3302_v0 = vadd.f32 %v3301_v30, %v3230_v28  ;;  %v3310_v11 = vmul.f32 0.5, %v3300_v59 }
0x13dc   : > { %v3318_v33 = vmul.f32 %v3314_v60, %v3300_v59  ;;  %v3315_v36 = vmul.f32 0.044715, %v3302_v0  ;;  %v3311_v32 = vmul.f32 0.5, %v3302_v0 }
0x13de   : > { %v3322_v38 = vmul.f32 %v3318_v33, %v3300_v59  ;;  %v3319_v41 = vmul.f32 %v3315_v36, %v3302_v0 }
0x13e0   : > { %v3326_v42 = vadd.f32 %v3322_v38, %v3300_v59  ;;  %v3323_v45 = vmul.f32 %v3319_v41, %v3302_v0 }
0x13e2   : > { %v3327_v48 = vadd.f32 %v3323_v45, %v3302_v0  ;;  %v3330_v51 = vmul.f32 0.7978846, %v3326_v42 }
0x13e4   : > { %v3331_v49 = vmul.f32 0.7978846, %v3327_v48  ;;  %4887 = vtanh.f32 %v3330_v51 }
0x13e6   : > { %4889 = vtanh.f32 %v3331_v49 }
0x13f1   : > { %v4888_v34 = vpop.eup %4887 }
0x13f2   : > { %v3338_v31 = vadd.f32 1.0, %v4888_v34 }
0x13f3   : > { %v4890_v17 = vpop.eup %4889 }
0x13f4   : > { %v3339_v50 = vadd.f32 1.0, %v4890_v17  ;;  %v3342_v27 = vmul.f32 %v3338_v31, %v3310_v11 }
0x13f6   : > { %v3343_v53 = vmul.f32 %v3339_v50, %v3311_v32 }
0x13f8   : > { %3449 = vmatprep.mubr.f32.mxu1 %v3343_v53  ;;  %v4119_v53 = vld [vmem:[#allocation17] ss:$0 sm:$0xff] }
0x13f9   : > { %3450 = vmatmul.mubr.f32.vlgmr.msra.gmra.mxu1 %v3342_v27 }
0x13fc   : > { %v3132_v35 = vpop.f32.mrf.mxu1 }
0x13fd   : > { %v3136_v56 = vadd.f32 %v3132_v35, %v6148_v62  ;;  %v4120_v35 = vld [vmem:[#allocation18] ss:$0 sm:$0xff] }
0x13fe   : > { %v4553_v39 = vpop.f32.mrf.mxu1 }
0x13ff   : > { %v3145_v43 = vadd.f32 %v6137_v24, %v3136_v56 }
0x1401   : > { %v3147_v13 = vadd.f32 %v4901_v37, %v3145_v43 }
0x1403   : > { %3152 = vadd.xlane.f32.xlu1 %v3147_v13 }
0x148c   : > { %v3153_v44 = vpop.xlane.xlu1 %3152 }
0x148d   : > { %v3156_v40 = vmul.f32 0.0078125, %v3153_v44 }
0x148f   : > { %v3158_v14 = vsub.f32 %v3147_v13, %v3156_v40 }
0x1491   : > { %v3160_v61 = vmul.f32 %v3158_v14, %v3158_v14 }
0x1493   : > { %3163 = vadd.xlane.f32.xlu1 %v3160_v61 }
0x14b9   : > { %v4258_v47 = vpop.f32.mrf.mxu1 }
0x14bb   : > { %v4259_v1 = vpop.f32.mrf.mxu1 }
0x14bc   : > { %v4260_v54 = vadd.f32 %v4259_v1, %v4258_v47 }
0x14be   : > { %v3452_v2 = vadd.f32 %v4260_v54, %v4118_v63 }
0x14c0   : > { %v3460_v3 = vadd.f32 %v3452_v2, %v6259_v55 }
0x14c2   : > { %3464 = vadd.xlane.f32.xlu1 %v3460_v3 }
0x151c   : > { %v3164_v62 = vpop.xlane.xlu1 %3163 }
0x151d   : > { %v3166_v57 = vmul.f32 0.0078125, %v3164_v62 }
0x151f   : > { %v3168_v4 = vadd.f32 1e-12, %v3166_v57 }
0x1521   : > { %4891 = vrsqrt.f32 %v3168_v4 }
0x152e   : > { %v4892_v24 = vpop.eup %4891 }
0x152f   : > { %v3172_v5 = vmul.f32 %v4892_v24, %v3158_v14 }
0x1531   : > { %v3180_v6 = vmul.f32 %v6249_v52, %v3172_v5 }
0x1533   : > { %v3188_v7 = vadd.f32 %v6255_v12, %v3180_v6 }
0x1535   : > { %3304 = vmatmul.mubr.f32.gmra.mxu0 %v3188_v7 }
0x15f5   : > { %v3305_v8 = vpop.f32.mrf.mxu0 }
0x15f6   : > { %v3306_v9 = vadd.f32 %v3305_v8, %v3226_v23 }
0x15f7   : > { %v3307_v10 = vpop.f32.mrf.mxu0 }
0x15f8   : > { %v3316_v15 = vmul.f32 0.044715, %v3306_v9  ;;  %v3308_v16 = vadd.f32 %v3307_v10, %v3230_v28  ;;  %v3312_v23 = vmul.f32 0.5, %v3306_v9  ;;  %v3465_v28 = vpop.xlane.xlu1 %3464 }
0x15f9   : > { %v3468_v36 = vmul.f32 0.0078125, %v3465_v28 }
0x15fa   : > { %v3320_v19 = vmul.f32 %v3316_v15, %v3306_v9  ;;  %v3317_v18 = vmul.f32 0.044715, %v3308_v16  ;;  %v3313_v29 = vmul.f32 0.5, %v3308_v16 }
0x15fb   : > { %v3470_v42 = vsub.f32 %v3460_v3, %v3468_v36 }
0x15fc   : > { %v3321_v55 = vmul.f32 %v3317_v18, %v3308_v16  ;;  %v3324_v25 = vmul.f32 %v3320_v19, %v3306_v9 }
0x15fd   : > { %v3472_v48 = vmul.f32 %v3470_v42, %v3470_v42 }
0x15fe   : > { %v3325_v20 = vmul.f32 %v3321_v55, %v3308_v16  ;;  %v3328_v21 = vadd.f32 %v3324_v25, %v3306_v9 }
0x1600   : > { %v3329_v22 = vadd.f32 %v3325_v20, %v3308_v16  ;;  %v3332_v58 = vmul.f32 0.7978846, %v3328_v21 }
0x1602   : > { %v3333_v26 = vmul.f32 0.7978846, %v3329_v22  ;;  %4893 = vtanh.f32 %v3332_v58 }
0x1604   : > { %4895 = vtanh.f32 %v3333_v26 }
0x160f   : > { %v4894_v52 = vpop.eup %4893 }
0x1610   : > { %v3340_v12 = vadd.f32 1.0, %v4894_v52 }
0x1611   : > { %v4896_v46 = vpop.eup %4895 }
0x1612   : > { %v3341_v59 = vadd.f32 1.0, %v4896_v46  ;;  %v3344_v60 = vmul.f32 %v3340_v12, %v3312_v23 }
0x1614   : > { %v3345_v30 = vmul.f32 %v3341_v59, %v3313_v29 }
0x1616   : > { %3454 = vmatprep.mubr.f32.mxu1 %v3345_v30 }
0x1617   : > { %3455 = vmatmul.mubr.f32.gmra.mxu1 %v3344_v60 }
0x16d7   : > { %v4261_v0 = vpop.f32.mrf.mxu1 }
0x16d9   : > { %v4262_v33 = vpop.f32.mrf.mxu1 }
0x16da   : > { %v4263_v38 = vadd.f32 %v4262_v33, %v4261_v0 }
0x16dc   : > { %v3457_v41 = vadd.f32 %v4263_v38, %v4118_v63 }
0x16de   : > { %v3461_v45 = vadd.f32 %v3457_v41, %v3188_v7 }
0x16e0   : > { %3466 = vadd.xlane.f32.xlu1 %v3461_v45 }
0x16e4   : > { %3474 = vadd.xlane.f32.xlu1 %v3472_v48 }
0x1769   : > { %v3467_v51 = vpop.xlane.xlu1 %3466 }
0x176a   : > { %v3469_v49 = vmul.f32 0.0078125, %v3467_v51 }
0x176c   : > { %v3471_v34 = vsub.f32 %v3461_v45, %v3469_v49 }
0x176d   : > { %v3475_v17 = vpop.xlane.xlu1 %3474 }
0x176e   : > { %v3478_v31 = vmul.f32 0.0078125, %v3475_v17  ;;  %v3473_v32 = vmul.f32 %v3471_v34, %v3471_v34 }
0x1770   : > { %v3480_v50 = vadd.f32 1e-12, %v3478_v31  ;;  %3476 = vadd.xlane.f32.xlu1 %v3473_v32 }
0x1772   : > { %4897 = vrsqrt.f32 %v3480_v50 }
0x177f   : > { %v4898_v11 = vpop.eup %4897 }
0x1780   : > { %v3484_v27 = vmul.f32 %v4898_v11, %v3470_v42 }
0x1782   : > { %v3492_v56 = vmul.f32 %v4119_v53, %v3484_v27 }
0x1784   : > { %v6273_v39 = vadd.f32 %v4120_v35, %v3492_v56 }
0x1786   : > { %3502 = vst [vmem:[#allocation2] sm:$0xff] %v6273_v39 }
0x17f9   : > { %v3477_v43 = vpop.xlane.xlu1 %3476 }
0x17fa   : > { %v3479_v37 = vmul.f32 0.0078125, %v3477_v43 }
0x17fc   : > { %v3481_v13 = vadd.f32 1e-12, %v3479_v37 }
0x17fe   : > { %4899 = vrsqrt.f32 %v3481_v13 }
0x180b   : > { %v4900_v44 = vpop.eup %4899 }
0x180c   : > { %v3485_v40 = vmul.f32 %v4900_v44, %v3471_v34 }
0x180e   : > { %v3493_v14 = vmul.f32 %v4119_v53, %v3485_v40  ;;  %3507 = sbr.rel (%p4121_p7) target bundleno = 6947 (0x1b23), region = 168 }
0x1810   : > { %v6276_v61 = vadd.f32 %v4120_v35, %v3493_v14 }
0x1812   : > { %3503 = vst [vmem:[#allocation2 + $0x8] sm:$0xff] %v6276_v61 }
0x1813   : > { %v6280_v47 = vld [vmem:[#allocation20 + $0x78] sm:$0xff]  ;;  %v5336_v63 = vmov 0.0   ;;  %v6283_v1 = vld [vmem:[#allocation20 + $0x70] sm:$0xff]  ;;  %vm5337_vm4 = vmmov 0   ;;  %v6290_v54 = vld [vmem:[#allocation20 + $0x68] sm:$0xff]  ;;  %vm3683_vm5 = vcmask 16384  }
0x1814   : > { %4554 = vmatprep.subr.mxu0 %v5336_v63  ;;  %4586 = vmatprep.mubr.msk.f32.mxu0 %vm5337_vm4, %v5336_v63  ;;  %v6296_v2 = vld [vmem:[#allocation20 + $0x60] sm:$0xff]  ;;  %v6301_v3 = vld [vmem:[%s6491_s20 + $0x78] sm:$0xff]  ;;  %v6306_v62 = vld [vmem:[%s6491_s20 + $0x70] sm:$0xff] }
0x1815   : > { %4555 = vmatpush3.msra.mxu0 %v6280_v47  ;;  %4589 = vmatprep.subr.mxu1 %v5336_v63  ;;  %v6311_v57 = vld [vmem:[#allocation20 + $0x58] sm:$0xff]  ;;  %v6317_v4 = vld [vmem:[%s6491_s20 + $0x68] sm:$0xff]  ;;  %v3518_v24 = vld [vmem:[#allocation20 + $0x50] sm:$0xff] }
0x1816   : > { %4556 = vmatprep.subr.mxu0 %v5336_v63  ;;  %4621 = vmatprep.mubr.msk.f32.mxu1 %vm5337_vm4, %v5336_v63  ;;  %v6326_v5 = vld [vmem:[%s6491_s20 + $0x60] sm:$0xff]  ;;  %v3517_v6 = vld [vmem:[#allocation20 + $0x48] sm:$0xff]  ;;  %v6335_v7 = vld [vmem:[%s6491_s20 + $0x58] sm:$0xff] }
0x1817   : > { %4557 = vmatpush3.msra.mxu0 %v6283_v1  ;;  %4590 = vmatpush3.msra.mxu1 %v6301_v3  ;;  %v3516_v8 = vld [vmem:[#allocation20 + $0x40] sm:$0xff]  ;;  %v6343_v9 = vld [vmem:[%s6491_s20 + $0x50] sm:$0xff]  ;;  %v3515_v10 = vld [vmem:[#allocation20 + $0x38] sm:$0xff] }
0x1818   : > { %4558 = vmatprep.subr.mxu0 %v5336_v63  ;;  %4591 = vmatprep.subr.mxu1 %v5336_v63  ;;  %v6351_v15 = vld [vmem:[%s6491_s20 + $0x48] sm:$0xff]  ;;  %v3514_v16 = vld [vmem:[#allocation20 + $0x30] sm:$0xff]  ;;  %v3511_v55 = vld [vmem:[#allocation20 + $0x18] sm:$0xff] }
0x1819   : > { %4559 = vmatpush3.msra.mxu0 %v6290_v54  ;;  %4592 = vmatpush3.msra.mxu1 %v6306_v62  ;;  %v3513_v19 = vld [vmem:[#allocation20 + $0x28] sm:$0xff]  ;;  %v3512_v18 = vld [vmem:[#allocation20 + $0x20] sm:$0xff]  ;;  %v3510_v25 = vld [vmem:[#allocation20 + $0x10] sm:$0xff] }
0x181a   : > { %4560 = vmatprep.subr.mxu0 %v5336_v63  ;;  %4593 = vmatprep.subr.mxu1 %v5336_v63  ;;  %v3509_v20 = vld [vmem:[#allocation20 + $0x8] sm:$0xff]  ;;  %v3508_v21 = vld [vmem:[#allocation20] sm:$0xff]  ;;  %v3603_v58 = vld [vmem:[%s6491_s20 + $0x38] sm:$0xff] }
0x181b   : > { %4561 = vmatpush3.msra.mxu0 %v6296_v2  ;;  %4594 = vmatpush3.msra.mxu1 %v6317_v4  ;;  %v3604_v22 = vld [vmem:[%s6491_s20 + $0x40] sm:$0xff]  ;;  %v3602_v26 = vld [vmem:[%s6491_s20 + $0x30] sm:$0xff]  ;;  %v3601_v52 = vld [vmem:[%s6491_s20 + $0x28] sm:$0xff] }
0x181c   : > { %4562 = vmatprep.subr.mxu0 %v5336_v63  ;;  %4595 = vmatprep.subr.mxu1 %v5336_v63  ;;  %v3600_v46 = vld [vmem:[%s6491_s20 + $0x20] sm:$0xff]  ;;  %v3599_v12 = vld [vmem:[%s6491_s20 + $0x18] sm:$0xff]  ;;  %v3598_v29 = vld [vmem:[%s6491_s20 + $0x10] sm:$0xff] }
0x181d   : > { %4563 = vmatpush3.msra.mxu0 %v6311_v57  ;;  %4596 = vmatpush3.msra.mxu1 %v6326_v5  ;;  %v3597_v59 = vld [vmem:[%s6491_s20 + $0x8] sm:$0xff]  ;;  %v3596_v23 = vld [vmem:[%s6491_s20] sm:$0xff] }
0x181e   : > { %4564 = vmatprep.subr.mxu0 %v5336_v63  ;;  %4597 = vmatprep.subr.mxu1 %v5336_v63  ;;  %v3524_v30 = vld [vmem:[#allocation21] sm:$0x1]  ;;  %v3612_v48 = vld [vmem:[#allocation23] sm:$0x1] }
0x181f   : > { %4565 = vmatpush3.msra.mxu0 %v3518_v24  ;;  %4598 = vmatpush3.msra.mxu1 %v6335_v7  ;;  %v3713_v36 = vld [vmem:[#allocation21] sm:$0x1]  ;;  %v3801_v31 = vld [vmem:[#allocation23] sm:$0x1] }
0x1820   : > { %4566 = vmatprep.subr.mxu0 %v5336_v63  ;;  %4599 = vmatprep.subr.mxu1 %v5336_v63 }
0x1821   : > { %4567 = vmatpush3.msra.mxu0 %v3517_v6  ;;  %4600 = vmatpush3.msra.mxu1 %v6343_v9 }
0x1822   : > { %4568 = vmatprep.subr.mxu0 %v5336_v63  ;;  %4601 = vmatprep.subr.mxu1 %v5336_v63 }
0x1823   : > { %4569 = vmatpush3.msra.mxu0 %v3516_v8  ;;  %4602 = vmatpush3.msra.mxu1 %v6351_v15 }
0x1824   : > { %4570 = vmatprep.subr.mxu0 %v5336_v63  ;;  %4603 = vmatprep.subr.mxu1 %v5336_v63 }
0x1825   : > { %4571 = vmatpush3.msra.mxu0 %v3515_v10  ;;  %4604 = vmatpush3.msra.mxu1 %v3604_v22 }
0x1826   : > { %4572 = vmatprep.subr.mxu0 %v5336_v63  ;;  %4605 = vmatprep.subr.mxu1 %v5336_v63 }
0x1827   : > { %4573 = vmatpush3.msra.mxu0 %v3514_v16  ;;  %4606 = vmatpush3.msra.mxu1 %v3603_v58 }
0x1828   : > { %4574 = vmatprep.subr.mxu0 %v5336_v63  ;;  %4607 = vmatprep.subr.mxu1 %v5336_v63 }
0x1829   : > { %4575 = vmatpush3.msra.mxu0 %v3513_v19  ;;  %4608 = vmatpush3.msra.mxu1 %v3602_v26 }
0x182a   : > { %4576 = vmatprep.subr.mxu0 %v5336_v63  ;;  %4609 = vmatprep.subr.mxu1 %v5336_v63 }
0x182b   : > { %4577 = vmatpush3.msra.mxu0 %v3512_v18  ;;  %4610 = vmatpush3.msra.mxu1 %v3601_v52 }
0x182c   : > { %4578 = vmatprep.subr.mxu0 %v5336_v63  ;;  %4611 = vmatprep.subr.mxu1 %v5336_v63 }
0x182d   : > { %4579 = vmatpush3.msra.mxu0 %v3511_v55  ;;  %4612 = vmatpush3.msra.mxu1 %v3600_v46 }
0x182e   : > { %4580 = vmatprep.subr.mxu0 %v5336_v63  ;;  %4613 = vmatprep.subr.mxu1 %v5336_v63 }
0x182f   : > { %4581 = vmatpush3.msra.mxu0 %v3510_v25  ;;  %4614 = vmatpush3.msra.mxu1 %v3599_v12 }
0x1830   : > { %4582 = vmatprep.subr.mxu0 %v5336_v63  ;;  %4615 = vmatprep.subr.mxu1 %v5336_v63 }
0x1831   : > { %4583 = vmatpush3.msra.mxu0 %v3509_v20  ;;  %4616 = vmatpush3.msra.mxu1 %v3598_v29 }
0x1832   : > { %4584 = vmatprep.subr.mxu0 %v5336_v63  ;;  %4617 = vmatprep.subr.mxu1 %v5336_v63 }
0x1833   : > { %4585 = vmatpush3.msra.mxu0 %v3508_v21  ;;  %4618 = vmatpush3.msra.mxu1 %v3597_v59 }
0x1834   : > { %4587 = vmatmul.mubr.f32.vlgmr.msra.gmra.mxu0 %v6273_v39  ;;  %4624 = vmatprep.subr.mxu0 %v5336_v63 }
0x1835   : > { %4625 = vmatpush3.msra.mxu0 %v6280_v47  ;;  %4656 = vmatprep.mubr.msk.f32.mxu0 %vm5337_vm4, %v5336_v63 }
0x1836   : > { %4626 = vmatprep.subr.mxu0 %v5336_v63  ;;  %4619 = vmatprep.subr.mxu1 %v5336_v63 }
0x1837   : > { %4627 = vmatpush3.msra.mxu0 %v6283_v1  ;;  %4620 = vmatpush3.msra.mxu1 %v3596_v23 }
0x1838   : > { %4628 = vmatprep.subr.mxu0 %v5336_v63  ;;  %4659 = vmatprep.subr.mxu1 %v5336_v63 }
0x1839   : > { %4629 = vmatpush3.msra.mxu0 %v6290_v54 }
0x183a   : > { %4630 = vmatprep.subr.mxu0 %v5336_v63 }
0x183b   : > { %4631 = vmatpush3.msra.mxu0 %v6296_v2 }
0x183c   : > { %4632 = vmatprep.subr.mxu0 %v5336_v63 }
0x183d   : > { %4633 = vmatpush3.msra.mxu0 %v6311_v57 }
0x183e   : > { %4634 = vmatprep.subr.mxu0 %v5336_v63 }
0x183f   : > { %4635 = vmatpush3.msra.mxu0 %v3518_v24 }
0x1840   : > { %4636 = vmatprep.subr.mxu0 %v5336_v63 }
0x1841   : > { %4637 = vmatpush3.msra.mxu0 %v3517_v6 }
0x1842   : > { %4638 = vmatprep.subr.mxu0 %v5336_v63 }
0x1843   : > { %4639 = vmatpush3.msra.mxu0 %v3516_v8 }
0x1844   : > { %4640 = vmatprep.subr.mxu0 %v5336_v63 }
0x1845   : > { %4641 = vmatpush3.msra.mxu0 %v3515_v10 }
0x1846   : > { %4642 = vmatprep.subr.mxu0 %v5336_v63 }
0x1847   : > { %4643 = vmatpush3.msra.mxu0 %v3514_v16 }
0x1848   : > { %4644 = vmatprep.subr.mxu0 %v5336_v63 }
0x1849   : > { %4645 = vmatpush3.msra.mxu0 %v3513_v19 }
0x184a   : > { %4646 = vmatprep.subr.mxu0 %v5336_v63 }
0x184b   : > { %4647 = vmatpush3.msra.mxu0 %v3512_v18 }
0x184c   : > { %4648 = vmatprep.subr.mxu0 %v5336_v63 }
0x184d   : > { %4649 = vmatpush3.msra.mxu0 %v3511_v55 }
0x184e   : > { %4650 = vmatprep.subr.mxu0 %v5336_v63 }
0x184f   : > { %4651 = vmatpush3.msra.mxu0 %v3510_v25 }
0x1850   : > { %4652 = vmatprep.subr.mxu0 %v5336_v63 }
0x1851   : > { %4653 = vmatpush3.msra.mxu0 %v3509_v20 }
0x1852   : > { %4654 = vmatprep.subr.mxu0 %v5336_v63 }
0x1853   : > { %4655 = vmatpush3.msra.mxu0 %v3508_v21 }
0x1854   : > { %4657 = vmatmul.mubr.f32.vlgmr.msra.gmra.mxu0 %v6276_v61 }
0x18f4   : > { %v3591_v60 = vpop.f32.mrf.mxu0 }
0x18f5   : > { %v3592_v28 = vadd.f32 %v3591_v60, %v3524_v30 }
0x18f6   : > { %v4588_v0 = vpop.f32.mrf.mxu0 }
0x18f7   : > { %4902 = vtanh.f32 %v3592_v28 }
0x1904   : > { %v4903_v33 = vpop.eup %4902 }
0x1905   : > { %4622 = vmatmul.mubr.f32.vlgmr.msra.gmra.mxu1 %v4903_v33 }
0x1906   : > { %4660 = vmatpush3.msra.mxu1 %v6301_v3  ;;  %4691 = vmatprep.mubr.msk.f32.mxu1 %vm5337_vm4, %v5336_v63 }
0x1907   : > { %4661 = vmatprep.subr.mxu1 %v5336_v63 }
0x1908   : > { %4662 = vmatpush3.msra.mxu1 %v6306_v62 }
0x1909   : > { %4663 = vmatprep.subr.mxu1 %v5336_v63 }
0x190a   : > { %4664 = vmatpush3.msra.mxu1 %v6317_v4 }
0x190b   : > { %4665 = vmatprep.subr.mxu1 %v5336_v63 }
0x190c   : > { %4666 = vmatpush3.msra.mxu1 %v6326_v5 }
0x190d   : > { %4667 = vmatprep.subr.mxu1 %v5336_v63 }
0x190e   : > { %4668 = vmatpush3.msra.mxu1 %v6335_v7 }
0x190f   : > { %4669 = vmatprep.subr.mxu1 %v5336_v63 }
0x1910   : > { %4670 = vmatpush3.msra.mxu1 %v6343_v9 }
0x1911   : > { %4671 = vmatprep.subr.mxu1 %v5336_v63 }
0x1912   : > { %4672 = vmatpush3.msra.mxu1 %v6351_v15 }
0x1913   : > { %4673 = vmatprep.subr.mxu1 %v5336_v63 }
0x1914   : > { %v3780_v38 = vpop.f32.mrf.mxu0  ;;  %4674 = vmatpush3.msra.mxu1 %v3604_v22 }
0x1915   : > { %v3781_v41 = vadd.f32 %v3780_v38, %v3713_v36  ;;  %4675 = vmatprep.subr.mxu1 %v5336_v63 }
0x1916   : > { %v4658_v42 = vpop.f32.mrf.mxu0  ;;  %4676 = vmatpush3.msra.mxu1 %v3603_v58 }
0x1917   : > { %4904 = vtanh.f32 %v3781_v41  ;;  %4677 = vmatprep.subr.mxu1 %v5336_v63 }
0x1918   : > { %4678 = vmatpush3.msra.mxu1 %v3602_v26 }
0x1919   : > { %4679 = vmatprep.subr.mxu1 %v5336_v63 }
0x191a   : > { %4680 = vmatpush3.msra.mxu1 %v3601_v52 }
0x191b   : > { %4681 = vmatprep.subr.mxu1 %v5336_v63 }
0x191c   : > { %4682 = vmatpush3.msra.mxu1 %v3600_v46 }
0x191d   : > { %4683 = vmatprep.subr.mxu1 %v5336_v63 }
0x191e   : > { %4684 = vmatpush3.msra.mxu1 %v3599_v12 }
0x191f   : > { %4685 = vmatprep.subr.mxu1 %v5336_v63 }
0x1920   : > { %4686 = vmatpush3.msra.mxu1 %v3598_v29 }
0x1921   : > { %4687 = vmatprep.subr.mxu1 %v5336_v63 }
0x1922   : > { %4688 = vmatpush3.msra.mxu1 %v3597_v59 }
0x1923   : > { %4689 = vmatprep.subr.mxu1 %v5336_v63 }
0x1924   : > { %v4905_v45 = vpop.eup %4904  ;;  %4690 = vmatpush3.msra.mxu1 %v3596_v23 }
0x1925   : > { %4692 = vmatmul.mubr.f32.vlgmr.msra.gmra.mxu1 %v4905_v45 }
0x19c5   : > { %v3679_v51 = vpop.f32.mrf.mxu1 }
0x19c6   : > { %v3680_v49 = vadd.f32 %v3679_v51, %v3612_v48 }
0x19c7   : > { %v4623_v34 = vpop.f32.mrf.mxu1 }
0x19c8   : > { %v3684_v17 = vsel %vm3683_vm5, %v3680_v49, -inf }
0x19c9   : > { %3685 = vmax.xlane.f32.xlu0 %v3684_v17 }
0x19e5   : > { %v3868_v32 = vpop.f32.mrf.mxu1 }
0x19e6   : > { %v3869_v50 = vadd.f32 %v3868_v32, %v3801_v31 }
0x19e7   : > { %v4693_v11 = vpop.f32.mrf.mxu1 }
0x19e8   : > { %v3872_v53 = vsel %vm3683_vm5, %v3869_v50, -inf }
0x19e9   : > { %3873 = vmax.xlane.f32.xlu0 %v3872_v53 }
0x1a52   : > { %v3686_v27 = vpop.xlane.xlu0 %3685 }
0x1a53   : > { %v3687_v35 = vsub.f32 %v3680_v49, %v3686_v27 }
0x1a55   : > { %v3688_v56 = vmul.f32 1.442695, %v3687_v35 }
0x1a57   : > { %4906 = vpow2.f32 %v3688_v56 }
0x1a64   : > { %v4907_v39 = vpop.eup %4906 }
0x1a65   : > { %v3690_v43 = vsel %vm3683_vm5, %v4907_v39, 0.0 }
0x1a66   : > { %3691 = vadd.xlane.f32.xlu1 %v3690_v43 }
0x1a72   : > { %v3874_v37 = vpop.xlane.xlu0 %3873 }
0x1a73   : > { %v3875_v13 = vsub.f32 %v3869_v50, %v3874_v37 }
0x1a75   : > { %v3876_v44 = vmul.f32 1.442695, %v3875_v13 }
0x1a77   : > { %4908 = vpow2.f32 %v3876_v44 }
0x1a84   : > { %v4909_v40 = vpop.eup %4908 }
0x1a85   : > { %v3878_v14 = vsel %vm3683_vm5, %v4909_v40, 0.0 }
0x1a86   : > { %3879 = vadd.xlane.f32.xlu1 %v3878_v14 }
0x1aef   : > { %v3692_v61 = vpop.xlane.xlu1 %3691 }
0x1af0   : > { %4910 = vlog2.f32 %v3692_v61 }
0x1afd   : > { %v4911_v47 = vpop.eup %4910 }
0x1afe   : > { %v3694_v63 = vmul.f32 0.6931472, %v4911_v47 }
0x1b00   : > { %v3695_v1 = vsub.f32 %v3687_v35, %v3694_v63 }
0x1b02   : > { %3696 = vst.msk [vmem:[#allocation24] sm:$0x1] %vm3683_vm5, %v3695_v1 }
0x1b0f   : > { %v3880_v54 = vpop.xlane.xlu1 %3879 }
0x1b10   : > { %4912 = vlog2.f32 %v3880_v54 }
0x1b1d   : > { %v4913_v2 = vpop.eup %4912 }
0x1b1e   : > { %v3882_v3 = vmul.f32 0.6931472, %v4913_v2 }
0x1b20   : > { %v3883_v62 = vsub.f32 %v3875_v13, %v3882_v3 }
0x1b22   : > { %3884 = vst.msk [vmem:[#allocation24 + $0x1] sm:$0x1] %vm3683_vm5, %v3883_v62 }
0x1b23 PF: > { %p4816_p3 = scmp.eq.s32.totalorder %s5460_s30, 1  ;;  %s5338_s7 = smov [#allocation24]  }
0x1b24   : > { %s3892_s24 = sshll.u32 %s5338_s7, 4  ;;  %s3893_s24 = int_to_ptr.vmem [resolvable:$true] %s3892_s24 }
0x1b25   : > { %s5252_s5 = scalar_lea.vmem %s3893_s24, 32  ;;  %p5259_p4 = scmp.lt.s32.totalorder %s3893_s24, %s3893_s24 }
0x1b26   : > { %p5253_p5 = scmp.ne.s32.totalorder %s3893_s24, %s5252_s5  ;;  %p5260_p8 = scmp.lt.s32.totalorder %s5252_s5, %s5252_s5 }
0x1b28   : > { %p5254_p1 = pnand %p5253_p5, %p4816_p3  ;;  %p5261_p9 = por %p5260_p8, %p5259_p4 }
0x1b2a   : > { %p5255_p6 = pneg %p5254_p1 }
0x1b2c   : > { %p5262_p11 = pnand %p5261_p9, %p5255_p6 }
0x1b2e   : > { %5265 = shalt.err (!%p5262_p11)
}
0x1b2f   : > { %4747 = dma.vmem_to_hbm [thread:$0]  (%p4816_p3), %s3893_s24, 32, %s6493_s22, [#allocation5]  }
0x1b30   : > { %5309 = dma.done.wait (%p4816_p3), [#allocation5], 32  }
0x1b31   : > { %5311 = vsyncadd (%p4816_p3), [#allocation5], 4294967264 }
0x1b32 PF: > { %s40_s3 = sadd.s32 1, %s5314_s3  }
0x1b33   : > { %p37_p12 = scmp.ge.s32.totalorder %s40_s3, 4  }
0x1b35   :  { %39 = sbr.rel (!%p37_p12) target bundleno = 17 (0x11), region = 194 }
0x1b3a   :  { %3905 = vsyncpa [#allocation4], 1 }
0x1b3b   :  { %3907 = vsyncpa [#allocation4 + $0x1], 1 }
0x1b3c   :  { %3908 = vsyncpa [#allocation7], 1 }
0x1b3d   :  { %3909 = vsyncpa [#allocation10], 1 }
0x1b3e   :  { %3910 = vsyncpa [#allocation13], 1 }
0x1b3f   :  { %3911 = vsyncpa [#allocation16], 1 }
0x1b40   :  { %3912 = vsyncpa [#allocation19], 1 }
0x1b41   :  { %3913 = vsyncpa [#allocation22], 1 }
0x1b42   :  { %3914 = vsyncpa [#allocation5], 1 }
0x1b43   :  { %3916 = vsyncpa [#allocation5 + $0x1], 1 }

</bundles_post_ra>
